<compile_context>
chip_gen: v7x
topology: tpu7x:2x2x1
jax: 0.10.0
libtpu: 0.0.40
codegen_flags: <defaults>
</compile_context>

<pallas_src>
import jax
import jax.numpy as jnp
from jax.experimental import pallas as pl
from jax.experimental.pallas import tpu as pltpu

_BN_EPS = 1e-5

# Row-strip height for the conv kernels.  8-32 rows is the useful range; 8 is
# used so the multi-strip (cross-strip BN accumulation) path is exercised even
# at the small 16x16 test size.  Re-derive from the per-generation VMEM budget
# (64 MiB on v7x, 128 MiB on v5e/v6e) for production resolutions.
_STRIP_ROWS = 8

# Output-channel tile: 256 matches the 256-wide MXU on v6e/v7x; 128 is equally
# good on v5e (4x128^2 MXU).
_CO_TILE_MAX = 256

# Scoped-VMEM request: above the 32 MiB default, below v7x's 64 MiB physical.
_VMEM_LIMIT = 48 * 1024 * 1024


# ------------------------------ helpers -------------------------------------

def _largest_divisor_at_most(n, cap):
    k = min(n, cap)
    while n % k:
        k -= 1
    return k


def _pick_co_tile(cout):
    if cout <= _CO_TILE_MAX:
        return cout
    for cand in (256, 128):              # must stay a multiple of 128 (lane tiling)
        if cout % cand == 0:
            return cand
    return cout                          # fall back to full width


def _pick_row_tile(n, cap=1024):
    if n <= cap:
        return n
    k = cap - cap % 8
    while k >= 8:                        # row tile must be a multiple of 8
        if n % k == 0:
            return k
        k -= 8
    return n


# ------------------------------ Pallas kernels ------------------------------

def _make_conv3x3_stats_kernel(apply_input_act):
    """Conv2d(3x3, pad=1) + batch-statistics kernel.

    If `apply_input_act` is True, a per-input-channel BN affine (scale/shift)
    followed by ReLU is applied to the input tile in-kernel before the conv
    (this fuses the previous layer's BatchNorm+ReLU into this layer's conv and
    saves a full read+write pass over the activation).
    """

    def kernel(body_ref, top_ref, bot_ref, scale_ref, shift_ref, w_ref,
               y_ref, sum_ref, ssq_ref):
        # body_ref : (N, K, W, Cin)   pre-activation rows [s*K, (s+1)*K)
        # top_ref  : (N, 1, W, Cin)   row s*K-1   (clamped; zero-masked if s==0)
        # bot_ref  : (N, 1, W, Cin)   row (s+1)*K (clamped; zero-masked if last)
        # scale/shift : (1, Cin) f32  BN affine for the *input* channels
        # w_ref    : (3, 3*Cin, Ct)   bf16 weights, index = (kh, kw*Cin+cin, co)
        # y_ref    : (N, K, W, Ct)    f32 raw (pre-BN) conv output
        # sum_ref, ssq_ref : (1, Ct)  f32 per-channel stats, resident over strips
        s = pl.program_id(1)
        n_strips = pl.num_programs(1)
        N, K, W, Cin = body_ref.shape
        Ct = y_ref.shape[3]

        def act(t):
            if apply_input_act:
                t = (t.astype(jnp.float32) * scale_ref[...].reshape(1, 1, 1, Cin)
                     + shift_ref[...].reshape(1, 1, 1, Cin))
                t = jnp.maximum(t, 0.0)
            return t.astype(jnp.bfloat16)

        body = act(body_ref[...])
        # Zero-mask halos that fall outside the image AFTER the activation, so
        # the conv sees zero-padded activations (matching PyTorch's pad=1).
        top = act(top_ref[...]) * (s > 0).astype(jnp.bfloat16)
        bot = act(bot_ref[...]) * (s < n_strips - 1).astype(jnp.bfloat16)

        xp = jnp.concatenate([top, body, bot], axis=1)          # (N, K+2, W, Cin)
        zcol = jnp.zeros((N, K + 2, 1, Cin), jnp.bfloat16)
        xp = jnp.concatenate([zcol, xp, zcol], axis=2)          # (N, K+2, W+2, Cin)

        # Widen along kw once per strip: channel index = kw*Cin + cin.
        xw = jnp.concatenate(
            [xp[:, :, 0:W, :], xp[:, :, 1:W + 1, :], xp[:, :, 2:W + 2, :]],
            axis=-1)                                            # (N, K+2, W, 3*Cin)

        # 3 MXU matmuls (one per kernel row), bf16 inputs, f32 accumulation.
        acc = jnp.zeros((N * K * W, Ct), jnp.float32)
        for kh in range(3):
            lhs = xw[:, kh:kh + K, :, :].reshape(N * K * W, 3 * Cin)
            acc = acc + jnp.dot(lhs, w_ref[kh],
                                preferred_element_type=jnp.float32)
        # NOTE: the Conv2d bias is intentionally omitted: a per-channel
        # constant is exactly cancelled by the following BatchNorm mean
        # subtraction.

        y_ref[...] = acc.reshape(N, K, W, Ct)

        @pl.when(s == 0)
        def _():
            sum_ref[...] = jnp.zeros_like(sum_ref)
            ssq_ref[...] = jnp.zeros_like(ssq_ref)

        sum_ref[...] += jnp.sum(acc, axis=0, keepdims=True)     # (1, Ct)
        ssq_ref[...] += jnp.sum(acc * acc, axis=0, keepdims=True)

    return kernel


def _bn_relu_kernel(x_ref, scale_ref, shift_ref, o_ref):
    """Element-wise BN affine (precomputed scale/shift) + ReLU, f32 math."""
    y = x_ref[...] * scale_ref[...] + shift_ref[...]
    o_ref[...] = jnp.maximum(y, 0.0).astype(o_ref.dtype)


# ------------------------------ layer wrappers -------------------------------

def _conv3x3_stats(x, w, in_scale, in_shift, apply_input_act):
    """Raw conv output (f32) + per-channel sum / sum-of-squares.

    x: (N, H, W, Cin) NHWC, unpadded.  w: (3, 3, Cin, Cout) HWIO.
    in_scale / in_shift: (1, Cin) f32 BN affine fused onto the input
    (ignored when apply_input_act=False).
    """
    N, H, W, Cin = x.shape
    Cout = w.shape[-1]
    K = _largest_divisor_at_most(H, _STRIP_ROWS)       # row-strip height (divides H)
    co_t = _pick_co_tile(Cout)
    assert Cout % co_t == 0, (Cout, co_t)

    w3 = w.astype(jnp.bfloat16).reshape(3, 3 * Cin, Cout)
    grid = (Cout // co_t, H // K)                      # (channel tiles, row strips)

    return pl.pallas_call(
        _make_conv3x3_stats_kernel(apply_input_act),
        out_shape=(
            jax.ShapeDtypeStruct((N, H, W, Cout), jnp.float32),
            jax.ShapeDtypeStruct((1, Cout), jnp.float32),
            jax.ShapeDtypeStruct((1, Cout), jnp.float32),
        ),
        grid_spec=pltpu.PrefetchScalarGridSpec(
            num_scalar_prefetch=0,
            grid=grid,
            in_specs=[
                # body strip rows [s*K, (s+1)*K)
                pl.BlockSpec((N, K, W, Cin), lambda j, s: (0, s, 0, 0)),
                # top halo row s*K - 1 (clamped to 0; zero-masked in-kernel)
                pl.BlockSpec((N, 1, W, Cin),
                             lambda j, s: (0, jnp.maximum(s * K - 1, 0), 0, 0)),
                # bottom halo row (s+1)*K (clamped to H-1; zero-masked in-kernel)
                pl.BlockSpec((N, 1, W, Cin),
                             lambda j, s: (0, jnp.minimum((s + 1) * K, H - 1), 0, 0)),
                # fused-input BN affine (tiny, re-fetched per step)
                pl.BlockSpec((1, Cin), lambda j, s: (0, 0)),
                pl.BlockSpec((1, Cin), lambda j, s: (0, 0)),
                # weight slab for this output-channel tile
                pl.BlockSpec((3, 3 * Cin, co_t), lambda j, s: (0, 0, j)),
            ],
            out_specs=(
                pl.BlockSpec((N, K, W, co_t), lambda j, s: (0, s, 0, j)),
                pl.BlockSpec((1, co_t), lambda j, s: (0, j)),   # resident over strips
                pl.BlockSpec((1, co_t), lambda j, s: (0, j)),   # resident over strips
            ),
        ),
        compiler_params=pltpu.CompilerParams(
            dimension_semantics=("parallel", "arbitrary"),
            vmem_limit_bytes=_VMEM_LIMIT),
    )(x, x, x, in_scale, in_shift, w3)


def _bn_relu_apply(y_flat, scale, shift, out_dtype):
    R, C = y_flat.shape
    rt = _pick_row_tile(R)
    co_t = _pick_co_tile(C)
    assert R % rt == 0 and C % co_t == 0, (R, rt, C, co_t)
    grid = (R // rt, C // co_t)
    return pl.pallas_call(
        _bn_relu_kernel,
        out_shape=jax.ShapeDtypeStruct((R, C), out_dtype),
        grid_spec=pltpu.PrefetchScalarGridSpec(
            num_scalar_prefetch=0,
            grid=grid,
            in_specs=[
                pl.BlockSpec((rt, co_t), lambda i, j: (i, j)),
                pl.BlockSpec((1, co_t), lambda i, j: (0, j)),
                pl.BlockSpec((1, co_t), lambda i, j: (0, j)),
            ],
            out_specs=pl.BlockSpec((rt, co_t), lambda i, j: (i, j)),
        ),
        compiler_params=pltpu.CompilerParams(
            dimension_semantics=("parallel", "parallel"),
            vmem_limit_bytes=_VMEM_LIMIT),
    )(y_flat, scale, shift)


def _bn_scale_shift(ssum, ssq, gamma, beta, count):
    """Fold training-mode BatchNorm (biased variance) into scale/shift. O(C)."""
    mean = ssum / count
    var = jnp.maximum(ssq / count - mean * mean, 0.0)
    scale = gamma.reshape(1, -1).astype(jnp.float32) * jax.lax.rsqrt(var + _BN_EPS)
    shift = beta.reshape(1, -1).astype(jnp.float32) - mean * scale
    return scale, shift


def double_conv(x_nhwc, p):
    N, H, W, Cin = x_nhwc.shape
    Cout = p["w1"].shape[-1]
    cnt = jnp.float32(N * H * W)

    # Pass A: conv1 + stats (no fused input activation on the raw module input).
    dummy = jnp.zeros((1, Cin), jnp.float32)
    y1, s1, q1 = _conv3x3_stats(x_nhwc, p["w1"], dummy, dummy,
                                apply_input_act=False)
    scale1, shift1 = _bn_scale_shift(s1, q1, p["g1"], p["be1"], cnt)

    # Pass B: conv2 + stats, with BN1-affine + ReLU fused onto its input.
    y2, s2, q2 = _conv3x3_stats(y1, p["w2"], scale1, shift1,
                                apply_input_act=True)
    scale2, shift2 = _bn_scale_shift(s2, q2, p["g2"], p["be2"], cnt)

    # Pass C: final BN2-affine + ReLU element-wise apply.
    out = _bn_relu_apply(y2.reshape(N * H * W, Cout), scale2, shift2, jnp.float32)
    return out.reshape(N, H, W, Cout)


def double_conv_forward(params, x_nchw):
    # TODO(synk): BatchNorm running-stat (momentum) buffer updates are a training
    # side effect and are not modeled; they do not affect the forward output.
    x = jnp.transpose(x_nchw, (0, 2, 3, 1))            # NCHW -> NHWC
    y = double_conv(x, params)
    return jnp.transpose(y, (0, 3, 1, 2))              # NHWC -> NCHW


# ------------------------------ parameters ----------------------------------

def init_double_conv_params(key, cin, cout, scale=0.05):
    ks = jax.random.split(key, 8)
    return dict(
        w1=scale * jax.random.normal(ks[0], (3, 3, cin, cout), jnp.float32),
        b1=scale * jax.random.normal(ks[1], (cout,), jnp.float32),   # cancelled by BN
        g1=1.0 + scale * jax.random.normal(ks[2], (cout,), jnp.float32),
        be1=scale * jax.random.normal(ks[3], (cout,), jnp.float32),
        w2=scale * jax.random.normal(ks[4], (3, 3, cout, cout), jnp.float32),
        b2=scale * jax.random.normal(ks[5], (cout,), jnp.float32),   # cancelled by BN
        g2=1.0 + scale * jax.random.normal(ks[6], (cout,), jnp.float32),
        be2=scale * jax.random.normal(ks[7], (cout,), jnp.float32),
    )


# ------------------------------ reference (pure JAX) -------------------------

def _ref_double_conv(params, x_nhwc):
    def conv_bn_relu(x, w, b, g, be):
        y = jax.lax.conv_general_dilated(
            x, w, window_strides=(1, 1), padding="SAME",
            dimension_numbers=("NHWC", "HWIO", "NHWC"),
            precision=jax.lax.Precision.HIGHEST)
        y = y + b
        mean = jnp.mean(y, axis=(0, 1, 2), keepdims=True)
        var = jnp.mean(jnp.square(y - mean), axis=(0, 1, 2), keepdims=True)
        y = (y - mean) * jax.lax.rsqrt(var + _BN_EPS)
        return jnp.maximum(y * g + be, 0.0)

    x = conv_bn_relu(x_nhwc, params["w1"], params["b1"], params["g1"], params["be1"])
    return conv_bn_relu(x, params["w2"], params["b2"], params["g2"], params["be2"])


# ------------------------------ main -----------------------------------------

if __name__ == "__main__":
    key = jax.random.PRNGKey(0)
    kx, kp = jax.random.split(key)
    N, Cin, H, W = 2, 4, 16, 16
    Cout = 32
    x = jax.random.normal(kx, (N, Cin, H, W), jnp.float32)       # NCHW input
    params = init_double_conv_params(kp, Cin, Cout)

    fwd = jax.jit(double_conv_forward)
    out = fwd(params, x)
    out = jax.block_until_ready(out)

    assert out.shape == (N, Cout, H, W), out.shape
    assert bool(jnp.all(jnp.isfinite(out)))
    assert bool(jnp.all(out >= 0.0))                             # ReLU range

    # Numerical check against a pure-JAX f32 reference (bf16 MXU -> loose tol).
    ref = _ref_double_conv(params, jnp.transpose(x, (0, 2, 3, 1)))
    ref = jnp.transpose(ref, (0, 3, 1, 2))
    max_err = float(jnp.max(jnp.abs(out - ref)))
    assert max_err < 0.2, f"max abs err {max_err}"

    print("KERNEL_OK")
</pallas_src>

<mosaic_0001>
module attributes {stable_mosaic.version = 11 : i64} {
  func.func @_bn_relu_kernel(%arg0: i32, %arg1: i32, %arg2: memref<512x32xf32, #tpu.memory_space<vmem>>, %arg3: memref<1x32xf32, #tpu.memory_space<vmem>>, %arg4: memref<1x32xf32, #tpu.memory_space<vmem>>, %arg5: memref<512x32xf32, #tpu.memory_space<vmem>>) attributes {dimension_semantics = [#tpu.dimension_semantics<parallel>, #tpu.dimension_semantics<parallel>], iteration_bounds = array<i64: 1, 1>, scalar_prefetch = 0 : i64, scratch_operands = 0 : i64, tpu.core_type = #tpu.core_type<tc>, window_params = [{transform_indices = @transform_0, window_bounds = array<i64: 512, 32>}, {transform_indices = @transform_1, window_bounds = array<i64: 1, 32>}, {transform_indices = @transform_2, window_bounds = array<i64: 1, 32>}, {transform_indices = @transform_3, window_bounds = array<i64: 512, 32>}]} {
    %c0 = arith.constant 0 : index
    %c0_0 = arith.constant 0 : index
    %0 = vector.load %arg2[%c0, %c0_0] : memref<512x32xf32, #tpu.memory_space<vmem>>, vector<512x32xf32>
    %c0_1 = arith.constant 0 : index
    %c0_2 = arith.constant 0 : index
    %1 = vector.load %arg3[%c0_1, %c0_2] : memref<1x32xf32, #tpu.memory_space<vmem>>, vector<1x32xf32>
    %2 = vector.broadcast %1 : vector<1x32xf32> to vector<512x32xf32>
    %3 = arith.mulf %0, %2 : vector<512x32xf32>
    %c0_3 = arith.constant 0 : index
    %c0_4 = arith.constant 0 : index
    %4 = vector.load %arg4[%c0_3, %c0_4] : memref<1x32xf32, #tpu.memory_space<vmem>>, vector<1x32xf32>
    %5 = vector.broadcast %4 : vector<1x32xf32> to vector<512x32xf32>
    %6 = arith.addf %3, %5 : vector<512x32xf32>
    %cst = arith.constant 0.000000e+00 : f32
    %7 = vector.broadcast %cst : f32 to vector<512x32xf32>
    %8 = arith.maximumf %6, %7 : vector<512x32xf32>
    %c0_5 = arith.constant 0 : index
    %c0_6 = arith.constant 0 : index
    %9 = vector.load %arg5[%c0_5, %c0_6] : memref<512x32xf32, #tpu.memory_space<vmem>>, vector<512x32xf32>
    tpu.vector_store %arg5[%c0_5, %c0_6], %8 {strides = array<i32>} : memref<512x32xf32, #tpu.memory_space<vmem>>, vector<512x32xf32>,
    return
  }
  func.func @transform_0(%arg0: i32, %arg1: i32) -> (i32, i32) {
    %c0_i32 = arith.constant 0 : i32
    return %arg0, %arg1 : i32, i32
  }
  func.func @transform_1(%arg0: i32, %arg1: i32) -> (i32, i32) {
    %c0_i32 = arith.constant 0 : i32
    %c0_i32_0 = arith.constant 0 : i32
    return %c0_i32, %arg1 : i32, i32
  }
  func.func @transform_2(%arg0: i32, %arg1: i32) -> (i32, i32) {
    %c0_i32 = arith.constant 0 : i32
    %c0_i32_0 = arith.constant 0 : i32
    return %c0_i32, %arg1 : i32, i32
  }
  func.func @transform_3(%arg0: i32, %arg1: i32) -> (i32, i32) {
    %c0_i32 = arith.constant 0 : i32
    return %arg0, %arg1 : i32, i32
  }
}

module attributes {stable_mosaic.version = 11 : i64} {
  func.func @kernel(%arg0: i32, %arg1: i32, %arg2: memref<2x8x16x4xf32, #tpu.memory_space<vmem>>, %arg3: memref<2x1x16x4xf32, #tpu.memory_space<vmem>>, %arg4: memref<2x1x16x4xf32, #tpu.memory_space<vmem>>, %arg5: memref<1x4xf32, #tpu.memory_space<vmem>>, %arg6: memref<1x4xf32, #tpu.memory_space<vmem>>, %arg7: memref<3x12x32xbf16, #tpu.memory_space<vmem>>, %arg8: memref<2x8x16x32xf32, #tpu.memory_space<vmem>>, %arg9: memref<1x32xf32, #tpu.memory_space<vmem>>, %arg10: memref<1x32xf32, #tpu.memory_space<vmem>>) attributes {dimension_semantics = [#tpu.dimension_semantics<parallel>, #tpu.dimension_semantics<arbitrary>], iteration_bounds = array<i64: 1, 2>, scalar_prefetch = 0 : i64, scratch_operands = 0 : i64, tpu.core_type = #tpu.core_type<tc>, window_params = [{transform_indices = @transform_0, window_bounds = array<i64: 2, 8, 16, 4>}, {transform_indices = @transform_1, window_bounds = array<i64: 2, 1, 16, 4>}, {transform_indices = @transform_2, window_bounds = array<i64: 2, 1, 16, 4>}, {pipeline_mode = #tpu.pipeline_mode<synchronous>, transform_indices = @transform_3, window_bounds = array<i64: 1, 4>}, {pipeline_mode = #tpu.pipeline_mode<synchronous>, transform_indices = @transform_4, window_bounds = array<i64: 1, 4>}, {transform_indices = @transform_5, window_bounds = array<i64: 3, 12, 32>}, {transform_indices = @transform_6, window_bounds = array<i64: 2, 8, 16, 32>}, {transform_indices = @transform_7, window_bounds = array<i64: 1, 32>}, {transform_indices = @transform_8, window_bounds = array<i64: 1, 32>}]} {
    %c0 = arith.constant 0 : index
    %c0_0 = arith.constant 0 : index
    %c0_1 = arith.constant 0 : index
    %c0_2 = arith.constant 0 : index
    %0 = vector.load %arg2[%c0, %c0_0, %c0_1, %c0_2] : memref<2x8x16x4xf32, #tpu.memory_space<vmem>>, vector<2x8x16x4xf32>
    %1 = arith.truncf %0 : vector<2x8x16x4xf32> to vector<2x8x16x4xbf16>
    %c0_3 = arith.constant 0 : index
    %c0_4 = arith.constant 0 : index
    %c0_5 = arith.constant 0 : index
    %c0_6 = arith.constant 0 : index
    %2 = vector.load %arg3[%c0_3, %c0_4, %c0_5, %c0_6] : memref<2x1x16x4xf32, #tpu.memory_space<vmem>>, vector<2x1x16x4xf32>
    %3 = arith.truncf %2 : vector<2x1x16x4xf32> to vector<2x1x16x4xbf16>
    %c0_i32 = arith.constant 0 : i32
    %4 = arith.cmpi sgt, %arg1, %c0_i32 : i32
    %5 = arith.extui %4 : i1 to i32
    %6 = arith.sitofp %5 : i32 to f32
    %7 = arith.truncf %6 : f32 to bf16
    %8 = vector.broadcast %7 : bf16 to vector<2x1x16x4xbf16>
    %9 = arith.mulf %3, %8 : vector<2x1x16x4xbf16>
    %c0_7 = arith.constant 0 : index
    %c0_8 = arith.constant 0 : index
    %c0_9 = arith.constant 0 : index
    %c0_10 = arith.constant 0 : index
    %10 = vector.load %arg4[%c0_7, %c0_8, %c0_9, %c0_10] : memref<2x1x16x4xf32, #tpu.memory_space<vmem>>, vector<2x1x16x4xf32>
    %11 = arith.truncf %10 : vector<2x1x16x4xf32> to vector<2x1x16x4xbf16>
    %c1_i32 = arith.constant 1 : i32
    %12 = arith.cmpi slt, %arg1, %c1_i32 : i32
    %13 = arith.extui %12 : i1 to i32
    %14 = arith.sitofp %13 : i32 to f32
    %15 = arith.truncf %14 : f32 to bf16
    %16 = vector.broadcast %15 : bf16 to vector<2x1x16x4xbf16>
    %17 = arith.mulf %11, %16 : vector<2x1x16x4xbf16>
    %18 = tpu.concatenate %9, %1, %17 in 1 : vector<2x1x16x4xbf16>, vector<2x8x16x4xbf16>, vector<2x1x16x4xbf16> -> vector<2x10x16x4xbf16>
    %cst = arith.constant 0.000000e+00 : bf16
    %19 = vector.broadcast %cst : bf16 to vector<2x10x1x4xbf16>
    %20 = tpu.concatenate %19, %18, %19 in 2 : vector<2x10x1x4xbf16>, vector<2x10x16x4xbf16>, vector<2x10x1x4xbf16> -> vector<2x10x18x4xbf16>
    %21 = vector.extract_strided_slice %20 {offsets = [0, 0, 0, 0], sizes = [2, 10, 16, 4], strides = [1, 1, 1, 1]} : vector<2x10x18x4xbf16> to vector<2x10x16x4xbf16>
    %22 = vector.extract_strided_slice %20 {offsets = [0, 0, 1, 0], sizes = [2, 10, 16, 4], strides = [1, 1, 1, 1]} : vector<2x10x18x4xbf16> to vector<2x10x16x4xbf16>
    %23 = vector.extract_strided_slice %20 {offsets = [0, 0, 2, 0], sizes = [2, 10, 16, 4], strides = [1, 1, 1, 1]} : vector<2x10x18x4xbf16> to vector<2x10x16x4xbf16>
    %24 = tpu.concatenate %21, %22, %23 in 3 : vector<2x10x16x4xbf16>, vector<2x10x16x4xbf16>, vector<2x10x16x4xbf16> -> vector<2x10x16x12xbf16>
    %cst_11 = arith.constant 0.000000e+00 : f32
    %25 = vector.broadcast %cst_11 : f32 to vector<256x32xf32>
    %26 = vector.extract_strided_slice %24 {offsets = [0, 0, 0, 0], sizes = [2, 8, 16, 12], strides = [1, 1, 1, 1]} : vector<2x10x16x12xbf16> to vector<2x8x16x12xbf16>
    %27 = vector.shape_cast %26 : vector<2x8x16x12xbf16> to vector<256x12xbf16>
    %c0_12 = arith.constant 0 : index
    %c0_13 = arith.constant 0 : index
    %c0_14 = arith.constant 0 : index
    %28 = vector.load %arg7[%c0_12, %c0_13, %c0_14] : memref<3x12x32xbf16, #tpu.memory_space<vmem>>, vector<1x12x32xbf16>
    %29 = vector.shape_cast %28 : vector<1x12x32xbf16> to vector<12x32xbf16>
    %cst_15 = arith.constant dense<0.000000e+00> : vector<256x32xf32>
    %30 = tpu.matmul %27, %29, %cst_15 {dimension_numbers = #tpu.dot_dimension_numbers<[1], [0], [0], [1], [0, 0, 1, 1], [], []>} : vector<256x12xbf16>, vector<12x32xbf16>, vector<256x32xf32> -> vector<256x32xf32>
    %31 = arith.addf %25, %30 : vector<256x32xf32>
    %32 = vector.extract_strided_slice %24 {offsets = [0, 1, 0, 0], sizes = [2, 8, 16, 12], strides = [1, 1, 1, 1]} : vector<2x10x16x12xbf16> to vector<2x8x16x12xbf16>
    %33 = vector.shape_cast %32 : vector<2x8x16x12xbf16> to vector<256x12xbf16>
    %c1 = arith.constant 1 : index
    %c0_16 = arith.constant 0 : index
    %c0_17 = arith.constant 0 : index
    %34 = vector.load %arg7[%c1, %c0_16, %c0_17] : memref<3x12x32xbf16, #tpu.memory_space<vmem>>, vector<1x12x32xbf16>
    %35 = vector.shape_cast %34 : vector<1x12x32xbf16> to vector<12x32xbf16>
    %cst_18 = arith.constant dense<0.000000e+00> : vector<256x32xf32>
    %36 = tpu.matmul %33, %35, %cst_18 {dimension_numbers = #tpu.dot_dimension_numbers<[1], [0], [0], [1], [0, 0, 1, 1], [], []>} : vector<256x12xbf16>, vector<12x32xbf16>, vector<256x32xf32> -> vector<256x32xf32>
    %37 = arith.addf %31, %36 : vector<256x32xf32>
    %38 = vector.extract_strided_slice %24 {offsets = [0, 2, 0, 0], sizes = [2, 8, 16, 12], strides = [1, 1, 1, 1]} : vector<2x10x16x12xbf16> to vector<2x8x16x12xbf16>
    %39 = vector.shape_cast %38 : vector<2x8x16x12xbf16> to vector<256x12xbf16>
    %c2 = arith.constant 2 : index
    %c0_19 = arith.constant 0 : index
    %c0_20 = arith.constant 0 : index
    %40 = vector.load %arg7[%c2, %c0_19, %c0_20] : memref<3x12x32xbf16, #tpu.memory_space<vmem>>, vector<1x12x32xbf16>
    %41 = vector.shape_cast %40 : vector<1x12x32xbf16> to vector<12x32xbf16>
    %cst_21 = arith.constant dense<0.000000e+00> : vector<256x32xf32>
    %42 = tpu.matmul %39, %41, %cst_21 {dimension_numbers = #tpu.dot_dimension_numbers<[1], [0], [0], [1], [0, 0, 1, 1], [], []>} : vector<256x12xbf16>, vector<12x32xbf16>, vector<256x32xf32> -> vector<256x32xf32>
    %43 = arith.addf %37, %42 : vector<256x32xf32>
    %44 = vector.shape_cast %43 : vector<256x32xf32> to vector<2x8x16x32xf32>
    %c0_22 = arith.constant 0 : index
    %c0_23 = arith.constant 0 : index
    %c0_24 = arith.constant 0 : index
    %c0_25 = arith.constant 0 : index
    %45 = vector.load %arg8[%c0_22, %c0_23, %c0_24, %c0_25] : memref<2x8x16x32xf32, #tpu.memory_space<vmem>>, vector<2x8x16x32xf32>
    tpu.vector_store %arg8[%c0_22, %c0_23, %c0_24, %c0_25], %44 {strides = array<i32>} : memref<2x8x16x32xf32, #tpu.memory_space<vmem>>, vector<2x8x16x32xf32>,
    %c0_i32_26 = arith.constant 0 : i32
    %46 = arith.cmpi eq, %arg1, %c0_i32_26 : i32
    %47 = arith.extui %46 : i1 to i32
    %c0_i32_27 = arith.constant 0 : i32
    %48 = arith.cmpi ne, %47, %c0_i32_27 : i32
    scf.if %48 {
      %cst_38 = arith.constant 0.000000e+00 : f32
      %60 = vector.broadcast %cst_38 : f32 to vector<1x32xf32>
      %c0_39 = arith.constant 0 : index
      %c0_40 = arith.constant 0 : index
      %61 = vector.load %arg9[%c0_39, %c0_40] : memref<1x32xf32, #tpu.memory_space<vmem>>, vector<1x32xf32>
      tpu.vector_store %arg9[%c0_39, %c0_40], %60 {strides = array<i32>} : memref<1x32xf32, #tpu.memory_space<vmem>>, vector<1x32xf32>,
      %cst_41 = arith.constant 0.000000e+00 : f32
      %62 = vector.broadcast %cst_41 : f32 to vector<1x32xf32>
      %c0_42 = arith.constant 0 : index
      %c0_43 = arith.constant 0 : index
      %63 = vector.load %arg10[%c0_42, %c0_43] : memref<1x32xf32, #tpu.memory_space<vmem>>, vector<1x32xf32>
      tpu.vector_store %arg10[%c0_42, %c0_43], %62 {strides = array<i32>} : memref<1x32xf32, #tpu.memory_space<vmem>>, vector<1x32xf32>,
    } else {
    }
    %c0_28 = arith.constant 0 : index
    %c0_29 = arith.constant 0 : index
    %49 = vector.load %arg9[%c0_28, %c0_29] : memref<1x32xf32, #tpu.memory_space<vmem>>, vector<1x32xf32>
    %cst_30 = arith.constant dense<0.000000e+00> : vector<32xf32>
    %50 = vector.multi_reduction <add>, %43, %cst_30 [0] : vector<256x32xf32> to vector<32xf32>
    %51 = vector.shape_cast %50 : vector<32xf32> to vector<1x32xf32>
    %52 = arith.addf %49, %51 : vector<1x32xf32>
    %c0_31 = arith.constant 0 : index
    %c0_32 = arith.constant 0 : index
    %53 = vector.load %arg9[%c0_31, %c0_32] : memref<1x32xf32, #tpu.memory_space<vmem>>, vector<1x32xf32>
    tpu.vector_store %arg9[%c0_31, %c0_32], %52 {strides = array<i32>} : memref<1x32xf32, #tpu.memory_space<vmem>>, vector<1x32xf32>,
    %c0_33 = arith.constant 0 : index
    %c0_34 = arith.constant 0 : index
    %54 = vector.load %arg10[%c0_33, %c0_34] : memref<1x32xf32, #tpu.memory_space<vmem>>, vector<1x32xf32>
    %55 = arith.mulf %43, %43 : vector<256x32xf32>
    %cst_35 = arith.constant dense<0.000000e+00> : vector<32xf32>
    %56 = vector.multi_reduction <add>, %55, %cst_35 [0] : vector<256x32xf32> to vector<32xf32>
    %57 = vector.shape_cast %56 : vector<32xf32> to vector<1x32xf32>
    %58 = arith.addf %54, %57 : vector<1x32xf32>
    %c0_36 = arith.constant 0 : index
    %c0_37 = arith.constant 0 : index
    %59 = vector.load %arg10[%c0_36, %c0_37] : memref<1x32xf32, #tpu.memory_space<vmem>>, vector<1x32xf32>
    tpu.vector_store %arg10[%c0_36, %c0_37], %58 {strides = array<i32>} : memref<1x32xf32, #tpu.memory_space<vmem>>, vector<1x32xf32>,
    return
  }
  func.func @transform_0(%arg0: i32, %arg1: i32) -> (i32, i32, i32, i32) {
    %c0_i32 = arith.constant 0 : i32
    %c0_i32_0 = arith.constant 0 : i32
    %c0_i32_1 = arith.constant 0 : i32
    %c0_i32_2 = arith.constant 0 : i32
    return %c0_i32, %arg1, %c0_i32_0, %c0_i32_1 : i32, i32, i32, i32
  }
  func.func @transform_1(%arg0: i32, %arg1: i32) -> (i32, i32, i32, i32) {
    %c8_i32 = arith.constant 8 : i32
    %0 = arith.muli %arg1, %c8_i32 : i32
    %c1_i32 = arith.constant 1 : i32
    %1 = arith.subi %0, %c1_i32 : i32
    %c0_i32 = arith.constant 0 : i32
    %2 = arith.maxsi %1, %c0_i32 : i32
    %c0_i32_0 = arith.constant 0 : i32
    %c0_i32_1 = arith.constant 0 : i32
    %c0_i32_2 = arith.constant 0 : i32
    %c0_i32_3 = arith.constant 0 : i32
    return %c0_i32_0, %2, %c0_i32_1, %c0_i32_2 : i32, i32, i32, i32
  }
  func.func @transform_2(%arg0: i32, %arg1: i32) -> (i32, i32, i32, i32) {
    %c1_i32 = arith.constant 1 : i32
    %0 = arith.addi %arg1, %c1_i32 : i32
    %c8_i32 = arith.constant 8 : i32
    %1 = arith.muli %0, %c8_i32 : i32
    %c15_i32 = arith.constant 15 : i32
    %2 = arith.minsi %1, %c15_i32 : i32
    %c0_i32 = arith.constant 0 : i32
    %c0_i32_0 = arith.constant 0 : i32
    %c0_i32_1 = arith.constant 0 : i32
    %c0_i32_2 = arith.constant 0 : i32
    return %c0_i32, %2, %c0_i32_0, %c0_i32_1 : i32, i32, i32, i32
  }
  func.func @transform_3(%arg0: i32, %arg1: i32) -> (i32, i32) {
    %c0_i32 = arith.constant 0 : i32
    %c0_i32_0 = arith.constant 0 : i32
    %c0_i32_1 = arith.constant 0 : i32
    return %c0_i32, %c0_i32_0 : i32, i32
  }
  func.func @transform_4(%arg0: i32, %arg1: i32) -> (i32, i32) {
    %c0_i32 = arith.constant 0 : i32
    %c0_i32_0 = arith.constant 0 : i32
    %c0_i32_1 = arith.constant 0 : i32
    return %c0_i32, %c0_i32_0 : i32, i32
  }
  func.func @transform_5(%arg0: i32, %arg1: i32) -> (i32, i32, i32) {
    %c0_i32 = arith.constant 0 : i32
    %c0_i32_0 = arith.constant 0 : i32
    %c0_i32_1 = arith.constant 0 : i32
    return %c0_i32, %c0_i32_0, %arg0 : i32, i32, i32
  }
  func.func @transform_6(%arg0: i32, %arg1: i32) -> (i32, i32, i32, i32) {
    %c0_i32 = arith.constant 0 : i32
    %c0_i32_0 = arith.constant 0 : i32
    %c0_i32_1 = arith.constant 0 : i32
    return %c0_i32, %arg1, %c0_i32_0, %arg0 : i32, i32, i32, i32
  }
  func.func @transform_7(%arg0: i32, %arg1: i32) -> (i32, i32) {
    %c0_i32 = arith.constant 0 : i32
    %c0_i32_0 = arith.constant 0 : i32
    return %c0_i32, %arg0 : i32, i32
  }
  func.func @transform_8(%arg0: i32, %arg1: i32) -> (i32, i32) {
    %c0_i32 = arith.constant 0 : i32
    %c0_i32_0 = arith.constant 0 : i32
    return %c0_i32, %arg0 : i32, i32
  }
}

module attributes {stable_mosaic.version = 11 : i64} {
  func.func @kernel(%arg0: i32, %arg1: i32, %arg2: memref<2x8x16x32xf32, #tpu.memory_space<vmem>>, %arg3: memref<2x1x16x32xf32, #tpu.memory_space<vmem>>, %arg4: memref<2x1x16x32xf32, #tpu.memory_space<vmem>>, %arg5: memref<1x32xf32, #tpu.memory_space<vmem>>, %arg6: memref<1x32xf32, #tpu.memory_space<vmem>>, %arg7: memref<3x96x32xbf16, #tpu.memory_space<vmem>>, %arg8: memref<2x8x16x32xf32, #tpu.memory_space<vmem>>, %arg9: memref<1x32xf32, #tpu.memory_space<vmem>>, %arg10: memref<1x32xf32, #tpu.memory_space<vmem>>) attributes {dimension_semantics = [#tpu.dimension_semantics<parallel>, #tpu.dimension_semantics<arbitrary>], iteration_bounds = array<i64: 1, 2>, scalar_prefetch = 0 : i64, scratch_operands = 0 : i64, tpu.core_type = #tpu.core_type<tc>, window_params = [{transform_indices = @transform_0, window_bounds = array<i64: 2, 8, 16, 32>}, {transform_indices = @transform_1, window_bounds = array<i64: 2, 1, 16, 32>}, {transform_indices = @transform_2, window_bounds = array<i64: 2, 1, 16, 32>}, {pipeline_mode = #tpu.pipeline_mode<synchronous>, transform_indices = @transform_3, window_bounds = array<i64: 1, 32>}, {pipeline_mode = #tpu.pipeline_mode<synchronous>, transform_indices = @transform_4, window_bounds = array<i64: 1, 32>}, {transform_indices = @transform_5, window_bounds = array<i64: 3, 96, 32>}, {transform_indices = @transform_6, window_bounds = array<i64: 2, 8, 16, 32>}, {transform_indices = @transform_7, window_bounds = array<i64: 1, 32>}, {transform_indices = @transform_8, window_bounds = array<i64: 1, 32>}]} {
    %c0 = arith.constant 0 : index
    %c0_0 = arith.constant 0 : index
    %c0_1 = arith.constant 0 : index
    %c0_2 = arith.constant 0 : index
    %0 = vector.load %arg2[%c0, %c0_0, %c0_1, %c0_2] : memref<2x8x16x32xf32, #tpu.memory_space<vmem>>, vector<2x8x16x32xf32>
    %c0_3 = arith.constant 0 : index
    %c0_4 = arith.constant 0 : index
    %1 = vector.load %arg5[%c0_3, %c0_4] : memref<1x32xf32, #tpu.memory_space<vmem>>, vector<1x32xf32>
    %2 = vector.shape_cast %1 : vector<1x32xf32> to vector<1x1x1x32xf32>
    %3 = vector.broadcast %2 : vector<1x1x1x32xf32> to vector<2x8x16x32xf32>
    %4 = arith.mulf %0, %3 : vector<2x8x16x32xf32>
    %c0_5 = arith.constant 0 : index
    %c0_6 = arith.constant 0 : index
    %5 = vector.load %arg6[%c0_5, %c0_6] : memref<1x32xf32, #tpu.memory_space<vmem>>, vector<1x32xf32>
    %6 = vector.shape_cast %5 : vector<1x32xf32> to vector<1x1x1x32xf32>
    %7 = vector.broadcast %6 : vector<1x1x1x32xf32> to vector<2x8x16x32xf32>
    %8 = arith.addf %4, %7 : vector<2x8x16x32xf32>
    %cst = arith.constant 0.000000e+00 : f32
    %9 = vector.broadcast %cst : f32 to vector<2x8x16x32xf32>
    %10 = arith.maximumf %8, %9 : vector<2x8x16x32xf32>
    %11 = arith.truncf %10 : vector<2x8x16x32xf32> to vector<2x8x16x32xbf16>
    %c0_7 = arith.constant 0 : index
    %c0_8 = arith.constant 0 : index
    %c0_9 = arith.constant 0 : index
    %c0_10 = arith.constant 0 : index
    %12 = vector.load %arg3[%c0_7, %c0_8, %c0_9, %c0_10] : memref<2x1x16x32xf32, #tpu.memory_space<vmem>>, vector<2x1x16x32xf32>
    %c0_11 = arith.constant 0 : index
    %c0_12 = arith.constant 0 : index
    %13 = vector.load %arg5[%c0_11, %c0_12] : memref<1x32xf32, #tpu.memory_space<vmem>>, vector<1x32xf32>
    %14 = vector.shape_cast %13 : vector<1x32xf32> to vector<1x1x1x32xf32>
    %15 = vector.broadcast %14 : vector<1x1x1x32xf32> to vector<2x1x16x32xf32>
    %16 = arith.mulf %12, %15 : vector<2x1x16x32xf32>
    %c0_13 = arith.constant 0 : index
    %c0_14 = arith.constant 0 : index
    %17 = vector.load %arg6[%c0_13, %c0_14] : memref<1x32xf32, #tpu.memory_space<vmem>>, vector<1x32xf32>
    %18 = vector.shape_cast %17 : vector<1x32xf32> to vector<1x1x1x32xf32>
    %19 = vector.broadcast %18 : vector<1x1x1x32xf32> to vector<2x1x16x32xf32>
    %20 = arith.addf %16, %19 : vector<2x1x16x32xf32>
    %cst_15 = arith.constant 0.000000e+00 : f32
    %21 = vector.broadcast %cst_15 : f32 to vector<2x1x16x32xf32>
    %22 = arith.maximumf %20, %21 : vector<2x1x16x32xf32>
    %23 = arith.truncf %22 : vector<2x1x16x32xf32> to vector<2x1x16x32xbf16>
    %c0_i32 = arith.constant 0 : i32
    %24 = arith.cmpi sgt, %arg1, %c0_i32 : i32
    %25 = arith.extui %24 : i1 to i32
    %26 = arith.sitofp %25 : i32 to f32
    %27 = arith.truncf %26 : f32 to bf16
    %28 = vector.broadcast %27 : bf16 to vector<2x1x16x32xbf16>
    %29 = arith.mulf %23, %28 : vector<2x1x16x32xbf16>
    %c0_16 = arith.constant 0 : index
    %c0_17 = arith.constant 0 : index
    %c0_18 = arith.constant 0 : index
    %c0_19 = arith.constant 0 : index
    %30 = vector.load %arg4[%c0_16, %c0_17, %c0_18, %c0_19] : memref<2x1x16x32xf32, #tpu.memory_space<vmem>>, vector<2x1x16x32xf32>
    %c0_20 = arith.constant 0 : index
    %c0_21 = arith.constant 0 : index
    %31 = vector.load %arg5[%c0_20, %c0_21] : memref<1x32xf32, #tpu.memory_space<vmem>>, vector<1x32xf32>
    %32 = vector.shape_cast %31 : vector<1x32xf32> to vector<1x1x1x32xf32>
    %33 = vector.broadcast %32 : vector<1x1x1x32xf32> to vector<2x1x16x32xf32>
    %34 = arith.mulf %30, %33 : vector<2x1x16x32xf32>
    %c0_22 = arith.constant 0 : index
    %c0_23 = arith.constant 0 : index
    %35 = vector.load %arg6[%c0_22, %c0_23] : memref<1x32xf32, #tpu.memory_space<vmem>>, vector<1x32xf32>
    %36 = vector.shape_cast %35 : vector<1x32xf32> to vector<1x1x1x32xf32>
    %37 = vector.broadcast %36 : vector<1x1x1x32xf32> to vector<2x1x16x32xf32>
    %38 = arith.addf %34, %37 : vector<2x1x16x32xf32>
    %cst_24 = arith.constant 0.000000e+00 : f32
    %39 = vector.broadcast %cst_24 : f32 to vector<2x1x16x32xf32>
    %40 = arith.maximumf %38, %39 : vector<2x1x16x32xf32>
    %41 = arith.truncf %40 : vector<2x1x16x32xf32> to vector<2x1x16x32xbf16>
    %c1_i32 = arith.constant 1 : i32
    %42 = arith.cmpi slt, %arg1, %c1_i32 : i32
    %43 = arith.extui %42 : i1 to i32
    %44 = arith.sitofp %43 : i32 to f32
    %45 = arith.truncf %44 : f32 to bf16
    %46 = vector.broadcast %45 : bf16 to vector<2x1x16x32xbf16>
    %47 = arith.mulf %41, %46 : vector<2x1x16x32xbf16>
    %48 = tpu.concatenate %29, %11, %47 in 1 : vector<2x1x16x32xbf16>, vector<2x8x16x32xbf16>, vector<2x1x16x32xbf16> -> vector<2x10x16x32xbf16>
    %cst_25 = arith.constant 0.000000e+00 : bf16
    %49 = vector.broadcast %cst_25 : bf16 to vector<2x10x1x32xbf16>
    %50 = tpu.concatenate %49, %48, %49 in 2 : vector<2x10x1x32xbf16>, vector<2x10x16x32xbf16>, vector<2x10x1x32xbf16> -> vector<2x10x18x32xbf16>
    %51 = vector.extract_strided_slice %50 {offsets = [0, 0, 0, 0], sizes = [2, 10, 16, 32], strides = [1, 1, 1, 1]} : vector<2x10x18x32xbf16> to vector<2x10x16x32xbf16>
    %52 = vector.extract_strided_slice %50 {offsets = [0, 0, 1, 0], sizes = [2, 10, 16, 32], strides = [1, 1, 1, 1]} : vector<2x10x18x32xbf16> to vector<2x10x16x32xbf16>
    %53 = vector.extract_strided_slice %50 {offsets = [0, 0, 2, 0], sizes = [2, 10, 16, 32], strides = [1, 1, 1, 1]} : vector<2x10x18x32xbf16> to vector<2x10x16x32xbf16>
    %54 = tpu.concatenate %51, %52, %53 in 3 : vector<2x10x16x32xbf16>, vector<2x10x16x32xbf16>, vector<2x10x16x32xbf16> -> vector<2x10x16x96xbf16>
    %cst_26 = arith.constant 0.000000e+00 : f32
    %55 = vector.broadcast %cst_26 : f32 to vector<256x32xf32>
    %56 = vector.extract_strided_slice %54 {offsets = [0, 0, 0, 0], sizes = [2, 8, 16, 96], strides = [1, 1, 1, 1]} : vector<2x10x16x96xbf16> to vector<2x8x16x96xbf16>
    %57 = vector.shape_cast %56 : vector<2x8x16x96xbf16> to vector<256x96xbf16>
    %c0_27 = arith.constant 0 : index
    %c0_28 = arith.constant 0 : index
    %c0_29 = arith.constant 0 : index
    %58 = vector.load %arg7[%c0_27, %c0_28, %c0_29] : memref<3x96x32xbf16, #tpu.memory_space<vmem>>, vector<1x96x32xbf16>
    %59 = vector.shape_cast %58 : vector<1x96x32xbf16> to vector<96x32xbf16>
    %cst_30 = arith.constant dense<0.000000e+00> : vector<256x32xf32>
    %60 = tpu.matmul %57, %59, %cst_30 {dimension_numbers = #tpu.dot_dimension_numbers<[1], [0], [0], [1], [0, 0, 1, 1], [], []>} : vector<256x96xbf16>, vector<96x32xbf16>, vector<256x32xf32> -> vector<256x32xf32>
    %61 = arith.addf %55, %60 : vector<256x32xf32>
    %62 = vector.extract_strided_slice %54 {offsets = [0, 1, 0, 0], sizes = [2, 8, 16, 96], strides = [1, 1, 1, 1]} : vector<2x10x16x96xbf16> to vector<2x8x16x96xbf16>
    %63 = vector.shape_cast %62 : vector<2x8x16x96xbf16> to vector<256x96xbf16>
    %c1 = arith.constant 1 : index
    %c0_31 = arith.constant 0 : index
    %c0_32 = arith.constant 0 : index
    %64 = vector.load %arg7[%c1, %c0_31, %c0_32] : memref<3x96x32xbf16, #tpu.memory_space<vmem>>, vector<1x96x32xbf16>
    %65 = vector.shape_cast %64 : vector<1x96x32xbf16> to vector<96x32xbf16>
    %cst_33 = arith.constant dense<0.000000e+00> : vector<256x32xf32>
    %66 = tpu.matmul %63, %65, %cst_33 {dimension_numbers = #tpu.dot_dimension_numbers<[1], [0], [0], [1], [0, 0, 1, 1], [], []>} : vector<256x96xbf16>, vector<96x32xbf16>, vector<256x32xf32> -> vector<256x32xf32>
    %67 = arith.addf %61, %66 : vector<256x32xf32>
    %68 = vector.extract_strided_slice %54 {offsets = [0, 2, 0, 0], sizes = [2, 8, 16, 96], strides = [1, 1, 1, 1]} : vector<2x10x16x96xbf16> to vector<2x8x16x96xbf16>
    %69 = vector.shape_cast %68 : vector<2x8x16x96xbf16> to vector<256x96xbf16>
    %c2 = arith.constant 2 : index
    %c0_34 = arith.constant 0 : index
    %c0_35 = arith.constant 0 : index
    %70 = vector.load %arg7[%c2, %c0_34, %c0_35] : memref<3x96x32xbf16, #tpu.memory_space<vmem>>, vector<1x96x32xbf16>
    %71 = vector.shape_cast %70 : vector<1x96x32xbf16> to vector<96x32xbf16>
    %cst_36 = arith.constant dense<0.000000e+00> : vector<256x32xf32>
    %72 = tpu.matmul %69, %71, %cst_36 {dimension_numbers = #tpu.dot_dimension_numbers<[1], [0], [0], [1], [0, 0, 1, 1], [], []>} : vector<256x96xbf16>, vector<96x32xbf16>, vector<256x32xf32> -> vector<256x32xf32>
    %73 = arith.addf %67, %72 : vector<256x32xf32>
    %74 = vector.shape_cast %73 : vector<256x32xf32> to vector<2x8x16x32xf32>
    %c0_37 = arith.constant 0 : index
    %c0_38 = arith.constant 0 : index
    %c0_39 = arith.constant 0 : index
    %c0_40 = arith.constant 0 : index
    %75 = vector.load %arg8[%c0_37, %c0_38, %c0_39, %c0_40] : memref<2x8x16x32xf32, #tpu.memory_space<vmem>>, vector<2x8x16x32xf32>
    tpu.vector_store %arg8[%c0_37, %c0_38, %c0_39, %c0_40], %74 {strides = array<i32>} : memref<2x8x16x32xf32, #tpu.memory_space<vmem>>, vector<2x8x16x32xf32>,
    %c0_i32_41 = arith.constant 0 : i32
    %76 = arith.cmpi eq, %arg1, %c0_i32_41 : i32
    %77 = arith.extui %76 : i1 to i32
    %c0_i32_42 = arith.constant 0 : i32
    %78 = arith.cmpi ne, %77, %c0_i32_42 : i32
    scf.if %78 {
      %cst_53 = arith.constant 0.000000e+00 : f32
      %90 = vector.broadcast %cst_53 : f32 to vector<1x32xf32>
      %c0_54 = arith.constant 0 : index
      %c0_55 = arith.constant 0 : index
      %91 = vector.load %arg9[%c0_54, %c0_55] : memref<1x32xf32, #tpu.memory_space<vmem>>, vector<1x32xf32>
      tpu.vector_store %arg9[%c0_54, %c0_55], %90 {strides = array<i32>} : memref<1x32xf32, #tpu.memory_space<vmem>>, vector<1x32xf32>,
      %cst_56 = arith.constant 0.000000e+00 : f32
      %92 = vector.broadcast %cst_56 : f32 to vector<1x32xf32>
      %c0_57 = arith.constant 0 : index
      %c0_58 = arith.constant 0 : index
      %93 = vector.load %arg10[%c0_57, %c0_58] : memref<1x32xf32, #tpu.memory_space<vmem>>, vector<1x32xf32>
      tpu.vector_store %arg10[%c0_57, %c0_58], %92 {strides = array<i32>} : memref<1x32xf32, #tpu.memory_space<vmem>>, vector<1x32xf32>,
    } else {
    }
    %c0_43 = arith.constant 0 : index
    %c0_44 = arith.constant 0 : index
    %79 = vector.load %arg9[%c0_43, %c0_44] : memref<1x32xf32, #tpu.memory_space<vmem>>, vector<1x32xf32>
    %cst_45 = arith.constant dense<0.000000e+00> : vector<32xf32>
    %80 = vector.multi_reduction <add>, %73, %cst_45 [0] : vector<256x32xf32> to vector<32xf32>
    %81 = vector.shape_cast %80 : vector<32xf32> to vector<1x32xf32>
    %82 = arith.addf %79, %81 : vector<1x32xf32>
    %c0_46 = arith.constant 0 : index
    %c0_47 = arith.constant 0 : index
    %83 = vector.load %arg9[%c0_46, %c0_47] : memref<1x32xf32, #tpu.memory_space<vmem>>, vector<1x32xf32>
    tpu.vector_store %arg9[%c0_46, %c0_47], %82 {strides = array<i32>} : memref<1x32xf32, #tpu.memory_space<vmem>>, vector<1x32xf32>,
    %c0_48 = arith.constant 0 : index
    %c0_49 = arith.constant 0 : index
    %84 = vector.load %arg10[%c0_48, %c0_49] : memref<1x32xf32, #tpu.memory_space<vmem>>, vector<1x32xf32>
    %85 = arith.mulf %73, %73 : vector<256x32xf32>
    %cst_50 = arith.constant dense<0.000000e+00> : vector<32xf32>
    %86 = vector.multi_reduction <add>, %85, %cst_50 [0] : vector<256x32xf32> to vector<32xf32>
    %87 = vector.shape_cast %86 : vector<32xf32> to vector<1x32xf32>
    %88 = arith.addf %84, %87 : vector<1x32xf32>
    %c0_51 = arith.constant 0 : index
    %c0_52 = arith.constant 0 : index
    %89 = vector.load %arg10[%c0_51, %c0_52] : memref<1x32xf32, #tpu.memory_space<vmem>>, vector<1x32xf32>
    tpu.vector_store %arg10[%c0_51, %c0_52], %88 {strides = array<i32>} : memref<1x32xf32, #tpu.memory_space<vmem>>, vector<1x32xf32>,
    return
  }
  func.func @transform_0(%arg0: i32, %arg1: i32) -> (i32, i32, i32, i32) {
    %c0_i32 = arith.constant 0 : i32
    %c0_i32_0 = arith.constant 0 : i32
    %c0_i32_1 = arith.constant 0 : i32
    %c0_i32_2 = arith.constant 0 : i32
    return %c0_i32, %arg1, %c0_i32_0, %c0_i32_1 : i32, i32, i32, i32
  }
  func.func @transform_1(%arg0: i32, %arg1: i32) -> (i32, i32, i32, i32) {
    %c8_i32 = arith.constant 8 : i32
    %0 = arith.muli %arg1, %c8_i32 : i32
    %c1_i32 = arith.constant 1 : i32
    %1 = arith.subi %0, %c1_i32 : i32
    %c0_i32 = arith.constant 0 : i32
    %2 = arith.maxsi %1, %c0_i32 : i32
    %c0_i32_0 = arith.constant 0 : i32
    %c0_i32_1 = arith.constant 0 : i32
    %c0_i32_2 = arith.constant 0 : i32
    %c0_i32_3 = arith.constant 0 : i32
    return %c0_i32_0, %2, %c0_i32_1, %c0_i32_2 : i32, i32, i32, i32
  }
  func.func @transform_2(%arg0: i32, %arg1: i32) -> (i32, i32, i32, i32) {
    %c1_i32 = arith.constant 1 : i32
    %0 = arith.addi %arg1, %c1_i32 : i32
    %c8_i32 = arith.constant 8 : i32
    %1 = arith.muli %0, %c8_i32 : i32
    %c15_i32 = arith.constant 15 : i32
    %2 = arith.minsi %1, %c15_i32 : i32
    %c0_i32 = arith.constant 0 : i32
    %c0_i32_0 = arith.constant 0 : i32
    %c0_i32_1 = arith.constant 0 : i32
    %c0_i32_2 = arith.constant 0 : i32
    return %c0_i32, %2, %c0_i32_0, %c0_i32_1 : i32, i32, i32, i32
  }
  func.func @transform_3(%arg0: i32, %arg1: i32) -> (i32, i32) {
    %c0_i32 = arith.constant 0 : i32
    %c0_i32_0 = arith.constant 0 : i32
    %c0_i32_1 = arith.constant 0 : i32
    return %c0_i32, %c0_i32_0 : i32, i32
  }
  func.func @transform_4(%arg0: i32, %arg1: i32) -> (i32, i32) {
    %c0_i32 = arith.constant 0 : i32
    %c0_i32_0 = arith.constant 0 : i32
    %c0_i32_1 = arith.constant 0 : i32
    return %c0_i32, %c0_i32_0 : i32, i32
  }
  func.func @transform_5(%arg0: i32, %arg1: i32) -> (i32, i32, i32) {
    %c0_i32 = arith.constant 0 : i32
    %c0_i32_0 = arith.constant 0 : i32
    %c0_i32_1 = arith.constant 0 : i32
    return %c0_i32, %c0_i32_0, %arg0 : i32, i32, i32
  }
  func.func @transform_6(%arg0: i32, %arg1: i32) -> (i32, i32, i32, i32) {
    %c0_i32 = arith.constant 0 : i32
    %c0_i32_0 = arith.constant 0 : i32
    %c0_i32_1 = arith.constant 0 : i32
    return %c0_i32, %arg1, %c0_i32_0, %arg0 : i32, i32, i32, i32
  }
  func.func @transform_7(%arg0: i32, %arg1: i32) -> (i32, i32) {
    %c0_i32 = arith.constant 0 : i32
    %c0_i32_0 = arith.constant 0 : i32
    return %c0_i32, %arg0 : i32, i32
  }
  func.func @transform_8(%arg0: i32, %arg1: i32) -> (i32, i32) {
    %c0_i32 = arith.constant 0 : i32
    %c0_i32_0 = arith.constant 0 : i32
    return %c0_i32, %arg0 : i32, i32
  }
}

</mosaic_0001>

<bundles_post_ra>
// kernel: double_conv_forward.5
= control target key start
LH: loop header
LB: loop body
LE: loop exit
PB: predicated region body
PF: predicated region fallthrough
CT: control target
= control target key end

     0   :  { %vm285_vm0 = vcmask 261120   ;;  %s824_s0 = inlined_call_operand.vmem [shape: f32[512,32], index: 0, kind: input, shape index: {}]   ;;  %s825_s1 = inlined_call_operand.vmem [shape: f32[1,32], index: 1, kind: input, shape index: {}]   ;;  %s826_s2 = inlined_call_operand.vmem [shape: f32[1,32], index: 2, kind: input, shape index: {}]   ;;  %s827_s3 = inlined_call_operand.hbm [shape: f32[512,32], index: 3, kind: output, shape index: {}]  }
   0x1   :  { %v15_v0 = vld [vmem:[%s824_s0] sm:$0xff]  ;;  %v16_v4 = vld [vmem:[%s824_s0 + $0x8] sm:$0xff]  ;;  %v17_v5 = vld [vmem:[%s824_s0 + $0x10] sm:$0xff] }
   0x2   :  { %v424_v1 = vld [vmem:[%s825_s1] ss:$0 sm:$0xff]  ;;  %v18_v6 = vld [vmem:[%s824_s0 + $0x18] sm:$0xff]  ;;  %v20_v11 = vld [vmem:[%s824_s0 + $0x28] sm:$0xff] }
   0x3   :  { %v429_v2 = vld [vmem:[%s826_s2] ss:$0 sm:$0xff]  ;;  %v86_v3 = vmul.f32 %v424_v1, %v15_v0  ;;  %v87_v7 = vmul.f32 %v424_v1, %v16_v4  ;;  %v88_v8 = vmul.f32 %v424_v1, %v17_v5  ;;  %v89_v9 = vmul.f32 %v424_v1, %v18_v6  ;;  %v21_v12 = vld [vmem:[%s824_s0 + $0x30] sm:$0xff]  ;;  %v22_v17 = vld [vmem:[%s824_s0 + $0x38] sm:$0xff] }
   0x4   :  { %v19_v10 = vld [vmem:[%s824_s0 + $0x20] sm:$0xff]  ;;  %v91_v15 = vmul.f32 %v424_v1, %v20_v11  ;;  %v92_v16 = vmul.f32 %v424_v1, %v21_v12  ;;  %v93_v21 = vmul.f32 %v424_v1, %v22_v17  ;;  %v24_v27 = vld [vmem:[%s824_s0 + $0x48] sm:$0xff]  ;;  %v25_v28 = vld [vmem:[%s824_s0 + $0x50] sm:$0xff] }
   0x5   :  { %v157_v13 = vadd.f32 %v429_v2, %v86_v3  ;;  %v90_v14 = vmul.f32 %v424_v1, %v19_v10  ;;  %v158_v18 = vadd.f32 %v429_v2, %v87_v7  ;;  %v159_v19 = vadd.f32 %v429_v2, %v88_v8  ;;  %v23_v22 = vld [vmem:[%s824_s0 + $0x40] sm:$0xff]  ;;  %v26_v29 = vld [vmem:[%s824_s0 + $0x58] sm:$0xff]  ;;  %v28_v35 = vld [vmem:[%s824_s0 + $0x68] sm:$0xff] }
   0x6   :  { %v160_v20 = vadd.f32 %v429_v2, %v89_v9  ;;  %v162_v25 = vadd.f32 %v429_v2, %v91_v15  ;;  %v163_v26 = vadd.f32 %v429_v2, %v92_v16  ;;  %v164_v33 = vadd.f32 %v429_v2, %v93_v21  ;;  %v27_v34 = vld [vmem:[%s824_s0 + $0x60] sm:$0xff]  ;;  %v29_v36 = vld [vmem:[%s824_s0 + $0x70] sm:$0xff]  ;;  %v30_v41 = vld [vmem:[%s824_s0 + $0x78] sm:$0xff] }
   0x7   :  { %v221_v23 = vmax.f32 %v157_v13, 0.0  ;;  %v161_v24 = vadd.f32 %v429_v2, %v90_v14  ;;  %v222_v30 = vmax.f32 %v158_v18, 0.0  ;;  %v223_v31 = vmax.f32 %v159_v19, 0.0  ;;  %v31_v54 = vld [vmem:[%s824_s0 + $0x80] sm:$0xff]  ;;  %v32_v59 = vld [vmem:[%s824_s0 + $0x88] sm:$0xff]  ;;  %v33_v60 = vld [vmem:[%s824_s0 + $0x90] sm:$0xff] }
   0x8   :  { %v224_v32 = vmax.f32 %v160_v20, 0.0  ;;  %v226_v38 = vmax.f32 %v162_v25, 0.0  ;;  %v227_v39 = vmax.f32 %v163_v26, 0.0  ;;  %v94_v40 = vmul.f32 %v424_v1, %v23_v22  ;;  %v34_v61 = vld [vmem:[%s824_s0 + $0x98] sm:$0xff]  ;;  %v35_v4 = vld [vmem:[%s824_s0 + $0xa0] sm:$0xff]  ;;  %v36_v5 = vld [vmem:[%s824_s0 + $0xa8] sm:$0xff] }
   0x9   :  { %286 = vst.msk [vmem:[#allocation2] sm:$0xff] %vm285_vm0, %v221_v23  ;;  %v225_v37 = vmax.f32 %v161_v24, 0.0  ;;  %287 = vst.msk [vmem:[#allocation2 + $0x8] sm:$0xff] %vm285_vm0, %v222_v30  ;;  %v228_v42 = vmax.f32 %v164_v33, 0.0  ;;  %v95_v43 = vmul.f32 %v424_v1, %v24_v27  ;;  %v96_v44 = vmul.f32 %v424_v1, %v25_v28  ;;  %v37_v6 = vld [vmem:[%s824_s0 + $0xb0] sm:$0xff]  ;;  %v38_v11 = vld [vmem:[%s824_s0 + $0xb8] sm:$0xff] }
   0xa   :  { %288 = vst.msk [vmem:[#allocation2 + $0x10] sm:$0xff] %vm285_vm0, %v223_v31  ;;  %289 = vst.msk [vmem:[#allocation2 + $0x18] sm:$0xff] %vm285_vm0, %v224_v32  ;;  %v97_v45 = vmul.f32 %v424_v1, %v26_v29  ;;  %v165_v46 = vadd.f32 %v429_v2, %v94_v40  ;;  %v98_v47 = vmul.f32 %v424_v1, %v27_v34  ;;  %v39_v24 = vld [vmem:[%s824_s0 + $0xc0] sm:$0xff]  ;;  %v40_v29 = vld [vmem:[%s824_s0 + $0xc8] sm:$0xff] }
   0xb   :  { %290 = vst.msk [vmem:[#allocation2 + $0x20] sm:$0xff] %vm285_vm0, %v225_v37  ;;  %291 = vst.msk [vmem:[#allocation2 + $0x28] sm:$0xff] %vm285_vm0, %v226_v38  ;;  %v99_v48 = vmul.f32 %v424_v1, %v28_v35  ;;  %v100_v49 = vmul.f32 %v424_v1, %v29_v36  ;;  %v166_v50 = vadd.f32 %v429_v2, %v95_v43  ;;  %v41_v30 = vld [vmem:[%s824_s0 + $0xd0] sm:$0xff]  ;;  %v42_v31 = vld [vmem:[%s824_s0 + $0xd8] sm:$0xff] }
   0xc   :  { %292 = vst.msk [vmem:[#allocation2 + $0x30] sm:$0xff] %vm285_vm0, %v227_v39  ;;  %293 = vst.msk [vmem:[#allocation2 + $0x38] sm:$0xff] %vm285_vm0, %v228_v42  ;;  %v167_v51 = vadd.f32 %v429_v2, %v96_v44  ;;  %v168_v52 = vadd.f32 %v429_v2, %v97_v45  ;;  %v101_v53 = vmul.f32 %v424_v1, %v30_v41  ;;  %v229_v55 = vmax.f32 %v165_v46, 0.0  ;;  %v43_v36 = vld [vmem:[%s824_s0 + $0xe0] sm:$0xff]  ;;  %v44_v37 = vld [vmem:[%s824_s0 + $0xe8] sm:$0xff] }
   0xd   :  { %v169_v56 = vadd.f32 %v429_v2, %v98_v47  ;;  %v170_v57 = vadd.f32 %v429_v2, %v99_v48  ;;  %v171_v58 = vadd.f32 %v429_v2, %v100_v49  ;;  %v230_v62 = vmax.f32 %v166_v50, 0.0  ;;  %v45_v38 = vld [vmem:[%s824_s0 + $0xf0] sm:$0xff]  ;;  %v46_v43 = vld [vmem:[%s824_s0 + $0xf8] sm:$0xff] }
   0xe   :  { %v231_v63 = vmax.f32 %v167_v51, 0.0  ;;  %v232_v0 = vmax.f32 %v168_v52, 0.0  ;;  %v172_v3 = vadd.f32 %v429_v2, %v101_v53  ;;  %294 = vst.msk [vmem:[#allocation2 + $0x40] sm:$0xff] %vm285_vm0, %v229_v55  ;;  %v102_v10 = vmul.f32 %v424_v1, %v31_v54 }
   0xf   :  { %v233_v7 = vmax.f32 %v169_v56, 0.0  ;;  %v234_v8 = vmax.f32 %v170_v57, 0.0  ;;  %v235_v9 = vmax.f32 %v171_v58, 0.0  ;;  %295 = vst.msk [vmem:[#allocation2 + $0x48] sm:$0xff] %vm285_vm0, %v230_v62  ;;  %v103_v13 = vmul.f32 %v424_v1, %v32_v59  ;;  %v47_v56 = vld [vmem:[%s824_s0 + $0x100] sm:$0xff] }
  0x10   :  { %296 = vst.msk [vmem:[#allocation2 + $0x50] sm:$0xff] %vm285_vm0, %v231_v63  ;;  %297 = vst.msk [vmem:[#allocation2 + $0x58] sm:$0xff] %vm285_vm0, %v232_v0  ;;  %v236_v12 = vmax.f32 %v172_v3, 0.0  ;;  %v104_v14 = vmul.f32 %v424_v1, %v33_v60  ;;  %v105_v15 = vmul.f32 %v424_v1, %v34_v61  ;;  %v173_v16 = vadd.f32 %v429_v2, %v102_v10 }
  0x11   :  { %298 = vst.msk [vmem:[#allocation2 + $0x60] sm:$0xff] %vm285_vm0, %v233_v7  ;;  %299 = vst.msk [vmem:[#allocation2 + $0x68] sm:$0xff] %vm285_vm0, %v234_v8  ;;  %v106_v17 = vmul.f32 %v424_v1, %v35_v4  ;;  %v107_v18 = vmul.f32 %v424_v1, %v36_v5  ;;  %v108_v19 = vmul.f32 %v424_v1, %v37_v6 }
  0x12   :  { %300 = vst.msk [vmem:[#allocation2 + $0x70] sm:$0xff] %vm285_vm0, %v235_v9  ;;  %301 = vst.msk [vmem:[#allocation2 + $0x78] sm:$0xff] %vm285_vm0, %v236_v12  ;;  %v174_v20 = vadd.f32 %v429_v2, %v103_v13  ;;  %v175_v21 = vadd.f32 %v429_v2, %v104_v14  ;;  %v176_v22 = vadd.f32 %v429_v2, %v105_v15  ;;  %v237_v25 = vmax.f32 %v173_v16, 0.0 }
  0x13   :  { %v109_v23 = vmul.f32 %v424_v1, %v38_v11  ;;  %v177_v26 = vadd.f32 %v429_v2, %v106_v17  ;;  %v178_v27 = vadd.f32 %v429_v2, %v107_v18  ;;  %v179_v28 = vadd.f32 %v429_v2, %v108_v19 }
  0x14   :  { %v238_v32 = vmax.f32 %v174_v20, 0.0  ;;  %v239_v33 = vmax.f32 %v175_v21, 0.0  ;;  %v240_v34 = vmax.f32 %v176_v22, 0.0  ;;  %302 = vst.msk [vmem:[#allocation2 + $0x80] sm:$0xff] %vm285_vm0, %v237_v25  ;;  %v110_v42 = vmul.f32 %v424_v1, %v39_v24 }
  0x15   :  { %v180_v35 = vadd.f32 %v429_v2, %v109_v23  ;;  %v241_v39 = vmax.f32 %v177_v26, 0.0  ;;  %v242_v40 = vmax.f32 %v178_v27, 0.0  ;;  %v243_v41 = vmax.f32 %v179_v28, 0.0 }
  0x16   :  { %303 = vst.msk [vmem:[#allocation2 + $0x88] sm:$0xff] %vm285_vm0, %v238_v32  ;;  %304 = vst.msk [vmem:[#allocation2 + $0x90] sm:$0xff] %vm285_vm0, %v239_v33  ;;  %v111_v45 = vmul.f32 %v424_v1, %v40_v29  ;;  %v112_v46 = vmul.f32 %v424_v1, %v41_v30  ;;  %v113_v47 = vmul.f32 %v424_v1, %v42_v31 }
  0x17   :  { %305 = vst.msk [vmem:[#allocation2 + $0x98] sm:$0xff] %vm285_vm0, %v240_v34  ;;  %v244_v44 = vmax.f32 %v180_v35, 0.0  ;;  %306 = vst.msk [vmem:[#allocation2 + $0xa0] sm:$0xff] %vm285_vm0, %v241_v39  ;;  %v181_v48 = vadd.f32 %v429_v2, %v110_v42  ;;  %v114_v49 = vmul.f32 %v424_v1, %v43_v36  ;;  %v115_v50 = vmul.f32 %v424_v1, %v44_v37 }
  0x18   :  { %307 = vst.msk [vmem:[#allocation2 + $0xa8] sm:$0xff] %vm285_vm0, %v242_v40  ;;  %308 = vst.msk [vmem:[#allocation2 + $0xb0] sm:$0xff] %vm285_vm0, %v243_v41  ;;  %v116_v51 = vmul.f32 %v424_v1, %v45_v38  ;;  %v182_v52 = vadd.f32 %v429_v2, %v111_v45  ;;  %v183_v53 = vadd.f32 %v429_v2, %v112_v46 }
  0x19   :  { %309 = vst.msk [vmem:[#allocation2 + $0xb8] sm:$0xff] %vm285_vm0, %v244_v44  ;;  %v184_v54 = vadd.f32 %v429_v2, %v113_v47  ;;  %v117_v55 = vmul.f32 %v424_v1, %v46_v43 }
  0x1a   :  { %8 = vsyncpa [#allocation3], 0  ;;  %v245_v57 = vmax.f32 %v181_v48, 0.0  ;;  %v185_v58 = vadd.f32 %v429_v2, %v114_v49  ;;  %v186_v59 = vadd.f32 %v429_v2, %v115_v50  ;;  %v187_v60 = vadd.f32 %v429_v2, %v116_v51  ;;  %v48_v61 = vld [vmem:[%s824_s0 + $0x108] sm:$0xff]  ;;  %v49_v62 = vld [vmem:[%s824_s0 + $0x110] sm:$0xff] }
  0x1b   :  { %v50_v63 = vld [vmem:[%s824_s0 + $0x118] sm:$0xff]  ;;  %v246_v0 = vmax.f32 %v182_v52, 0.0  ;;  %v247_v3 = vmax.f32 %v183_v53, 0.0  ;;  %v248_v4 = vmax.f32 %v184_v54, 0.0  ;;  %v188_v5 = vadd.f32 %v429_v2, %v117_v55  ;;  %v51_v6 = vld [vmem:[%s824_s0 + $0x120] sm:$0xff]  ;;  %v52_v7 = vld [vmem:[%s824_s0 + $0x128] sm:$0xff] }
  0x1c   :  { %v53_v8 = vld [vmem:[%s824_s0 + $0x130] sm:$0xff]  ;;  %310 = vst.msk [vmem:[#allocation2 + $0xc0] sm:$0xff] %vm285_vm0, %v245_v57  ;;  %v249_v9 = vmax.f32 %v185_v58, 0.0  ;;  %v250_v10 = vmax.f32 %v186_v59, 0.0  ;;  %v251_v11 = vmax.f32 %v187_v60, 0.0  ;;  %v118_v12 = vmul.f32 %v424_v1, %v47_v56  ;;  %v54_v13 = vld [vmem:[%s824_s0 + $0x138] sm:$0xff] }
  0x1d   :  { %311 = vst.msk [vmem:[#allocation2 + $0xc8] sm:$0xff] %vm285_vm0, %v246_v0  ;;  %312 = vst.msk [vmem:[#allocation2 + $0xd0] sm:$0xff] %vm285_vm0, %v247_v3  ;;  %v252_v14 = vmax.f32 %v188_v5, 0.0  ;;  %v119_v15 = vmul.f32 %v424_v1, %v48_v61  ;;  %v120_v16 = vmul.f32 %v424_v1, %v49_v62  ;;  %v121_v17 = vmul.f32 %v424_v1, %v50_v63  ;;  %v55_v26 = vld [vmem:[%s824_s0 + $0x140] sm:$0xff]  ;;  %v56_v31 = vld [vmem:[%s824_s0 + $0x148] sm:$0xff] }
  0x1e   :  { %313 = vst.msk [vmem:[#allocation2 + $0xd8] sm:$0xff] %vm285_vm0, %v248_v4  ;;  %314 = vst.msk [vmem:[#allocation2 + $0xe0] sm:$0xff] %vm285_vm0, %v249_v9  ;;  %v189_v18 = vadd.f32 %v429_v2, %v118_v12  ;;  %v122_v19 = vmul.f32 %v424_v1, %v51_v6  ;;  %v123_v20 = vmul.f32 %v424_v1, %v52_v7  ;;  %v57_v32 = vld [vmem:[%s824_s0 + $0x150] sm:$0xff]  ;;  %v58_v33 = vld [vmem:[%s824_s0 + $0x158] sm:$0xff] }
  0x1f   :  { %315 = vst.msk [vmem:[#allocation2 + $0xe8] sm:$0xff] %vm285_vm0, %v250_v10  ;;  %316 = vst.msk [vmem:[#allocation2 + $0xf0] sm:$0xff] %vm285_vm0, %v251_v11  ;;  %v124_v21 = vmul.f32 %v424_v1, %v53_v8  ;;  %v190_v22 = vadd.f32 %v429_v2, %v119_v15  ;;  %v191_v23 = vadd.f32 %v429_v2, %v120_v16  ;;  %v59_v38 = vld [vmem:[%s824_s0 + $0x160] sm:$0xff]  ;;  %v60_v39 = vld [vmem:[%s824_s0 + $0x168] sm:$0xff] }
  0x20   :  { %317 = vst.msk [vmem:[#allocation2 + $0xf8] sm:$0xff] %vm285_vm0, %v252_v14  ;;  %v192_v24 = vadd.f32 %v429_v2, %v121_v17  ;;  %v125_v25 = vmul.f32 %v424_v1, %v54_v13  ;;  %v253_v27 = vmax.f32 %v189_v18, 0.0  ;;  %v193_v28 = vadd.f32 %v429_v2, %v122_v19  ;;  %v61_v40 = vld [vmem:[%s824_s0 + $0x170] sm:$0xff]  ;;  %v62_v45 = vld [vmem:[%s824_s0 + $0x178] sm:$0xff]  ;;  %v63_v58 = vld [vmem:[%s824_s0 + $0x180] sm:$0xff] }
  0x21   :  { %v194_v29 = vadd.f32 %v429_v2, %v123_v20  ;;  %v195_v30 = vadd.f32 %v429_v2, %v124_v21  ;;  %v254_v34 = vmax.f32 %v190_v22, 0.0  ;;  %v255_v35 = vmax.f32 %v191_v23, 0.0  ;;  %v64_v63 = vld [vmem:[%s824_s0 + $0x188] sm:$0xff]  ;;  %v65_v0 = vld [vmem:[%s824_s0 + $0x190] sm:$0xff]  ;;  %v66_v3 = vld [vmem:[%s824_s0 + $0x198] sm:$0xff] }
  0x22   :  { %v256_v36 = vmax.f32 %v192_v24, 0.0  ;;  %v196_v37 = vadd.f32 %v429_v2, %v125_v25  ;;  %318 = vst.msk [vmem:[#allocation2 + $0x100] sm:$0xff] %vm285_vm0, %v253_v27  ;;  %v257_v41 = vmax.f32 %v193_v28, 0.0  ;;  %v126_v44 = vmul.f32 %v424_v1, %v55_v26  ;;  %v67_v8 = vld [vmem:[%s824_s0 + $0x1a0] sm:$0xff]  ;;  %v68_v9 = vld [vmem:[%s824_s0 + $0x1a8] sm:$0xff]  ;;  %v69_v10 = vld [vmem:[%s824_s0 + $0x1b0] sm:$0xff] }
  0x23   :  { %v258_v42 = vmax.f32 %v194_v29, 0.0  ;;  %v259_v43 = vmax.f32 %v195_v30, 0.0  ;;  %319 = vst.msk [vmem:[#allocation2 + $0x108] sm:$0xff] %vm285_vm0, %v254_v34  ;;  %320 = vst.msk [vmem:[#allocation2 + $0x110] sm:$0xff] %vm285_vm0, %v255_v35  ;;  %v127_v47 = vmul.f32 %v424_v1, %v56_v31  ;;  %v128_v48 = vmul.f32 %v424_v1, %v57_v32  ;;  %v70_v15 = vld [vmem:[%s824_s0 + $0x1b8] sm:$0xff]  ;;  %v71_v28 = vld [vmem:[%s824_s0 + $0x1c0] sm:$0xff] }
  0x24   :  { %321 = vst.msk [vmem:[#allocation2 + $0x118] sm:$0xff] %vm285_vm0, %v256_v36  ;;  %v260_v46 = vmax.f32 %v196_v37, 0.0  ;;  %v129_v49 = vmul.f32 %v424_v1, %v58_v33  ;;  %322 = vst.msk [vmem:[#allocation2 + $0x120] sm:$0xff] %vm285_vm0, %v257_v41  ;;  %v197_v50 = vadd.f32 %v429_v2, %v126_v44  ;;  %v130_v51 = vmul.f32 %v424_v1, %v59_v38  ;;  %v72_v33 = vld [vmem:[%s824_s0 + $0x1c8] sm:$0xff]  ;;  %v73_v34 = vld [vmem:[%s824_s0 + $0x1d0] sm:$0xff] }
  0x25   :  { %323 = vst.msk [vmem:[#allocation2 + $0x128] sm:$0xff] %vm285_vm0, %v258_v42  ;;  %324 = vst.msk [vmem:[#allocation2 + $0x130] sm:$0xff] %vm285_vm0, %v259_v43  ;;  %v131_v52 = vmul.f32 %v424_v1, %v60_v39  ;;  %v132_v53 = vmul.f32 %v424_v1, %v61_v40  ;;  %v198_v54 = vadd.f32 %v429_v2, %v127_v47  ;;  %v74_v35 = vld [vmem:[%s824_s0 + $0x1d8] sm:$0xff]  ;;  %v75_v40 = vld [vmem:[%s824_s0 + $0x1e0] sm:$0xff] }
  0x26   :  { %325 = vst.msk [vmem:[#allocation2 + $0x138] sm:$0xff] %vm285_vm0, %v260_v46  ;;  %v199_v55 = vadd.f32 %v429_v2, %v128_v48  ;;  %v200_v56 = vadd.f32 %v429_v2, %v129_v49  ;;  %v133_v57 = vmul.f32 %v424_v1, %v62_v45  ;;  %v261_v59 = vmax.f32 %v197_v50, 0.0  ;;  %v76_v41 = vld [vmem:[%s824_s0 + $0x1e8] sm:$0xff]  ;;  %v77_v42 = vld [vmem:[%s824_s0 + $0x1f0] sm:$0xff]  ;;  %v78_v47 = vld [vmem:[%s824_s0 + $0x1f8] sm:$0xff]  ;;  %s395_s0 = smov [#allocation2]  }
  0x27   :  { %v201_v60 = vadd.f32 %v429_v2, %v130_v51  ;;  %v202_v61 = vadd.f32 %v429_v2, %v131_v52  ;;  %v203_v62 = vadd.f32 %v429_v2, %v132_v53  ;;  %v262_v4 = vmax.f32 %v198_v54, 0.0  ;;  %s355_s26 = sshll.u32 %s395_s0, 4  ;;  %s356_s26 = int_to_ptr.vmem [resolvable:$true] %s355_s26 }
  0x28   :  { %v263_v5 = vmax.f32 %v199_v55, 0.0  ;;  %v264_v6 = vmax.f32 %v200_v56, 0.0  ;;  %v204_v7 = vadd.f32 %v429_v2, %v133_v57  ;;  %326 = vst.msk [vmem:[#allocation2 + $0x140] sm:$0xff] %vm285_vm0, %v261_v59  ;;  %v134_v14 = vmul.f32 %v424_v1, %v63_v58  ;;  %s371_s27 = scalar_lea.vmem %s356_s26, 8192  ;;  %p376_p1 = scmp.lt.s32.totalorder %s356_s26, %s356_s26 }
  0x29   :  { %v265_v11 = vmax.f32 %v201_v60, 0.0  ;;  %v266_v12 = vmax.f32 %v202_v61, 0.0  ;;  %v267_v13 = vmax.f32 %v203_v62, 0.0  ;;  %327 = vst.msk [vmem:[#allocation2 + $0x148] sm:$0xff] %vm285_vm0, %v262_v4  ;;  %v135_v17 = vmul.f32 %v424_v1, %v64_v63  ;;  %p372_p0 = scmp.ne.s32.totalorder %s356_s26, %s371_s27  ;;  %p377_p2 = scmp.lt.s32.totalorder %s371_s27, %s371_s27 }
  0x2a   :  { %328 = vst.msk [vmem:[#allocation2 + $0x150] sm:$0xff] %vm285_vm0, %v263_v5  ;;  %329 = vst.msk [vmem:[#allocation2 + $0x158] sm:$0xff] %vm285_vm0, %v264_v6  ;;  %v268_v16 = vmax.f32 %v204_v7, 0.0  ;;  %v136_v18 = vmul.f32 %v424_v1, %v65_v0  ;;  %v137_v19 = vmul.f32 %v424_v1, %v66_v3  ;;  %v205_v20 = vadd.f32 %v429_v2, %v134_v14 }
  0x2b   :  { %330 = vst.msk [vmem:[#allocation2 + $0x160] sm:$0xff] %vm285_vm0, %v265_v11  ;;  %331 = vst.msk [vmem:[#allocation2 + $0x168] sm:$0xff] %vm285_vm0, %v266_v12  ;;  %v138_v21 = vmul.f32 %v424_v1, %v67_v8  ;;  %v139_v22 = vmul.f32 %v424_v1, %v68_v9  ;;  %v140_v23 = vmul.f32 %v424_v1, %v69_v10  ;;  %p378_p3 = por %p377_p2, %p376_p1 }
  0x2c   :  { %332 = vst.msk [vmem:[#allocation2 + $0x170] sm:$0xff] %vm285_vm0, %v267_v13  ;;  %333 = vst.msk [vmem:[#allocation2 + $0x178] sm:$0xff] %vm285_vm0, %v268_v16  ;;  %v206_v24 = vadd.f32 %v429_v2, %v135_v17  ;;  %v207_v25 = vadd.f32 %v429_v2, %v136_v18  ;;  %v208_v26 = vadd.f32 %v429_v2, %v137_v19  ;;  %v269_v29 = vmax.f32 %v205_v20, 0.0 }
  0x2d   :  { %v141_v27 = vmul.f32 %v424_v1, %v70_v15  ;;  %v209_v30 = vadd.f32 %v429_v2, %v138_v21  ;;  %v210_v31 = vadd.f32 %v429_v2, %v139_v22  ;;  %v211_v32 = vadd.f32 %v429_v2, %v140_v23  ;;  %p379_p4 = pnand %p378_p3, %p372_p0 }
  0x2e   :  { %v270_v36 = vmax.f32 %v206_v24, 0.0  ;;  %v271_v37 = vmax.f32 %v207_v25, 0.0  ;;  %v272_v38 = vmax.f32 %v208_v26, 0.0  ;;  %334 = vst.msk [vmem:[#allocation2 + $0x180] sm:$0xff] %vm285_vm0, %v269_v29  ;;  %v142_v46 = vmul.f32 %v424_v1, %v71_v28 }
  0x2f   :  { %v212_v39 = vadd.f32 %v429_v2, %v141_v27  ;;  %v273_v43 = vmax.f32 %v209_v30, 0.0  ;;  %v274_v44 = vmax.f32 %v210_v31, 0.0  ;;  %v275_v45 = vmax.f32 %v211_v32, 0.0 }
  0x30   :  { %335 = vst.msk [vmem:[#allocation2 + $0x188] sm:$0xff] %vm285_vm0, %v270_v36  ;;  %336 = vst.msk [vmem:[#allocation2 + $0x190] sm:$0xff] %vm285_vm0, %v271_v37  ;;  %v143_v49 = vmul.f32 %v424_v1, %v72_v33  ;;  %v144_v50 = vmul.f32 %v424_v1, %v73_v34  ;;  %v145_v51 = vmul.f32 %v424_v1, %v74_v35 }
  0x31   :  { %337 = vst.msk [vmem:[#allocation2 + $0x198] sm:$0xff] %vm285_vm0, %v272_v38  ;;  %v276_v48 = vmax.f32 %v212_v39, 0.0  ;;  %338 = vst.msk [vmem:[#allocation2 + $0x1a0] sm:$0xff] %vm285_vm0, %v273_v43  ;;  %v213_v52 = vadd.f32 %v429_v2, %v142_v46  ;;  %v146_v53 = vmul.f32 %v424_v1, %v75_v40  ;;  %v147_v54 = vmul.f32 %v424_v1, %v76_v41 }
  0x32   :  { %339 = vst.msk [vmem:[#allocation2 + $0x1a8] sm:$0xff] %vm285_vm0, %v274_v44  ;;  %340 = vst.msk [vmem:[#allocation2 + $0x1b0] sm:$0xff] %vm285_vm0, %v275_v45  ;;  %v148_v55 = vmul.f32 %v424_v1, %v77_v42  ;;  %v214_v56 = vadd.f32 %v429_v2, %v143_v49  ;;  %v215_v57 = vadd.f32 %v429_v2, %v144_v50 }
  0x33   :  { %341 = vst.msk [vmem:[#allocation2 + $0x1b8] sm:$0xff] %vm285_vm0, %v276_v48  ;;  %v216_v58 = vadd.f32 %v429_v2, %v145_v51  ;;  %v149_v59 = vmul.f32 %v424_v1, %v78_v47  ;;  %v277_v60 = vmax.f32 %v213_v52, 0.0  ;;  %v217_v61 = vadd.f32 %v429_v2, %v146_v53 }
  0x34   :  { %v218_v62 = vadd.f32 %v429_v2, %v147_v54  ;;  %v219_v63 = vadd.f32 %v429_v2, %v148_v55  ;;  %v278_v0 = vmax.f32 %v214_v56, 0.0  ;;  %v279_v3 = vmax.f32 %v215_v57, 0.0 }
  0x35   :  { %v280_v4 = vmax.f32 %v216_v58, 0.0  ;;  %v220_v5 = vadd.f32 %v429_v2, %v149_v59  ;;  %342 = vst.msk [vmem:[#allocation2 + $0x1c0] sm:$0xff] %vm285_vm0, %v277_v60  ;;  %v281_v6 = vmax.f32 %v217_v61, 0.0 }
  0x36   :  { %v282_v7 = vmax.f32 %v218_v62, 0.0  ;;  %v283_v8 = vmax.f32 %v219_v63, 0.0  ;;  %343 = vst.msk [vmem:[#allocation2 + $0x1c8] sm:$0xff] %vm285_vm0, %v278_v0  ;;  %344 = vst.msk [vmem:[#allocation2 + $0x1d0] sm:$0xff] %vm285_vm0, %v279_v3 }
  0x37   :  { %345 = vst.msk [vmem:[#allocation2 + $0x1d8] sm:$0xff] %vm285_vm0, %v280_v4  ;;  %v284_v1 = vmax.f32 %v220_v5, 0.0  ;;  %346 = vst.msk [vmem:[#allocation2 + $0x1e0] sm:$0xff] %vm285_vm0, %v281_v6 }
  0x38   :  { %347 = vst.msk [vmem:[#allocation2 + $0x1e8] sm:$0xff] %vm285_vm0, %v282_v7  ;;  %348 = vst.msk [vmem:[#allocation2 + $0x1f0] sm:$0xff] %vm285_vm0, %v283_v8 }
  0x39   :  { %349 = vst.msk [vmem:[#allocation2 + $0x1f8] sm:$0xff] %vm285_vm0, %v284_v1 }
  0x3a   :  { %382 = shalt.err (!%p379_p4)
}
  0x3b   :  { %s383_s30 = scalar_lea.hbm %s827_s3, 8192 }
  0x3c   :  { %p384_p5 = scmp.ne.s32.totalorder %s827_s3, %s383_s30  ;;  %p387_p6 = scmp.lt.u32.totalorder %s383_s30, %s827_s3 }
  0x3e   :  { %p389_p7 = pnand %p387_p6, %p384_p5 }
  0x40   :  { %392 = shalt.err (!%p389_p7)
}
  0x41   :  { %s396_s8 = smov 128   ;;  %s397_s9 = smov 8  }
  0x42   :  { %361 = dma.vmem_to_hbm [thread:$0]  %s356_s26, 8192, %s827_s3, [#allocation3], %s396_s8, %s396_s8, %s397_s9  }
  0x43   :  { %393 = dma.done.wait [#allocation3], 8192  }
  0x44   :  { %394 = vsyncadd [#allocation3], 4294959104 }
  0x45   :  { %365 = vsyncpa [#allocation3], 1 }

// kernel: double_conv_forward.3
= control target key start
LH: loop header
LB: loop body
LE: loop exit
PB: predicated region body
PF: predicated region fallthrough
CT: control target
= control target key end

     0   :  { %s4347_s0 = inlined_call_operand.vmem [shape: f32[2,16,16,4], index: 0, kind: input, shape index: {}, may-alias: {0,1,2}]   ;;  %s4348_s1 = inlined_call_operand.vmem [shape: f32[2,16,16,4], index: 1, kind: input, shape index: {}, may-alias: {0,1,2}]   ;;  %s4349_s2 = inlined_call_operand.vmem [shape: f32[2,16,16,4], index: 2, kind: input, shape index: {}, may-alias: {0,1,2}]   ;;  %s4350_s3 = inlined_call_operand.vmem [shape: f32[1,4], index: 3, kind: input, shape index: {}, may-alias: {3,4}]   ;;  %s4351_s4 = inlined_call_operand.vmem [shape: f32[1,4], index: 4, kind: input, shape index: {}, may-alias: {3,4}]   ;;  %s4352_s5 = inlined_call_operand.vmem [shape: bf16[3,12,32], index: 5, kind: input, shape index: {}]   ;;  %s4353_s6 = inlined_call_operand.vmem [shape: f32[2,16,16,32], index: 6, kind: output, shape index: {0}]   ;;  %s4354_s7 = inlined_call_operand.vmem [shape: f32[1,32], index: 7, kind: output, shape index: {1}]   ;;  %s4355_s8 = inlined_call_operand.vmem [shape: f32[1,32], index: 8, kind: output, shape index: {2}]  }
   0x1   :  { %4357 = sst [smem:[#allocation8_spill]] %s4347_s0 }
   0x2   :  { %s3164_s27 = smov 0   ;;  %s3166_s28 = smov 0  }
   0x3   :  { %s3168_s3 = smov 0   ;;  %s3170_s29 = smov 0  }
   0x4   :  { %s3172_s4 = smov 0   ;;  %s3174_s30 = smov 0  }
   0x5   :  { %s3176_s9 = smov 0   ;;  %s3178_s10 = smov 0  }
   0x6   :  { %s3180_s11 = smov 0  }
   0x7 LB: > { %s28_s12 = sadd.s32 1, %s3110_s10  ;;  %s38_s13 = sadd.s32 1, %s3102_s30  ;;  %s3114_s11 = sphi %s3180_s11, %s19_s11   ;;  %s3110_s10 = sphi %s3178_s10, %s4376_s10   ;;  %s3106_s9 = sphi %s3176_s9, %s4375_s9   ;;  %s3102_s30 = sphi %s3174_s30, %s4374_s30   ;;  %s3098_s4 = sphi %s3172_s4, %s4373_s4   ;;  %s3094_s29 = sphi %s3170_s29, %s4372_s29   ;;  %s3090_s3 = sphi %s3168_s3, %s4371_s3   ;;  %s3086_s28 = sphi %s3166_s28, %s4370_s28   ;;  %s3082_s27 = sphi %s3164_s27, %s4369_s27  }
   0x8   : > { %p29_p0 = scmp.ge.s32.totalorder %s28_s12, 2  ;;  %p45_p1 = scmp.ne.s32.totalorder %s3102_s30, %s3098_s4 }
   0x9   : > { %p46_p2 = scmp.eq.s32.totalorder %s3114_s11, 0  ;;  %s2640_s15 = sshll.u32 %s3110_s10, 3 }
   0xa   : > { %s4378_s12 = smov (%p29_p0, %s28_s12), 0  ;;  %s2641_s17 = sadd.s32 4294967295, %s2640_s15 }
   0xb   : > { %4358 = sst [smem:[#allocation6_spill]] %s4378_s12  ;;  %p3221_p3 = por %p46_p2, %p45_p1 }
   0xc   : > { %s35_s16 = ssub.s32 %s3110_s10, %s4378_s12  ;;  %p63_p5 = scmp.gt.s32.totalorder %s2641_s17, 0 }
   0xd   : > { %p36_p4 = scmp.eq.s32.totalorder %s35_s16, 0  ;;  %s2642_s18 = sshll.u32 %s4378_s12, 3 }
   0xe   : > { %s72_s19 = sadd.s32 1, %s3094_s29  ;;  %s4380_s17 = smov (!%p63_p5, %s2641_s17), 0 }
   0xf   : > { %s3231_s20 = scalar_select %p36_p4, %s3102_s30, %s38_s13  }
  0x10   : > { %s2643_s21 = sadd.s32 4294967295, %s2642_s18  ;;  %p79_p6 = scmp.ne.s32.totalorder %s3094_s29, %s3090_s3 }
  0x11   : > { %4360 = sst [smem:[#allocation7_spill]] %s3231_s20  ;;  %p67_p7 = scmp.gt.s32.totalorder %s2643_s21, 0 }
  0x12   : > { %s2732_s22 = sadd.s32 8, %s2640_s15  ;;  %p3239_p8 = por %p79_p6, %p46_p2 }
  0x13   : > { %p97_p9 = scmp.lt.s32.totalorder %s2732_s22, 15  ;;  %s4382_s21 = smov (!%p67_p7, %s2643_s21), 0 }
  0x14   : > { %s69_s24 = ssub.s32 %s4380_s17, %s4382_s21  ;;  %s2734_s25 = sadd.s32 8, %s2642_s18 }
  0x15   : > { %s4384_s22 = smov (!%p97_p9, %s2732_s22), 15  ;;  %p70_p10 = scmp.eq.s32.totalorder %s69_s24, 0 }
  0x16   : > { %p101_p11 = scmp.lt.s32.totalorder %s2734_s25, 15  ;;  %s2638_s26 = sadd.s32 4294967295, %s3114_s11  }
  0x17   : > { %p113_p12 = scmp.ne.s32.totalorder %s3086_s28, %s3082_s27  ;;  %p213_p0 = scmp.eq.s32.totalorder %s2638_s26, 1 }
  0x18   : > { %s3250_s13 = scalar_select %p70_p10, %s3094_s29, %s72_s19  }
  0x19   : > { %s4386_s25 = smov (!%p101_p11, %s2734_s25), 15  ;;  %p3254_p13 = por %p113_p12, %p46_p2 }
  0x1a   : > { %s103_s16 = ssub.s32 %s4384_s22, %s4386_s25  ;;  %s106_s12 = sadd.s32 1, %s3086_s28 }
  0x1b   : > { %p104_p4 = scmp.eq.s32.totalorder %s103_s16, 0  ;;  %p3263_p5 = por %p213_p0, %p45_p1 }
  0x1c   : > { %p2648_p6 = scmp.ge.s32.totalorder %s3114_s11, 2 }
  0x1d   : > { %s3268_s18 = scalar_select %p104_p4, %s3086_s28, %s106_s12  }
  0x1e   : > { %300 = sbr.rel (%p2648_p6) target bundleno = 77 (0x4d), region = 28 }
  0x25   : > { %303 = sbr.rel (!%p3221_p3) target bundleno = 63 (0x3f), region = 32  ;;  %s305_s19 = sand.u32 (%p3221_p3), 1, %s3102_s30  }
  0x26   : > { %s2736_s24 = sshll.u32 (%p3221_p3), %s3110_s10, 7  ;;  %s2649_s25 = sshll.u32 (%p3221_p3), %s305_s19, 8 }
  0x27   : > { %s4364_s0 = sld [smem:[#allocation8_spill]] (%p3221_p3)  ;;  %s3283_s12 = scalar_lea.vmem (%p3221_p3), [#allocation2], %s2649_s25 }
  0x2d   : > { %s3278_s20 = scalar_lea.vmem %s4364_s0, %s2736_s24 }
  0x2e   : > { %v401_v0 = vld [vmem:[%s3278_s20] sm:$0xff]  ;;  %v403_v1 = vld [vmem:[%s3278_s20 + $0x8] sm:$0xff]  ;;  %v405_v2 = vld [vmem:[%s3278_s20 + $0x10] sm:$0xff] }
  0x2f   : > { %402 = vst [vmem:[%s3283_s12] sm:$0xff] %v401_v0  ;;  %404 = vst [vmem:[%s3283_s12 + $0x8] sm:$0xff] %v403_v1  ;;  %v407_v3 = vld [vmem:[%s3278_s20 + $0x18] sm:$0xff]  ;;  %v409_v4 = vld [vmem:[%s3278_s20 + $0x20] sm:$0xff] }
  0x30   : > { %406 = vst [vmem:[%s3283_s12 + $0x10] sm:$0xff] %v405_v2  ;;  %v411_v5 = vld [vmem:[%s3278_s20 + $0x28] sm:$0xff]  ;;  %408 = vst [vmem:[%s3283_s12 + $0x18] sm:$0xff] %v407_v3  ;;  %v413_v6 = vld [vmem:[%s3278_s20 + $0x30] sm:$0xff] }
  0x31   : > { %410 = vst [vmem:[%s3283_s12 + $0x20] sm:$0xff] %v409_v4  ;;  %412 = vst [vmem:[%s3283_s12 + $0x28] sm:$0xff] %v411_v5  ;;  %v415_v7 = vld [vmem:[%s3278_s20 + $0x38] sm:$0xff]  ;;  %v417_v8 = vld [vmem:[%s3278_s20 + $0x40] sm:$0xff] }
  0x32   : > { %414 = vst [vmem:[%s3283_s12 + $0x30] sm:$0xff] %v413_v6  ;;  %416 = vst [vmem:[%s3283_s12 + $0x38] sm:$0xff] %v415_v7  ;;  %v419_v9 = vld [vmem:[%s3278_s20 + $0x48] sm:$0xff]  ;;  %v421_v10 = vld [vmem:[%s3278_s20 + $0x50] sm:$0xff] }
  0x33   : > { %418 = vst [vmem:[%s3283_s12 + $0x40] sm:$0xff] %v417_v8  ;;  %v423_v11 = vld [vmem:[%s3278_s20 + $0x58] sm:$0xff]  ;;  %420 = vst [vmem:[%s3283_s12 + $0x48] sm:$0xff] %v419_v9  ;;  %v425_v12 = vld [vmem:[%s3278_s20 + $0x60] sm:$0xff] }
  0x34   : > { %422 = vst [vmem:[%s3283_s12 + $0x50] sm:$0xff] %v421_v10  ;;  %424 = vst [vmem:[%s3283_s12 + $0x58] sm:$0xff] %v423_v11  ;;  %v427_v13 = vld [vmem:[%s3278_s20 + $0x68] sm:$0xff]  ;;  %v429_v14 = vld [vmem:[%s3278_s20 + $0x70] sm:$0xff] }
  0x35   : > { %426 = vst [vmem:[%s3283_s12 + $0x60] sm:$0xff] %v425_v12  ;;  %428 = vst [vmem:[%s3283_s12 + $0x68] sm:$0xff] %v427_v13  ;;  %v431_v15 = vld [vmem:[%s3278_s20 + $0x78] sm:$0xff]  ;;  %v433_v16 = vld [vmem:[%s3278_s20 + $0x100] sm:$0xff] }
  0x36   : > { %430 = vst [vmem:[%s3283_s12 + $0x70] sm:$0xff] %v429_v14  ;;  %v435_v17 = vld [vmem:[%s3278_s20 + $0x108] sm:$0xff]  ;;  %432 = vst [vmem:[%s3283_s12 + $0x78] sm:$0xff] %v431_v15  ;;  %v437_v18 = vld [vmem:[%s3278_s20 + $0x110] sm:$0xff] }
  0x37   : > { %434 = vst [vmem:[%s3283_s12 + $0x80] sm:$0xff] %v433_v16  ;;  %436 = vst [vmem:[%s3283_s12 + $0x88] sm:$0xff] %v435_v17  ;;  %v439_v19 = vld [vmem:[%s3278_s20 + $0x118] sm:$0xff]  ;;  %v441_v20 = vld [vmem:[%s3278_s20 + $0x120] sm:$0xff] }
  0x38   : > { %438 = vst [vmem:[%s3283_s12 + $0x90] sm:$0xff] %v437_v18  ;;  %440 = vst [vmem:[%s3283_s12 + $0x98] sm:$0xff] %v439_v19  ;;  %v443_v21 = vld [vmem:[%s3278_s20 + $0x128] sm:$0xff]  ;;  %v445_v22 = vld [vmem:[%s3278_s20 + $0x130] sm:$0xff] }
  0x39   : > { %442 = vst [vmem:[%s3283_s12 + $0xa0] sm:$0xff] %v441_v20  ;;  %v447_v23 = vld [vmem:[%s3278_s20 + $0x138] sm:$0xff]  ;;  %444 = vst [vmem:[%s3283_s12 + $0xa8] sm:$0xff] %v443_v21  ;;  %v449_v24 = vld [vmem:[%s3278_s20 + $0x140] sm:$0xff] }
  0x3a   : > { %446 = vst [vmem:[%s3283_s12 + $0xb0] sm:$0xff] %v445_v22  ;;  %448 = vst [vmem:[%s3283_s12 + $0xb8] sm:$0xff] %v447_v23  ;;  %v451_v25 = vld [vmem:[%s3278_s20 + $0x148] sm:$0xff]  ;;  %v453_v26 = vld [vmem:[%s3278_s20 + $0x150] sm:$0xff] }
  0x3b   : > { %450 = vst [vmem:[%s3283_s12 + $0xc0] sm:$0xff] %v449_v24  ;;  %452 = vst [vmem:[%s3283_s12 + $0xc8] sm:$0xff] %v451_v25  ;;  %v455_v27 = vld [vmem:[%s3278_s20 + $0x158] sm:$0xff]  ;;  %v457_v28 = vld [vmem:[%s3278_s20 + $0x160] sm:$0xff] }
  0x3c   : > { %454 = vst [vmem:[%s3283_s12 + $0xd0] sm:$0xff] %v453_v26  ;;  %v459_v29 = vld [vmem:[%s3278_s20 + $0x168] sm:$0xff]  ;;  %456 = vst [vmem:[%s3283_s12 + $0xd8] sm:$0xff] %v455_v27  ;;  %v461_v30 = vld [vmem:[%s3278_s20 + $0x170] sm:$0xff] }
  0x3d   : > { %458 = vst [vmem:[%s3283_s12 + $0xe0] sm:$0xff] %v457_v28  ;;  %460 = vst [vmem:[%s3283_s12 + $0xe8] sm:$0xff] %v459_v29  ;;  %v463_v31 = vld [vmem:[%s3278_s20 + $0x178] sm:$0xff] }
  0x3e   : > { %462 = vst [vmem:[%s3283_s12 + $0xf0] sm:$0xff] %v461_v30  ;;  %464 = vst [vmem:[%s3283_s12 + $0xf8] sm:$0xff] %v463_v31 }
  0x3f PF: > { %470 = sbr.rel (!%p3239_p8) target bundleno = 70 (0x46), region = 70  ;;  %s472_s14 = sand.u32 (%p3239_p8), 1, %s3094_s29  }
  0x40   : > { %s2737_s19 = sshll.u32 (%p3239_p8), %s4380_s17, 4  ;;  %s2653_s24 = sshll.u32 (%p3239_p8), %s472_s14, 5 }
  0x41   : > { %s481_s16 = scalar_lea.vmem (%p3239_p8), %s4348_s1, %s2737_s19  ;;  %s474_s0 = scalar_lea.vmem (%p3239_p8), [#allocation3], %s2653_s24 }
  0x42   : > { %v515_v32 = vld [vmem:[%s481_s16] sm:$0xff] (%p3239_p8)  ;;  %v517_v33 = vld [vmem:[%s481_s16 + $0x8] sm:$0xff] (%p3239_p8) }
  0x43   : > { %v519_v34 = vld [vmem:[%s481_s16 + $0x100] sm:$0xff] (%p3239_p8)  ;;  %516 = vst [vmem:[%s474_s0] sm:$0xff] (%p3239_p8), %v515_v32  ;;  %518 = vst [vmem:[%s474_s0 + $0x8] sm:$0xff] (%p3239_p8), %v517_v33  ;;  %v521_v35 = vld [vmem:[%s481_s16 + $0x108] sm:$0xff] (%p3239_p8) }
  0x44   : > { %520 = vst [vmem:[%s474_s0 + $0x10] sm:$0xff] (%p3239_p8), %v519_v34  ;;  %522 = vst [vmem:[%s474_s0 + $0x18] sm:$0xff] (%p3239_p8), %v521_v35 }
  0x46 PF: > { %528 = sbr.rel (!%p3254_p13) target bundleno = 77 (0x4d), region = 108  ;;  %s530_s17 = sand.u32 (%p3254_p13), 1, %s3086_s28  }
  0x47   : > { %s2740_s20 = sshll.u32 (%p3254_p13), %s4384_s22, 4  ;;  %s2658_s23 = sshll.u32 (%p3254_p13), %s530_s17, 5 }
  0x48   : > { %s539_s19 = scalar_lea.vmem (%p3254_p13), %s4349_s2, %s2740_s20  ;;  %s532_s24 = scalar_lea.vmem (%p3254_p13), [#allocation4], %s2658_s23 }
  0x49   : > { %v573_v36 = vld [vmem:[%s539_s19] sm:$0xff] (%p3254_p13)  ;;  %v575_v37 = vld [vmem:[%s539_s19 + $0x8] sm:$0xff] (%p3254_p13) }
  0x4a   : > { %v577_v38 = vld [vmem:[%s539_s19 + $0x100] sm:$0xff] (%p3254_p13)  ;;  %574 = vst [vmem:[%s532_s24] sm:$0xff] (%p3254_p13), %v573_v36  ;;  %576 = vst [vmem:[%s532_s24 + $0x8] sm:$0xff] (%p3254_p13), %v575_v37  ;;  %v579_v39 = vld [vmem:[%s539_s19 + $0x108] sm:$0xff] (%p3254_p13) }
  0x4b   : > { %578 = vst [vmem:[%s532_s24 + $0x10] sm:$0xff] (%p3254_p13), %v577_v38  ;;  %580 = vst [vmem:[%s532_s24 + $0x18] sm:$0xff] (%p3254_p13), %v579_v39 }
  0x4d PF: > { %p2662_p1 = scmp.ge.s32.totalorder %s3114_s11, 1  ;;  %p585_p2 = scmp.lt.s32.totalorder %s3114_s11, 3 }
  0x4f   : > { %p586_p3 = pnand %p2662_p1, %p585_p2 }
  0x50   : > { %s592_s0 = sand.u32 (!%p586_p3), 1, %s3098_s4   ;;  %s599_s15 = sand.u32 (!%p586_p3), 1, %s3090_s3   ;;  %vm955_vm0 = vcmask (!%p586_p3), 1040384   ;;  %vm956_vm1 = vsmask.f32 (!%p586_p3), 256  ;;  %vm1319_vm3 = vcmask (!%p586_p3), 1046528  }
  0x51   : > { %589 = sbr.rel (%p586_p3) target bundleno = 627 (0x273), region = 146  ;;  %s3363_s22 = sshll.u32 (!%p586_p3), %s592_s0, 8  ;;  %vm3387_vm2 = vmand (!%p586_p3), %vm955_vm0, %vm956_vm1  ;;  %vm998_vm4 = vsmask.f32 (!%p586_p3), 7424  ;;  %vm1545_vm5 = vcmask (!%p586_p3), 1045504   ;;  %vm1420_vm6 = vcmask (!%p586_p3), 31744  }
  0x52   : > { %s3367_s25 = scalar_lea.vmem (!%p586_p3), [#allocation2], %s3363_s22  ;;  %s2664_s26 = sshll.u32 (!%p586_p3), %s599_s15, 5  ;;  %vm1461_vm7 = vcmask (!%p586_p3), 64512   ;;  %vm1512_vm8 = vcmask (!%p586_p3), 97280   ;;  %vm2091_vm9 = vcmask (!%p586_p3), 261120  }
  0x53   : > { %v677_v40 = vld [vmem:[%s3367_s25] sm:$0xff] (!%p586_p3)  ;;  %v678_v41 = vld [vmem:[%s3367_s25 + $0x8] sm:$0xff] (!%p586_p3)  ;;  %v679_v42 = vld [vmem:[%s3367_s25 + $0x10] sm:$0xff] (!%p586_p3)  ;;  %p731_p7 = scmp.gt.s32.totalorder (!%p586_p3), %s3106_s9, 0  ;;  %s3377_s4 = scalar_lea.vmem (!%p586_p3), [#allocation3], %s2664_s26 }
  0x54   : > { %v709_v43 = vpack.c.bf16 (!%p586_p3), %v678_v41, %v677_v40  ;;  %v680_v44 = vld [vmem:[%s3367_s25 + $0x18] sm:$0xff] (!%p586_p3)  ;;  %v683_v45 = vld [vmem:[%s3367_s25 + $0x30] sm:$0xff] (!%p586_p3)  ;;  %v681_v49 = vld [vmem:[%s3367_s25 + $0x20] sm:$0xff] (!%p586_p3)  ;;  %s3116_s19 = smov (!%p586_p3), 8   ;;  %s3117_s26 = smov (!%p586_p3), 4  }
  0x55   : > { %v684_v46 = vld [vmem:[%s3367_s25 + $0x38] sm:$0xff] (!%p586_p3)  ;;  %v710_v47 = vpack.c.bf16 (!%p586_p3), %v680_v44, %v679_v42  ;;  %v3380_v52 = vld [vmem:[%s3377_s4] sm:$0xff] (!%p586_p3)  ;;  %v3383_v53 = vld [vmem:[%s3377_s4 + $0x8] sm:$0xff] (!%p586_p3)  ;;  %p756_p9 = scmp.lt.s32.totalorder (!%p586_p3), %s3106_s9, 1  ;;  %p2722_p11 = scmp.ne.s32.totalorder (!%p586_p3), %s3106_s9, 0 }
  0x56   : > { %v712_v48 = vpack.c.bf16 (!%p586_p3), %v684_v46, %v683_v45  ;;  %v783_v50 = vshrl.u32 (!%p586_p3), %v709_v43, 16  ;;  %v786_v51 = vshll.u32 (!%p586_p3), %v709_v43, 16  ;;  %v682_v54 = vld [vmem:[%s3367_s25 + $0x28] sm:$0xff] (!%p586_p3)  ;;  %v687_v59 = vld [vmem:[%s3367_s25 + $0x50] sm:$0xff] (!%p586_p3)  ;;  %v688_v60 = vld [vmem:[%s3367_s25 + $0x58] sm:$0xff] (!%p586_p3)  ;;  %v729_v1 = vpack.c.bf16 (!%p586_p3), %v3383_v53, %v3380_v52 }
  0x57   : > { %v790_v56 = vshrl.u32 (!%p586_p3), %v710_v47, 16  ;;  %v793_v57 = vshll.u32 (!%p586_p3), %v710_v47, 16  ;;  %v3395_v63 = vpack.c.bf16 (!%p586_p3), %v682_v54, %v681_v49  ;;  %v3405_v6 = vpack.c.bf16 (!%p586_p3), %v688_v60, %v687_v59  ;;  %v685_v35 = vld [vmem:[%s3367_s25 + $0x40] sm:$0xff] (!%p586_p3)  ;;  %v686_v40 = vld [vmem:[%s3367_s25 + $0x48] sm:$0xff] (!%p586_p3)  ;;  %v691_v41 = vld [vmem:[%s3367_s25 + $0x70] sm:$0xff] (!%p586_p3) }
  0x58   : > { %s732_s3 = scalar_select %p731_p7, 1, 0  ;;  %v804_v58 = vshrl.u32 %v712_v48, 16  ;;  %v785_v61 = vrot.slane %v783_v50, 7  ;;  %v807_v62 = vshll.u32 %v712_v48, 16  ;;  %v692_v42 = vld [vmem:[%s3367_s25 + $0x78] sm:$0xff]  ;;  %v713_v54 = vpack.c.bf16 %v686_v40, %v685_v35 }
  0x59   : > { %v792_v0 = vrot.slane %v790_v56, 7  ;;  %v797_v5 = vshrl.u32 %v3395_v63, 16  ;;  %v800_v22 = vshll.u32 %v3395_v63, 16  ;;  %v818_v39 = vshrl.u32 %v3405_v6, 16  ;;  %v3470_v52 = vld [vmem:[%s4352_s5] sm:$0x3f]  }
  0x5a   : > { %s3391_s16 = scvt.s32.f32 %s732_s3  ;;  %v806_v2 = vrot.slane %v804_v58, 7  ;;  %v788_v3 = vor.u32 %v786_v51, %v785_v61  ;;  %v979_v4 = vsel %vm3387_vm2, %v785_v61, 0  ;;  %v3462_v51 = vld [vmem:[%s4352_s5 + $0x8] sm:$0x3f]   ;;  %v3465_v56 = vpack.c.bf16 %v692_v42, %v691_v41  ;;  %2963 = vmatprep.subr.msk.bf16.mxu0 %vm1545_vm5, %v3470_v52 }
  0x5b   : > { %v1324_v7 = vrot.slane %v979_v4, 1  ;;  %v795_v8 = vor.u32 %v793_v57, %v792_v0  ;;  %v980_v9 = vsel %vm3387_vm2, %v792_v0, 0  ;;  %v1019_v10 = vshll.u32 %v979_v4, 16  ;;  %2962 = vmatprep.subr.msk.bf16.mxu1 %vm1545_vm5, %v3462_v51  ;;  %v690_v40 = vld [vmem:[%s3367_s25 + $0x68] sm:$0xff] }
  0x5c   : > { %s736_s17 = sshrl.u32 %s3391_s16, 16  ;;  %p735_p8 = scmp.ne.f32.partialorder %s3391_s16, %s3391_s16  ;;  %v3411_v11 = vsel %vm3387_vm2, 0, %v788_v3  ;;  %v1327_v12 = vrot.slane %v980_v9, 1  ;;  %v1031_v13 = vshll.u32 %v980_v9, 16  ;;  %v809_v14 = vor.u32 %v807_v62, %v806_v2 }
  0x5d   : > { %s737_s20 = sand.u32 1, %s736_s17  ;;  %v1323_v15 = vrot.slane %v3411_v11, 1  ;;  %v3417_v16 = vsel %vm3387_vm2, 0, %v795_v8  ;;  %v1012_v17 = vshrl.u32 %v3411_v11, 16  ;;  %v1014_v18 = vshll.u32 %v3411_v11, 16  ;;  %s606_s17 = sand.u32 1, %s3082_s27  }
  0x5e   : > { %s738_s23 = sadd.s32 32767, %s737_s20  ;;  %v1326_v19 = vrot.slane %v3417_v16, 1  ;;  %v1024_v20 = vshrl.u32 %v3417_v16, 16  ;;  %v1026_v21 = vshll.u32 %v3417_v16, 16  ;;  %v1021_v25 = vrot.slane %v1019_v10, 1  ;;  %s3630_s27 = sshll.u32 %s606_s17, 5 }
  0x5f   : > { %s739_s12 = sadd.s32 %s738_s23, %s3391_s16  ;;  %v1325_v23 = vsel %vm1319_vm3, %v1323_v15, %v1324_v7  ;;  %v1016_v24 = vrot.slane %v1014_v18, 1  ;;  %v3431_v26 = vsel %vm3387_vm2, 0, %v809_v14  ;;  %v1033_v29 = vrot.slane %v1031_v13, 1 }
  0x60   : > { %s740_s14 = sand.u32 4294901760, %s739_s12  ;;  %1382 = vrot.lane.b32.xlu0 %v1325_v23, %s3116_s19  ;;  %v1328_v27 = vsel %vm1319_vm3, %v1326_v19, %v1327_v12  ;;  %v1028_v28 = vrot.slane %v1026_v21, 1  ;;  %v982_v30 = vsel %vm3387_vm2, %v806_v2, 0  ;;  %v1048_v32 = vshrl.u32 %v3431_v26, 16 }
  0x61   : > { %s4388_s14 = smov (%p735_p8, %s740_s14), 2143289344  ;;  %1384 = vrot.lane.b32.xlu1 %v1328_v27, %s3116_s19  ;;  %v1017_v31 = vor.u32 %v1016_v24, %v1012_v17  ;;  %v1050_v33 = vshll.u32 %v3431_v26, 16  ;;  %v799_v34 = vrot.slane %v797_v5, 7  ;;  %v1055_v37 = vshll.u32 %v982_v30, 16 }
  0x62   : > { %s743_s24 = sshrl.u32 %s4388_s14, 16  ;;  %v1029_v36 = vor.u32 %v1028_v28, %v1024_v20  ;;  %v1332_v38 = vrot.slane %v3431_v26, 1  ;;  %v1333_v46 = vrot.slane %v982_v30, 1  ;;  %v820_v59 = vrot.slane %v818_v39, 7  ;;  %v689_v39 = vld [vmem:[%s3367_s25 + $0x60] sm:$0xff] }
  0x63   : > { %s744_s0 = sshll.u32 %s743_s24, 16  ;;  %v1022_v43 = vsel %vm998_vm4, %v1017_v31, %v1021_v25  ;;  %v1052_v45 = vrot.slane %v1050_v33, 1  ;;  %v802_v49 = vor.u32 %v800_v22, %v799_v34  ;;  %v981_v50 = vsel %vm3387_vm2, %v799_v34, 0 }
  0x64   : > { %s3441_s15 = sor.u32 %s744_s0, %s743_s24  ;;  %1241 = vrot.lane.b32.xlu0 %v1022_v43, %s3117_s26  ;;  %v1034_v47 = vsel %vm998_vm4, %v1029_v36, %v1033_v29  ;;  %v1057_v61 = vrot.slane %v1055_v37, 1  ;;  %v1043_v63 = vshll.u32 %v981_v50, 16  ;;  %v1330_v2 = vrot.slane %v981_v50, 1 }
  0x65   : > { %v746_v44 = vstv %s3441_s15  ;;  %1243 = vrot.lane.b32.xlu1 %v1034_v47, %s3117_s26  ;;  %v3474_v58 = vsel %vm3387_vm2, 0, %v802_v49  ;;  %v1053_v60 = vor.u32 %v1052_v45, %v1048_v32  ;;  %v821_v3 = vshll.u32 %v3405_v6, 16  ;;  %s757_s23 = scalar_select %p756_p9, 1, 0  ;;  %v696_v47 = vld [vmem:[%s3367_s25 + $0x98] sm:$0xff] }
  0x66   : > { %v748_v48 = vmul.bf16 %v746_v44, %v729_v1  ;;  %v1038_v62 = vshll.u32 %v3474_v58, 16  ;;  %v3482_v1 = vsel %vm1319_vm3, %v1332_v38, %v1333_v46  ;;  %v1036_v4 = vshrl.u32 %v3474_v58, 16  ;;  %v695_v46 = vld [vmem:[%s3367_s25 + $0x90] sm:$0xff] }
  0x67   : > { %v984_v7 = vsel %vm3387_vm2, %v820_v59, 0  ;;  %v811_v8 = vshrl.u32 %v713_v54, 16  ;;  %v823_v12 = vor.u32 %v821_v3, %v820_v59  ;;  %v814_v13 = vshll.u32 %v713_v54, 16  ;;  %s3527_s12 = scvt.s32.f32 %s757_s23  ;;  %v694_v3 = vld [vmem:[%s3367_s25 + $0x88] sm:$0xff] }
  0x68   : > { %v776_v53 = vshrl.u32 %v748_v48, 16  ;;  %v779_v57 = vshll.u32 %v748_v48, 16  ;;  %v1040_v5 = vrot.slane %v1038_v62, 1  ;;  %v1058_v17 = vsel %vm998_vm4, %v1053_v60, %v1057_v61 }
  0x69   : > { %v1329_v18 = vrot.slane %v3474_v58, 1  ;;  %v3499_v19 = vsel %vm3387_vm2, 0, %v823_v12  ;;  %v1079_v20 = vshll.u32 %v984_v7, 16  ;;  %v813_v21 = vrot.slane %v811_v8, 7  ;;  %s761_s14 = sshrl.u32 %s3527_s12, 16  ;;  %p760_p10 = scmp.ne.f32.partialorder %s3527_s12, %s3527_s12 }
  0x6a   : > { %v778_v0 = vrot.slane %v776_v53, 7  ;;  %v1045_v25 = vrot.slane %v1043_v63, 1  ;;  %v1041_v28 = vor.u32 %v1040_v5, %v1036_v4  ;;  %v1074_v29 = vshll.u32 %v3499_v19, 16  ;;  %s3553_s24 = sand.u32 1, %s761_s14 }
  0x6b   : > { %v816_v30 = vor.u32 %v814_v13, %v813_v21  ;;  %v1072_v33 = vshrl.u32 %v3499_v19, 16  ;;  %v983_v34 = vsel %vm3387_vm2, %v813_v21, 0  ;;  %v1331_v35 = vsel %vm1319_vm3, %v1329_v18, %v1330_v2  ;;  %v693_v2 = vld [vmem:[%s3367_s25 + $0x80] sm:$0xff]  ;;  %s763_s0 = sadd.s32 32767, %s3553_s24 }
  0x6c   : > { %v781_v9 = vor.u32 %v779_v57, %v778_v0  ;;  %v978_v10 = vsel %vm3387_vm2, %v778_v0, 0  ;;  %v1076_v36 = vrot.slane %v1074_v29, 1  ;;  %v1081_v37 = vrot.slane %v1079_v20, 1  ;;  %s3585_s3 = sadd.s32 %s763_s0, %s3527_s12  ;;  %s3660_s12 = scalar_lea.vmem [#allocation4], %s3630_s27 }
  0x6d   : > { %v1321_v14 = vrot.slane %v978_v10, 1  ;;  %v1007_v15 = vshll.u32 %v978_v10, 16  ;;  %v3515_v38 = vsel %vm3387_vm2, 0, %v816_v30  ;;  %v1338_v43 = vrot.slane %v3499_v19, 1  ;;  %s765_s16 = sand.u32 4294901760, %s3585_s3 }
  0x6e   : > { %v3495_v6 = vsel %vm3387_vm2, 0, %v781_v9  ;;  %v1062_v42 = vshll.u32 %v3515_v38, 16  ;;  %v1339_v45 = vrot.slane %v984_v7, 1  ;;  %v1046_v48 = vsel %vm998_vm4, %v1041_v28, %v1045_v25  ;;  %s4390_s16 = smov (%p760_p10, %s765_s16), 2143289344 }
  0x6f   : > { %v1320_v22 = vrot.slane %v3495_v6, 1  ;;  %v1000_v23 = vshrl.u32 %v3495_v6, 16  ;;  %v1002_v24 = vshll.u32 %v3495_v6, 16  ;;  %v1009_v27 = vrot.slane %v1007_v15, 1  ;;  %s768_s20 = sshrl.u32 %s4390_s16, 16 }
  0x70   : > { %v1067_v49 = vshll.u32 %v983_v34, 16  ;;  %v1336_v50 = vrot.slane %v983_v34, 1  ;;  %v832_v54 = vshrl.u32 %v3465_v56, 16  ;;  %v1077_v57 = vor.u32 %v1076_v36, %v1072_v33  ;;  %s769_s23 = sshll.u32 %s768_s20, 16 }
  0x71   : > { %v1322_v31 = vsel %vm1319_vm3, %v1320_v22, %v1321_v14  ;;  %v1004_v32 = vrot.slane %v1002_v24, 1  ;;  %v835_v59 = vshll.u32 %v3465_v56, 16  ;;  %v715_v60 = vpack.c.bf16 %v690_v40, %v689_v39  ;;  %s3666_s14 = sor.u32 %s769_s23, %s768_s20 }
  0x72   : > { %1380 = vrot.lane.b32.xlu1 %v1322_v31, %s3116_s19  ;;  %v1060_v61 = vshrl.u32 %v3515_v38, 16  ;;  %v1064_v62 = vrot.slane %v1062_v42, 1  ;;  %v834_v63 = vrot.slane %v832_v54, 7  ;;  %v718_v0 = vpack.c.bf16 %v696_v47, %v695_v46  ;;  %v700_v46 = vld [vmem:[%s3367_s25 + $0xb8] sm:$0xff]  ;;  %v697_v54 = vld [vmem:[%s3367_s25 + $0xa0] sm:$0xff] }
  0x73   : > { %v1005_v41 = vor.u32 %v1004_v32, %v1000_v23  ;;  %v1340_v4 = vsel %vm1319_vm3, %v1338_v43, %v1339_v45  ;;  %v1335_v5 = vrot.slane %v3515_v38, 1  ;;  %v825_v56 = vshrl.u32 %v715_v60, 16  ;;  %v699_v45 = vld [vmem:[%s3367_s25 + $0xb0] sm:$0xff] }
  0x74   : > { %v828_v7 = vshll.u32 %v715_v60, 16  ;;  %v837_v8 = vor.u32 %v835_v59, %v834_v63  ;;  %v986_v9 = vsel %vm3387_vm2, %v834_v63, 0  ;;  %v860_v10 = vshrl.u32 %v718_v0, 16  ;;  %v704_v63 = vld [vmem:[%s3367_s25 + $0xd8] sm:$0xff] }
  0x75   : > { %v1010_v53 = vsel %vm998_vm4, %v1005_v41, %v1009_v27  ;;  %v863_v12 = vshll.u32 %v718_v0, 16  ;;  %v1082_v13 = vsel %vm998_vm4, %v1077_v57, %v1081_v37  ;;  %v1069_v14 = vrot.slane %v1067_v49, 1 }
  0x76   : > { %1239 = vrot.lane.b32.xlu0 %v1010_v53, %s3117_s26  ;;  %1247 = vrot.lane.b32.xlu1 %v1058_v17, %s3117_s26  ;;  %v827_v15 = vrot.slane %v825_v56, 7  ;;  %v717_v17 = vpack.c.bf16 %v694_v3, %v693_v2  ;;  %v1065_v18 = vor.u32 %v1064_v62, %v1060_v61  ;;  %v3545_v20 = vsel %vm3387_vm2, 0, %v837_v8  ;;  %v698_v53 = vld [vmem:[%s3367_s25 + $0xa8] sm:$0xff]  ;;  %v703_v62 = vld [vmem:[%s3367_s25 + $0xd0] sm:$0xff] }
  0x77   : > { %v1103_v21 = vshll.u32 %v986_v9, 16  ;;  %v862_v22 = vrot.slane %v860_v10, 7  ;;  %v1337_v23 = vsel %vm1319_vm3, %v1335_v5, %v1336_v50  ;;  %v1096_v24 = vshrl.u32 %v3545_v20, 16 }
  0x78   : > { %v1098_v25 = vshll.u32 %v3545_v20, 16  ;;  %v830_v27 = vor.u32 %v828_v7, %v827_v15  ;;  %v985_v28 = vsel %vm3387_vm2, %v827_v15, 0  ;;  %v1344_v29 = vrot.slane %v3545_v20, 1 }
  0x79   : > { %v865_v30 = vor.u32 %v863_v12, %v862_v22  ;;  %v1091_v33 = vshll.u32 %v985_v28, 16  ;;  %v853_v34 = vshrl.u32 %v717_v17, 16  ;;  %v1070_v36 = vsel %vm998_vm4, %v1065_v18, %v1069_v14 }
  0x7a   : > { %1245 = vrot.lane.b32.xlu0 %v1046_v48, %s3117_s26  ;;  %1388 = vrot.lane.b32.xlu1 %v3482_v1, %s3116_s19  ;;  %v1345_v1 = vrot.slane %v986_v9, 1  ;;  %v1100_v31 = vrot.slane %v1098_v25, 1  ;;  %v3557_v32 = vsel %vm3387_vm2, 0, %v830_v27  ;;  %v1105_v37 = vrot.slane %v1103_v21, 1  ;;  %v701_v27 = vld [vmem:[%s3367_s25 + $0xc0] sm:$0xff] }
  0x7b   : > { %v1086_v39 = vshll.u32 %v3557_v32, 16  ;;  %v990_v40 = vsel %vm3387_vm2, %v862_v22, 0  ;;  %v1084_v42 = vshrl.u32 %v3557_v32, 16  ;;  %v3568_v43 = vsel %vm3387_vm2, 0, %v865_v30 }
  0x7c   : > { %v1101_v41 = vor.u32 %v1100_v31, %v1096_v24  ;;  %v1346_v48 = vsel %vm1319_vm3, %v1344_v29, %v1345_v1  ;;  %v1342_v49 = vrot.slane %v985_v28, 1  ;;  %v1146_v50 = vshll.u32 %v3568_v43, 16  ;;  %v702_v28 = vld [vmem:[%s3367_s25 + $0xc8] sm:$0xff] }
  0x7d   : > { %v1088_v47 = vrot.slane %v1086_v39, 1  ;;  %v1093_v57 = vrot.slane %v1091_v33, 1  ;;  %v1341_v59 = vrot.slane %v3557_v32, 1  ;;  %v1151_v60 = vshll.u32 %v990_v40, 16 }
  0x7e   : > { %1386 = vrot.lane.b32.xlu0 %v1331_v35, %s3116_s19  ;;  %1251 = vrot.lane.b32.xlu1 %v1082_v13, %s3117_s26  ;;  %v856_v35 = vshll.u32 %v717_v17, 16  ;;  %v855_v61 = vrot.slane %v853_v34, 7  ;;  %v1106_v0 = vsel %vm998_vm4, %v1101_v41, %v1105_v37  ;;  %v1144_v2 = vshrl.u32 %v3568_v43, 16 }
  0x7f   : > { %v1148_v3 = vrot.slane %v1146_v50, 1  ;;  %v720_v5 = vpack.c.bf16 %v700_v46, %v699_v45  ;;  %v1089_v56 = vor.u32 %v1088_v47, %v1084_v42  ;;  %v719_v9 = vpack.c.bf16 %v698_v53, %v697_v54 }
  0x80   : > { %v858_v7 = vor.u32 %v856_v35, %v855_v61  ;;  %v3589_v8 = vsel %vm3387_vm2, %v855_v61, 0  ;;  %v1357_v12 = vrot.slane %v990_v40, 1  ;;  %v722_v13 = vpack.c.bf16 %v704_v63, %v703_v62 }
  0x81   : > { %v1139_v10 = vshll.u32 %v3589_v8, 16  ;;  %v1343_v14 = vsel %vm1319_vm3, %v1341_v59, %v1342_v49  ;;  %v874_v17 = vshrl.u32 %v720_v5, 16  ;;  %v877_v18 = vshll.u32 %v720_v5, 16 }
  0x82   : > { %1249 = vrot.lane.b32.xlu0 %v1070_v36, %s3117_s26  ;;  %1392 = vrot.lane.b32.xlu1 %v1340_v4, %s3116_s19  ;;  %v1356_v4 = vrot.slane %v3568_v43, 1  ;;  %v3598_v15 = vsel %vm3387_vm2, 0, %v858_v7  ;;  %v1149_v21 = vor.u32 %v1148_v3, %v1144_v2  ;;  %v1153_v22 = vrot.slane %v1151_v60, 1 }
  0x83   : > { %v1132_v24 = vshrl.u32 %v3598_v15, 16  ;;  %v1134_v25 = vshll.u32 %v3598_v15, 16  ;;  %v1094_v29 = vsel %vm998_vm4, %v1089_v56, %v1093_v57  ;;  %v876_v1 = vrot.slane %v874_v17, 7 }
  0x84   : > { %v867_v30 = vshrl.u32 %v719_v9, 16  ;;  %v870_v31 = vshll.u32 %v719_v9, 16  ;;  %v1358_v34 = vsel %vm1319_vm3, %v1356_v4, %v1357_v12  ;;  %v888_v36 = vshrl.u32 %v722_v13, 16 }
  0x85   : > { %v1136_v33 = vrot.slane %v1134_v25, 1  ;;  %v879_v37 = vor.u32 %v877_v18, %v876_v1  ;;  %v992_v39 = vsel %vm3387_vm2, %v876_v1, 0  ;;  %v721_v41 = vpack.c.bf16 %v702_v28, %v701_v27  ;;  %v750_v28 = vld [vmem:[%s3660_s12] sm:$0xff] }
  0x86   : > { %1390 = vrot.lane.b32.xlu0 %v1337_v23, %s3116_s19  ;;  %1255 = vrot.lane.b32.xlu1 %v1106_v0, %s3117_s26  ;;  %v1141_v23 = vrot.slane %v1139_v10, 1  ;;  %v869_v40 = vrot.slane %v867_v30, 7  ;;  %v1154_v42 = vsel %vm998_vm4, %v1149_v21, %v1153_v22  ;;  %v1175_v45 = vshll.u32 %v992_v39, 16 }
  0x87   : > { %v1137_v35 = vor.u32 %v1136_v33, %v1132_v24  ;;  %v891_v46 = vshll.u32 %v722_v13, 16  ;;  %v3622_v47 = vsel %vm3387_vm2, 0, %v879_v37  ;;  %v890_v54 = vrot.slane %v888_v36, 7 }
  0x88   : > { %v872_v49 = vor.u32 %v870_v31, %v869_v40  ;;  %v991_v50 = vsel %vm3387_vm2, %v869_v40, 0  ;;  %v1353_v53 = vrot.slane %v3598_v15, 1  ;;  %v1354_v57 = vrot.slane %v3589_v8, 1  ;;  %v706_v40 = vld [vmem:[%s3367_s25 + $0xe8] sm:$0xff] }
  0x89   : > { %v1170_v59 = vshll.u32 %v3622_v47, 16  ;;  %v1142_v60 = vsel %vm998_vm4, %v1137_v35, %v1141_v23  ;;  %v1363_v62 = vrot.slane %v992_v39, 1  ;;  %v881_v63 = vshrl.u32 %v721_v41, 16  ;;  %v705_v23 = vld [vmem:[%s3367_s25 + $0xe0] sm:$0xff] }
  0x8a   : > { %1253 = vrot.lane.b32.xlu0 %v1094_v29, %s3117_s26  ;;  %1396 = vrot.lane.b32.xlu1 %v1346_v48, %s3116_s19  ;;  %v1168_v48 = vshrl.u32 %v3622_v47, 16  ;;  %v3636_v61 = vsel %vm3387_vm2, 0, %v872_v49  ;;  %v1163_v5 = vshll.u32 %v991_v50, 16  ;;  %v1177_v56 = vrot.slane %v1175_v45, 1  ;;  %v751_v29 = vld [vmem:[%s3660_s12 + $0x8] sm:$0xff] }
  0x8b   : > { %v1172_v0 = vrot.slane %v1170_v59, 1  ;;  %v1156_v2 = vshrl.u32 %v3636_v61, 16  ;;  %v1158_v3 = vshll.u32 %v3636_v61, 16  ;;  %v1362_v7 = vrot.slane %v3622_v47, 1 }
  0x8c   : > { %v893_v8 = vor.u32 %v891_v46, %v890_v54  ;;  %v3645_v9 = vsel %vm3387_vm2, %v890_v54, 0  ;;  %v1359_v12 = vrot.slane %v3636_v61, 1  ;;  %v1360_v13 = vrot.slane %v991_v50, 1  ;;  %v727_v50 = vld [vmem:[%s3377_s4 + $0x10] sm:$0xff]  ;;  %v728_v54 = vld [vmem:[%s3377_s4 + $0x18] sm:$0xff] }
  0x8d   : > { %v1173_v10 = vor.u32 %v1172_v0, %v1168_v48  ;;  %v1160_v4 = vrot.slane %v1158_v3, 1  ;;  %v883_v18 = vrot.slane %v881_v63, 7  ;;  %v884_v21 = vshll.u32 %v721_v41, 16  ;;  %v707_v41 = vld [vmem:[%s3367_s25 + $0xf0] sm:$0xff] }
  0x8e   : > { %1394 = vrot.lane.b32.xlu0 %v1343_v14, %s3116_s19  ;;  %1263 = vrot.lane.b32.xlu1 %v1154_v42, %s3117_s26  ;;  %v1355_v14 = vsel %vm1319_vm3, %v1353_v53, %v1354_v57  ;;  %v3653_v17 = vsel %vm3387_vm2, 0, %v893_v8  ;;  %v1165_v24 = vrot.slane %v1163_v5, 1  ;;  %v1199_v27 = vshll.u32 %v3645_v9, 16  ;;  %v708_v42 = vld [vmem:[%s3367_s25 + $0xf8] sm:$0xff] }
  0x8f   : > { %v1161_v22 = vor.u32 %v1160_v4, %v1156_v2  ;;  %v1194_v25 = vshll.u32 %v3653_v17, 16  ;;  %v1178_v1 = vsel %vm998_vm4, %v1173_v10, %v1177_v56  ;;  %v1192_v30 = vshrl.u32 %v3653_v17, 16  ;;  %v752_v4 = vld [vmem:[%s3660_s12 + $0x10] sm:$0xff] }
  0x90   : > { %v886_v31 = vor.u32 %v884_v21, %v883_v18  ;;  %v3672_v33 = vsel %vm3387_vm2, %v883_v18, 0  ;;  %v1361_v36 = vsel %vm1319_vm3, %v1359_v12, %v1360_v13  ;;  %v1369_v39 = vrot.slane %v3645_v9, 1  ;;  %v753_v12 = vld [vmem:[%s3660_s12 + $0x18] sm:$0xff] }
  0x91   : > { %v1196_v37 = vrot.slane %v1194_v25, 1  ;;  %v1187_v45 = vshll.u32 %v3672_v33, 16  ;;  %v754_v46 = vpack.c.bf16 %v751_v29, %v750_v28  ;;  %v771_v49 = vstv %s3666_s14 }
  0x92   : > { %1261 = vrot.lane.b32.xlu0 %v1142_v60, %s3117_s26  ;;  %1404 = vrot.lane.b32.xlu1 %v1358_v34, %s3116_s19  ;;  %v1364_v34 = vsel %vm1319_vm3, %v1362_v7, %v1363_v62  ;;  %v3683_v35 = vsel %vm3387_vm2, 0, %v886_v31  ;;  %v1166_v53 = vsel %vm998_vm4, %v1161_v22, %v1165_v24  ;;  %v1201_v57 = vrot.slane %v1199_v27, 1 }
  0x93   : > { %v1180_v48 = vshrl.u32 %v3683_v35, 16  ;;  %v1182_v59 = vshll.u32 %v3683_v35, 16  ;;  %v1197_v60 = vor.u32 %v1196_v37, %v1192_v30  ;;  %v773_v62 = vmul.bf16 %v771_v49, %v754_v46 }
  0x94   : > { %v723_v63 = vpack.c.bf16 %v706_v40, %v705_v23  ;;  %v724_v0 = vpack.c.bf16 %v708_v42, %v707_v41  ;;  %v1368_v3 = vrot.slane %v3653_v17, 1  ;;  %v1366_v5 = vrot.slane %v3672_v33, 1 }
  0x95   : > { %v1184_v2 = vrot.slane %v1182_v59, 1  ;;  %v730_v56 = vpack.c.bf16 %v728_v54, %v727_v50  ;;  %v1189_v7 = vrot.slane %v1187_v45, 1  ;;  %v839_v8 = vshrl.u32 %v773_v62, 16 }
  0x96   : > { %1402 = vrot.lane.b32.xlu0 %v1355_v14, %s3116_s19  ;;  %1267 = vrot.lane.b32.xlu1 %v1178_v1, %s3117_s26  ;;  %v842_v9 = vshll.u32 %v773_v62, 16  ;;  %v895_v10 = vshrl.u32 %v723_v63, 16  ;;  %v898_v14 = vshll.u32 %v723_v63, 16  ;;  %v902_v18 = vshrl.u32 %v724_v0, 16 }
  0x97   : > { %v1185_v13 = vor.u32 %v1184_v2, %v1180_v48  ;;  %v905_v21 = vshll.u32 %v724_v0, 16  ;;  %v1202_v22 = vsel %vm998_vm4, %v1197_v60, %v1201_v57  ;;  %v841_v24 = vrot.slane %v839_v8, 7 }
  0x98   : > { %v897_v25 = vrot.slane %v895_v10, 7  ;;  %v749_v27 = vmul.bf16 %v746_v44, %v730_v56  ;;  %v1370_v28 = vsel %vm1319_vm3, %v1368_v3, %v1369_v39  ;;  %v904_v29 = vrot.slane %v902_v18, 7 }
  0x99   : > { %v755_v1 = vpack.c.bf16 %v753_v12, %v752_v4  ;;  %v1547_v30 = vsel %vm1545_vm5, %v3462_v51, 0  ;;  %v844_v31 = vor.u32 %v842_v9, %v841_v24  ;;  %v3708_v33 = vsel %vm3387_vm2, %v841_v24, 0 }
  0x9a   : > { %1265 = vrot.lane.b32.xlu0 %v1166_v53, %s3117_s26  ;;  %1408 = vrot.lane.b32.xlu1 %v1364_v34, %s3116_s19  ;;  %v900_v23 = vor.u32 %v898_v14, %v897_v25  ;;  %v995_v34 = vsel %vm3387_vm2, %v897_v25, 0  ;;  %v1190_v44 = vsel %vm998_vm4, %v1185_v13, %v1189_v7  ;;  %v1365_v37 = vrot.slane %v3683_v35, 1 }
  0x9b   : > { %2795 = vmatpush3.bf16.msra.mxu1 %v1547_v30  ;;  %v1115_v51 = vshll.u32 %v3708_v33, 16  ;;  %v907_v39 = vor.u32 %v905_v21, %v904_v29  ;;  %v3719_v40 = vsel %vm3387_vm2, 0, %v844_v31  ;;  %v1211_v42 = vshll.u32 %v995_v34, 16  ;;  %v3749_v21 = vld [vmem:[%s4352_s5 + $0x10] sm:$0x3f]  }
  0x9c   : > { %v3723_v41 = vsel %vm3387_vm2, 0, %v900_v23  ;;  %2964 = vmatprep.subr.msk.bf16.mxu1 %vm1545_vm5, %v3470_v52  ;;  %v1108_v45 = vshrl.u32 %v3719_v40, 16  ;;  %v1110_v46 = vshll.u32 %v3719_v40, 16  ;;  %v774_v57 = vmul.bf16 %v771_v49, %v755_v1 }
  0x9d   : > { %v1204_v50 = vshrl.u32 %v3723_v41, 16  ;;  %v1206_v54 = vshll.u32 %v3723_v41, 16  ;;  %v3735_v53 = vsel %vm3387_vm2, 0, %v907_v39  ;;  %v1117_v59 = vrot.slane %v1115_v51, 1 }
  0x9e   : > { %1406 = vrot.lane.b32.xlu0 %v1361_v36, %s3116_s19  ;;  %1271 = vrot.lane.b32.xlu1 %v1202_v22, %s3117_s26  ;;  %v996_v36 = vsel %vm3387_vm2, %v904_v29, 0  ;;  %v1112_v48 = vrot.slane %v1110_v46, 1  ;;  %v1218_v60 = vshll.u32 %v3735_v53, 16  ;;  %v1367_v63 = vsel %vm1319_vm3, %v1365_v37, %v1366_v5 }
  0x9f   : > { %v1223_v62 = vshll.u32 %v996_v36, 16  ;;  %v1208_v0 = vrot.slane %v1206_v54, 1  ;;  %v1213_v2 = vrot.slane %v1211_v42, 1  ;;  %v1216_v3 = vshrl.u32 %v3735_v53, 16 }
  0xa0   : > { %v1113_v56 = vor.u32 %v1112_v48, %v1108_v45  ;;  %v1371_v7 = vrot.slane %v3723_v41, 1  ;;  %v1372_v8 = vrot.slane %v995_v34, 1  ;;  %v1220_v49 = vrot.slane %v1218_v60, 1 }
  0xa1   : > { %v1209_v9 = vor.u32 %v1208_v0, %v1204_v50  ;;  %v1374_v10 = vrot.slane %v3735_v53, 1  ;;  %v846_v4 = vshrl.u32 %v749_v27, 16  ;;  %v849_v12 = vshll.u32 %v749_v27, 16 }
  0xa2   : > { %1269 = vrot.lane.b32.xlu0 %v1190_v44, %s3117_s26  ;;  %1412 = vrot.lane.b32.xlu1 %v1370_v28, %s3116_s19  ;;  %v1118_v13 = vsel %vm998_vm4, %v1113_v56, %v1117_v59  ;;  %v1225_v14 = vrot.slane %v1223_v62, 1  ;;  %v1375_v5 = vrot.slane %v996_v36, 1  ;;  %v909_v18 = vshrl.u32 %v774_v57, 16 }
  0xa3   : > { %v1214_v22 = vsel %vm998_vm4, %v1209_v9, %v1213_v2  ;;  %v1221_v24 = vor.u32 %v1220_v49, %v1216_v3  ;;  %v848_v25 = vrot.slane %v846_v4, 7  ;;  %v912_v28 = vshll.u32 %v774_v57, 16 }
  0xa4   : > { %v1373_v27 = vsel %vm1319_vm3, %v1371_v7, %v1372_v8  ;;  %v911_v29 = vrot.slane %v909_v18, 7  ;;  %v1720_v1 = vsel %vm1545_vm5, %v3470_v52, 0  ;;  %v1376_v23 = vsel %vm1319_vm3, %v1374_v10, %v1375_v5 }
  0xa5   : > { %v851_v30 = vor.u32 %v849_v12, %v848_v25  ;;  %v988_v31 = vsel %vm3387_vm2, %v848_v25, 0  ;;  %2829 = vmatpush3.bf16.msra.mxu0 %v1720_v1  ;;  %v1347_v34 = vrot.slane %v3719_v40, 1  ;;  %v1348_v44 = vrot.slane %v3708_v33, 1 }
  0xa6   : > { %1410 = vrot.lane.b32.xlu0 %v1367_v63, %s3116_s19  ;;  %1257 = vrot.lane.b32.xlu1 %v1118_v13, %s3117_s26  ;;  %v914_v37 = vor.u32 %v912_v28, %v911_v29  ;;  %v1226_v52 = vsel %vm998_vm4, %v1221_v24, %v1225_v14  ;;  %v1127_v39 = vshll.u32 %v988_v31, 16  ;;  %v1351_v42 = vrot.slane %v988_v31, 1 }
  0xa7   : > { %2965 = vmatprep.subr.msk.bf16.mxu0 %vm1545_vm5, %v3749_v21  ;;  %v3768_v51 = vsel %vm3387_vm2, 0, %v851_v30  ;;  %v997_v46 = vsel %vm3387_vm2, %v911_v29, 0  ;;  %v1349_v54 = vsel %vm1319_vm3, %v1347_v34, %v1348_v44  ;;  %vm2128_vm10 = vcmask (!%p2722_p11), 253952  }
  0xa8   : > { %v1120_v36 = vshrl.u32 %v3768_v51, 16  ;;  %v1122_v45 = vshll.u32 %v3768_v51, 16  ;;  %v1350_v33 = vrot.slane %v3768_v51, 1  ;;  %v3777_v50 = vsel %vm3387_vm2, 0, %v914_v37 }
  0xa9   : > { %v1230_v48 = vshll.u32 %v3777_v50, 16  ;;  %v1129_v59 = vrot.slane %v1127_v39, 1  ;;  %v1228_v60 = vshrl.u32 %v3777_v50, 16  ;;  %v1235_v62 = vshll.u32 %v997_v46, 16 }
  0xaa   : > { %1273 = vrot.lane.b32.xlu0 %v1214_v22, %s3117_s26  ;;  %1414 = vrot.lane.b32.xlu1 %v1373_v27, %s3116_s19  ;;  %v1124_v57 = vrot.slane %v1122_v45, 1  ;;  %v1378_v63 = vrot.slane %v997_v46, 1  ;;  %v1352_v2 = vsel %vm1319_vm3, %v1350_v33, %v1351_v42  ;;  %v1377_v3 = vrot.slane %v3777_v50, 1 }
  0xab   : > { %v1232_v55 = vrot.slane %v1230_v48, 1  ;;  %v1237_v8 = vrot.slane %v1235_v62, 1 }
  0xac   : > { %v1125_v0 = vor.u32 %v1124_v57, %v1120_v36  ;;  %v1379_v49 = vsel %vm1319_vm3, %v1377_v3, %v1378_v63 }
  0xad   : > { %v1233_v7 = vor.u32 %v1232_v55, %v1228_v60 }
  0xae   : > { %1275 = vrot.lane.b32.xlu0 %v1226_v52, %s3117_s26  ;;  %1416 = vrot.lane.b32.xlu1 %v1376_v23, %s3116_s19  ;;  %v1130_v56 = vsel %vm998_vm4, %v1125_v0, %v1129_v59 }
  0xaf   : > { %v1238_v9 = vsel %vm998_vm4, %v1233_v7, %v1237_v8 }
  0xb2   : > { %1398 = vrot.lane.b32.xlu0 %v1349_v54, %s3116_s19  ;;  %1400 = vrot.lane.b32.xlu1 %v1352_v2, %s3116_s19 }
  0xb6   : > { %1259 = vrot.lane.b32.xlu0 %v1130_v56, %s3117_s26  ;;  %1418 = vrot.lane.b32.xlu1 %v1379_v49, %s3116_s19  ;;  %s3909_s19 = scalar_lea.vmem [#allocation5], %s3363_s22 }
  0xba   : > { %1277 = vrot.lane.b32.xlu0 %v1238_v9, %s3117_s26 }
  0xd2   : > { %v1383_v10 = vpop.permute.xlu0 %1382 }
  0xd3   : > { %v1385_v4 = vpop.permute.xlu1 %1384 }
  0xd6   : > { %v1242_v12 = vpop.permute.xlu0 %1241 }
  0xd7   : > { %v1424_v13 = vsel %vm1420_vm6, %v3411_v11, %v1242_v12  ;;  %v1244_v14 = vpop.permute.xlu1 %1243 }
  0xd8   : > { %v1426_v5 = vsel %vm1420_vm6, %v3417_v16, %v1244_v14  ;;  %v1465_v18 = vsel %vm1461_vm7, %v1424_v13, %v1383_v10  ;;  %v1896_v16 = vsel %vm1545_vm5, %v3749_v21, 0 }
  0xd9   : > { %2796 = vmatprep.mubr.msk.bf16.mxu1 %vm1512_vm8, %v1465_v18  ;;  %v1467_v22 = vsel %vm1461_vm7, %v1426_v5, %v1385_v4 }
  0xda   : > { %2797 = vmatmul.mubr.msk.bf16.vlgmr.msra.gmra.mrb[0].mxu1 %vm1512_vm8, %v1467_v22 }
  0xdb   : > { %2897 = vmatpush3.bf16.msra.mxu1 %v1720_v1 }
  0xe4   : > { %v1381_v24 = vpop.permute.xlu1 %1380 }
  0xe8   : > { %v1240_v25 = vpop.permute.xlu0 %1239  ;;  %v1248_v28 = vpop.permute.xlu1 %1247 }
  0xe9   : > { %v1422_v27 = vsel %vm1420_vm6, %v3495_v6, %v1240_v25  ;;  %v1430_v1 = vsel %vm1420_vm6, %v3431_v26, %v1248_v28 }
  0xea   : > { %v1463_v11 = vsel %vm1461_vm7, %v1422_v27, %v1381_v24 }
  0xeb   : > { %2830 = vmatprep.mubr.msk.bf16.mxu0 %vm1512_vm8, %v1463_v11 }
  0xec   : > { %2831 = vmatmul.mubr.msk.bf16.vlgmr.msra.gmra.mrb[0].mxu0 %vm1512_vm8, %v1465_v18  ;;  %v1246_v29 = vpop.permute.xlu0 %1245  ;;  %v1389_v30 = vpop.permute.xlu1 %1388 }
  0xed   : > { %2834 = vmatprep.mubr.msk.bf16.mxu0 %vm1512_vm8, %v1467_v22  ;;  %2863 = vmatpush3.bf16.msra.mxu0 %v1896_v16  ;;  %v1428_v6 = vsel %vm1420_vm6, %v3474_v58, %v1246_v29  ;;  %v1471_v21 = vsel %vm1461_vm7, %v1430_v1, %v1389_v30 }
  0xf0   : > { %v1387_v31 = vpop.permute.xlu0 %1386  ;;  %v1252_v23 = vpop.permute.xlu1 %1251 }
  0xf1   : > { %v1469_v34 = vsel %vm1461_vm7, %v1428_v6, %v1387_v31  ;;  %v1434_v26 = vsel %vm1420_vm6, %v3499_v19, %v1252_v23 }
  0xf2   : > { %2800 = vmatprep.mubr.msk.bf16.mxu1 %vm1512_vm8, %v1469_v34 }
  0xf3   : > { %2801 = vmatmul.mubr.msk.bf16.gmra.mrb[4].mxu1 %vm1512_vm8, %v1471_v21 }
  0xf4   : > { %2835 = vmatmul.mubr.msk.bf16.gmra.mrb[4].mxu0 %vm1512_vm8, %v1469_v34  ;;  %v1250_v44 = vpop.permute.xlu0 %1249  ;;  %v1393_v37 = vpop.permute.xlu1 %1392 }
  0xf5   : > { %2838 = vmatprep.mubr.msk.bf16.mxu0 %vm1512_vm8, %v1471_v21  ;;  %v1432_v58 = vsel %vm1420_vm6, %v3515_v38, %v1250_v44  ;;  %v1475_v36 = vsel %vm1461_vm7, %v1434_v26, %v1393_v37 }
  0xf8   : > { %v1391_v52 = vpop.permute.xlu0 %1390  ;;  %v1256_v39 = vpop.permute.xlu1 %1255 }
  0xf9   : > { %v1473_v42 = vsel %vm1461_vm7, %v1432_v58, %v1391_v52  ;;  %v1438_v19 = vsel %vm1420_vm6, %v3545_v20, %v1256_v39 }
  0xfa   : > { %2804 = vmatprep.mubr.msk.bf16.mxu1 %vm1512_vm8, %v1473_v42 }
  0xfb   : > { %2805 = vmatmul.mubr.msk.bf16.gmra.mrb[8].mxu1 %vm1512_vm8, %v1475_v36 }
  0xfc   : > { %2839 = vmatmul.mubr.msk.bf16.gmra.mrb[8].mxu0 %vm1512_vm8, %v1473_v42  ;;  %v1254_v45 = vpop.permute.xlu0 %1253  ;;  %v1397_v33 = vpop.permute.xlu1 %1396 }
  0xfd   : > { %2842 = vmatprep.mubr.msk.bf16.mxu0 %vm1512_vm8, %v1475_v36  ;;  %v1436_v38 = vsel %vm1420_vm6, %v3557_v32, %v1254_v45  ;;  %v1479_v48 = vsel %vm1461_vm7, %v1438_v19, %v1397_v33 }
 0x100   : > { %v1395_v46 = vpop.permute.xlu0 %1394  ;;  %v1264_v54 = vpop.permute.xlu1 %1263 }
 0x101   : > { %v1477_v57 = vsel %vm1461_vm7, %v1436_v38, %v1395_v46  ;;  %v1446_v20 = vsel %vm1420_vm6, %v3568_v43, %v1264_v54 }
 0x102   : > { %2808 = vmatprep.mubr.msk.bf16.mxu1 %vm1512_vm8, %v1477_v57 }
 0x103   : > { %2809 = vmatmul.mubr.msk.bf16.gmra.mrb[12].mxu1 %vm1512_vm8, %v1479_v48 }
 0x104   : > { %2843 = vmatmul.mubr.msk.bf16.gmra.mrb[12].mxu0 %vm1512_vm8, %v1477_v57  ;;  %v1262_v59 = vpop.permute.xlu0 %1261  ;;  %v1405_v60 = vpop.permute.xlu1 %1404 }
 0x105   : > { %2864 = vmatprep.mubr.msk.bf16.mxu0 %vm1512_vm8, %v1467_v22  ;;  %v1444_v32 = vsel %vm1420_vm6, %v3598_v15, %v1262_v59  ;;  %v1487_v2 = vsel %vm1461_vm7, %v1446_v20, %v1405_v60 }
 0x108   : > { %v1403_v62 = vpop.permute.xlu0 %1402  ;;  %v1268_v63 = vpop.permute.xlu1 %1267 }
 0x109   : > { %v1485_v0 = vsel %vm1461_vm7, %v1444_v32, %v1403_v62  ;;  %v1450_v43 = vsel %vm1420_vm6, %v3622_v47, %v1268_v63 }
 0x10a   : > { %2812 = vmatprep.mubr.msk.bf16.mxu1 %vm1512_vm8, %v1485_v0 }
 0x10b   : > { %2813 = vmatmul.mubr.msk.bf16.gmra.mrb[16].mxu1 %vm1512_vm8, %v1487_v2 }
 0x10c   : > { %2865 = vmatmul.mubr.msk.bf16.vlgmr.msra.gmra.mrb[0].mxu0 %vm1512_vm8, %v1469_v34  ;;  %v1266_v55 = vpop.permute.xlu0 %1265  ;;  %v1409_v3 = vpop.permute.xlu1 %1408 }
 0x10d   : > { %2868 = vmatprep.mubr.msk.bf16.mxu0 %vm1512_vm8, %v1471_v21  ;;  %v1448_v15 = vsel %vm1420_vm6, %v3636_v61, %v1266_v55  ;;  %v1491_v49 = vsel %vm1461_vm7, %v1450_v43, %v1409_v3 }
 0x110   : > { %v1407_v56 = vpop.permute.xlu0 %1406  ;;  %v1272_v7 = vpop.permute.xlu1 %1271 }
 0x111   : > { %v1489_v8 = vsel %vm1461_vm7, %v1448_v15, %v1407_v56  ;;  %v1454_v47 = vsel %vm1420_vm6, %v3653_v17, %v1272_v7 }
 0x112   : > { %2816 = vmatprep.mubr.msk.bf16.mxu1 %vm1512_vm8, %v1489_v8 }
 0x113   : > { %2817 = vmatmul.mubr.msk.bf16.gmra.mrb[20].mxu1 %vm1512_vm8, %v1491_v49 }
 0x114   : > { %2869 = vmatmul.mubr.msk.bf16.gmra.mrb[4].mxu0 %vm1512_vm8, %v1473_v42  ;;  %v1270_v9 = vpop.permute.xlu0 %1269  ;;  %v1413_v10 = vpop.permute.xlu1 %1412 }
 0x115   : > { %2872 = vmatprep.mubr.msk.bf16.mxu0 %vm1512_vm8, %v1475_v36  ;;  %v1452_v61 = vsel %vm1420_vm6, %v3683_v35, %v1270_v9  ;;  %v1495_v14 = vsel %vm1461_vm7, %v1454_v47, %v1413_v10 }
 0x118   : > { %v1411_v4 = vpop.permute.xlu0 %1410  ;;  %v1258_v13 = vpop.permute.xlu1 %1257 }
 0x119   : > { %v1493_v12 = vsel %vm1461_vm7, %v1452_v61, %v1411_v4  ;;  %v1440_v27 = vsel %vm1420_vm6, %v3719_v40, %v1258_v13 }
 0x11a   : > { %2820 = vmatprep.mubr.msk.bf16.mxu1 %vm1512_vm8, %v1493_v12 }
 0x11b   : > { %2821 = vmatmul.mubr.msk.bf16.gmra.mrb[24].mxu1 %vm1512_vm8, %v1495_v14 }
 0x11c   : > { %2873 = vmatmul.mubr.msk.bf16.gmra.mrb[8].mxu0 %vm1512_vm8, %v1477_v57  ;;  %v1274_v5 = vpop.permute.xlu0 %1273  ;;  %v1415_v17 = vpop.permute.xlu1 %1414 }
 0x11d   : > { %v1456_v18 = vsel %vm1420_vm6, %v3723_v41, %v1274_v5  ;;  %2876 = vmatprep.mubr.msk.bf16.mxu0 %vm1512_vm8, %v1479_v48 }
 0x11e   : > { %v1497_v35 = vsel %vm1461_vm7, %v1456_v18, %v1415_v17 }
 0x11f   : > { %2824 = vmatprep.mubr.msk.bf16.mxu1 %vm1512_vm8, %v1497_v35 }
 0x120   : > { %v1276_v22 = vpop.permute.xlu0 %1275  ;;  %v1417_v25 = vpop.permute.xlu1 %1416 }
 0x121   : > { %v1458_v24 = vsel %vm1420_vm6, %v3735_v53, %v1276_v22 }
 0x122   : > { %v1499_v28 = vsel %vm1461_vm7, %v1458_v24, %v1417_v25 }
 0x123   : > { %2825 = vmatmul.mubr.msk.bf16.gmra.mrb[28].mxu1 %vm1512_vm8, %v1499_v28 }
 0x124   : > { %v1399_v41 = vpop.permute.xlu0 %1398  ;;  %v1401_v16 = vpop.permute.xlu1 %1400 }
 0x125   : > { %v1481_v11 = vsel %vm1461_vm7, %v1440_v27, %v1399_v41 }
 0x126   : > { %2877 = vmatmul.mubr.msk.bf16.gmra.mrb[12].mxu0 %vm1512_vm8, %v1481_v11 }
 0x127   : > { %2880 = vmatprep.mubr.msk.bf16.mxu0 %vm1512_vm8, %v1487_v2 }
 0x128   : > { %v1260_v29 = vpop.permute.xlu0 %1259  ;;  %v1419_v1 = vpop.permute.xlu1 %1418 }
 0x129   : > { %v1442_v53 = vsel %vm1420_vm6, %v3768_v51, %v1260_v29 }
 0x12a   : > { %v1483_v30 = vsel %vm1461_vm7, %v1442_v53, %v1401_v16 }
 0x12b   : > { %2846 = vmatprep.mubr.msk.bf16.mxu1 %vm1512_vm8, %v1483_v30 }
 0x12c   : > { %2847 = vmatmul.mubr.msk.bf16.vlgmr.msra.gmra.mrb[16].mxu1 %vm1512_vm8, %v1485_v0  ;;  %v1278_v40 = vpop.permute.xlu0 %1277 }
 0x12d   : > { %2850 = vmatprep.mubr.msk.bf16.mxu1 %vm1512_vm8, %v1487_v2  ;;  %v1460_v51 = vsel %vm1420_vm6, %v3777_v50, %v1278_v40 }
 0x12e   : > { %2881 = vmatmul.mubr.msk.bf16.gmra.mrb[16].mxu0 %vm1512_vm8, %v1489_v8  ;;  %v1501_v6 = vsel %vm1461_vm7, %v1460_v51, %v1419_v1 }
 0x12f   : > { %2884 = vmatprep.mubr.msk.bf16.mxu0 %vm1512_vm8, %v1491_v49 }
 0x134   : > { %2851 = vmatmul.mubr.msk.bf16.gmra.mrb[20].mxu1 %vm1512_vm8, %v1489_v8 }
 0x135   : > { %2854 = vmatprep.mubr.msk.bf16.mxu1 %vm1512_vm8, %v1491_v49 }
 0x136   : > { %2885 = vmatmul.mubr.msk.bf16.gmra.mrb[20].mxu0 %vm1512_vm8, %v1493_v12 }
 0x137   : > { %2888 = vmatprep.mubr.msk.bf16.mxu0 %vm1512_vm8, %v1495_v14 }
 0x13c   : > { %2855 = vmatmul.mubr.msk.bf16.gmra.mrb[24].mxu1 %vm1512_vm8, %v1493_v12 }
 0x13d   : > { %2858 = vmatprep.mubr.msk.bf16.mxu1 %vm1512_vm8, %v1495_v14 }
 0x13e   : > { %2889 = vmatmul.mubr.msk.bf16.gmra.mrb[24].mxu0 %vm1512_vm8, %v1497_v35 }
 0x13f   : > { %2892 = vmatprep.mubr.msk.bf16.mxu0 %vm1512_vm8, %v1499_v28 }
 0x144   : > { %2859 = vmatmul.mubr.msk.bf16.gmra.mrb[28].mxu1 %vm1512_vm8, %v1497_v35 }
 0x146   : > { %2893 = vmatmul.mubr.msk.bf16.gmra.mrb[28].mxu0 %vm1512_vm8, %v1501_v6 }
 0x1ad   : > { %v2798_v31 = vpop.f32.mrb[0].mxu1 }
 0x1ae   : > { %v1583_v23 = vpop.f32.mrb[1].mxu1 }
 0x1af   : > { %v2799_v34 = vpop.f32.mrb[2].mxu1 }
 0x1b0   : > { %v1586_v21 = vpop.f32.mrb[3].mxu1 }
 0x1c6   : > { %v2802_v44 = vpop.f32.mrb[4].mxu1 }
 0x1c7   : > { %v1599_v37 = vpop.f32.mrb[5].mxu1 }
 0x1c8   : > { %v2803_v26 = vpop.f32.mrb[6].mxu1 }
 0x1c9   : > { %v1602_v58 = vpop.f32.mrb[7].mxu1 }
 0x1ce   : > { %v2806_v52 = vpop.f32.mrb[8].mxu1 }
 0x1cf   : > { %v1615_v39 = vpop.f32.mrb[9].mxu1 }
 0x1d0   : > { %v2807_v42 = vpop.f32.mrb[10].mxu1 }
 0x1d1   : > { %v1618_v50 = vpop.f32.mrb[11].mxu1 }
 0x1d6   : > { %v2810_v36 = vpop.f32.mrb[12].mxu1 }
 0x1d7   : > { %v1631_v45 = vpop.f32.mrb[13].mxu1 }
 0x1d8   : > { %v2811_v33 = vpop.f32.mrb[14].mxu1 }
 0x1d9   : > { %v1634_v19 = vpop.f32.mrb[15].mxu1 }
 0x1df   : > { %v2866_v38 = vpop.f32.mrb[0].mxu0 }
 0x1e0   : > { %v3904_v46 = vadd.f32 %v2866_v38, %v2798_v31  ;;  %v1932_v54 = vpop.f32.mrb[1].mxu0 }
 0x1e1   : > { %v3906_v57 = vadd.f32 %v1932_v54, %v1583_v23  ;;  %v2867_v48 = vpop.f32.mrb[2].mxu0 }
 0x1e2   : > { %2094 = vst.msk [vmem:[%s3909_s19 + $0x10] sm:$0xff] %vm2091_vm9, %v3904_v46  ;;  %v3914_v59 = vadd.f32 %v2867_v48, %v2799_v34  ;;  %v1935_v60 = vpop.f32.mrb[3].mxu0 }
 0x1e3   : > { %2092 = vst.msk [vmem:[%s3909_s19] sm:$0xff] %vm2091_vm9, %v3906_v57  ;;  %v3919_v20 = vadd.f32 %v1935_v60, %v1586_v21 }
 0x1e4   : > { %2095 = vst.msk [vmem:[%s3909_s19 + $0x18] sm:$0xff] %vm2091_vm9, %v3914_v59 }
 0x1e5   : > { %2093 = vst.msk [vmem:[%s3909_s19 + $0x8] sm:$0xff] %vm2091_vm9, %v3919_v20 }
 0x1e7   : > { %v2870_v32 = vpop.f32.mrb[4].mxu0 }
 0x1e8   : > { %v3927_v62 = vadd.f32 %v2870_v32, %v2802_v44  ;;  %v1948_v63 = vpop.f32.mrb[5].mxu0 }
 0x1e9   : > { %v3929_v0 = vadd.f32 %v1948_v63, %v1599_v37  ;;  %v2871_v2 = vpop.f32.mrb[6].mxu0 }
 0x1ea   : > { %2098 = vst.msk [vmem:[%s3909_s19 + $0x30] sm:$0xff] %vm2091_vm9, %v3927_v62  ;;  %v3934_v55 = vadd.f32 %v2871_v2, %v2803_v26  ;;  %v1951_v3 = vpop.f32.mrb[7].mxu0 }
 0x1eb   : > { %2096 = vst.msk [vmem:[%s3909_s19 + $0x20] sm:$0xff] %vm2091_vm9, %v3929_v0  ;;  %v3939_v43 = vadd.f32 %v1951_v3, %v1602_v58 }
 0x1ec   : > { %2099 = vst.msk [vmem:[%s3909_s19 + $0x38] sm:$0xff] %vm2091_vm9, %v3934_v55 }
 0x1ed   : > { %2097 = vst.msk [vmem:[%s3909_s19 + $0x28] sm:$0xff] %vm2091_vm9, %v3939_v43 }
 0x1ef   : > { %v2874_v15 = vpop.f32.mrb[8].mxu0 }
 0x1f0   : > { %v3947_v56 = vadd.f32 %v2874_v15, %v2806_v52  ;;  %v1964_v7 = vpop.f32.mrb[9].mxu0 }
 0x1f1   : > { %v3949_v8 = vadd.f32 %v1964_v7, %v1615_v39  ;;  %v2875_v49 = vpop.f32.mrb[10].mxu0 }
 0x1f2   : > { %2102 = vst.msk [vmem:[%s3909_s19 + $0x50] sm:$0xff] %vm2091_vm9, %v3947_v56  ;;  %v3954_v9 = vadd.f32 %v2875_v49, %v2807_v42  ;;  %v1967_v10 = vpop.f32.mrb[11].mxu0 }
 0x1f3   : > { %2100 = vst.msk [vmem:[%s3909_s19 + $0x40] sm:$0xff] %vm2091_vm9, %v3949_v8  ;;  %v3959_v47 = vadd.f32 %v1967_v10, %v1618_v50 }
 0x1f4   : > { %2103 = vst.msk [vmem:[%s3909_s19 + $0x58] sm:$0xff] %vm2091_vm9, %v3954_v9 }
 0x1f5   : > { %2101 = vst.msk [vmem:[%s3909_s19 + $0x48] sm:$0xff] %vm2091_vm9, %v3959_v47 }
 0x1f9   : > { %v2878_v61 = vpop.f32.mrb[12].mxu0 }
 0x1fa   : > { %v3967_v4 = vadd.f32 %v2878_v61, %v2810_v36  ;;  %v1980_v12 = vpop.f32.mrb[13].mxu0 }
 0x1fb   : > { %v3969_v13 = vadd.f32 %v1980_v12, %v1631_v45  ;;  %v2879_v14 = vpop.f32.mrb[14].mxu0 }
 0x1fc   : > { %2106 = vst.msk [vmem:[%s3909_s19 + $0x70] sm:$0xff] %vm2091_vm9, %v3967_v4  ;;  %v3974_v5 = vadd.f32 %v2879_v14, %v2811_v33  ;;  %v1983_v18 = vpop.f32.mrb[15].mxu0 }
 0x1fd   : > { %2104 = vst.msk [vmem:[%s3909_s19 + $0x60] sm:$0xff] %vm2091_vm9, %v3969_v13  ;;  %v3979_v17 = vadd.f32 %v1983_v18, %v1634_v19 }
 0x1fe   : > { %2107 = vst.msk [vmem:[%s3909_s19 + $0x78] sm:$0xff] %vm2091_vm9, %v3974_v5 }
 0x1ff   : > { %2105 = vst.msk [vmem:[%s3909_s19 + $0x68] sm:$0xff] %vm2091_vm9, %v3979_v17  ;;  %v2848_v35 = vpop.f32.mrb[16].mxu1 }
 0x200   : > { %v1820_v22 = vpop.f32.mrb[17].mxu1 }
 0x201   : > { %v2849_v24 = vpop.f32.mrb[18].mxu1  ;;  %v2882_v25 = vpop.f32.mrb[16].mxu0 }
 0x202   : > { %v3987_v28 = vadd.f32 %v2882_v25, %v2848_v35  ;;  %v1823_v27 = vpop.f32.mrb[19].mxu1  ;;  %v1996_v41 = vpop.f32.mrb[17].mxu0  ;;  %v3118_v35 = vmov (!%p2722_p11), 0.0  }
 0x203   : > { %v3989_v11 = vadd.f32 %v1996_v41, %v1820_v22  ;;  %v2883_v16 = vpop.f32.mrb[18].mxu0  ;;  %2129 = vst.msk [vmem:[%s4354_s7] sm:$0x1] (!%p2722_p11), %vm2128_vm10, %v3118_v35  ;;  %2130 = vst.msk [vmem:[%s4355_s8] sm:$0x1] (!%p2722_p11), %vm2128_vm10, %v3118_v35 }
 0x204   : > { %2110 = vst.msk [vmem:[%s3909_s19 + $0x90] sm:$0xff] %vm2091_vm9, %v3987_v28  ;;  %v3994_v29 = vadd.f32 %v2883_v16, %v2849_v24  ;;  %v1999_v53 = vpop.f32.mrb[19].mxu0 }
 0x205   : > { %2108 = vst.msk [vmem:[%s3909_s19 + $0x80] sm:$0xff] %vm2091_vm9, %v3989_v11  ;;  %v3999_v30 = vadd.f32 %v1999_v53, %v1823_v27 }
 0x206   : > { %2111 = vst.msk [vmem:[%s3909_s19 + $0x98] sm:$0xff] %vm2091_vm9, %v3994_v29 }
 0x207   : > { %2109 = vst.msk [vmem:[%s3909_s19 + $0x88] sm:$0xff] %vm2091_vm9, %v3999_v30  ;;  %v2852_v40 = vpop.f32.mrb[20].mxu1 }
 0x208   : > { %v1836_v51 = vpop.f32.mrb[21].mxu1 }
 0x209   : > { %v2853_v1 = vpop.f32.mrb[22].mxu1  ;;  %v2886_v6 = vpop.f32.mrb[20].mxu0 }
 0x20a   : > { %v4007_v31 = vadd.f32 %v2886_v6, %v2852_v40  ;;  %v1839_v23 = vpop.f32.mrb[23].mxu1  ;;  %v2012_v34 = vpop.f32.mrb[21].mxu0 }
 0x20b   : > { %v4009_v21 = vadd.f32 %v2012_v34, %v1836_v51  ;;  %v2887_v44 = vpop.f32.mrb[22].mxu0 }
 0x20c   : > { %2114 = vst.msk [vmem:[%s3909_s19 + $0xb0] sm:$0xff] %vm2091_vm9, %v4007_v31  ;;  %v4014_v37 = vadd.f32 %v2887_v44, %v2853_v1  ;;  %v2015_v26 = vpop.f32.mrb[23].mxu0 }
 0x20d   : > { %2112 = vst.msk [vmem:[%s3909_s19 + $0xa0] sm:$0xff] %vm2091_vm9, %v4009_v21  ;;  %v4019_v58 = vadd.f32 %v2015_v26, %v1839_v23 }
 0x20e   : > { %2115 = vst.msk [vmem:[%s3909_s19 + $0xb8] sm:$0xff] %vm2091_vm9, %v4014_v37 }
 0x20f   : > { %2113 = vst.msk [vmem:[%s3909_s19 + $0xa8] sm:$0xff] %vm2091_vm9, %v4019_v58  ;;  %v2856_v52 = vpop.f32.mrb[24].mxu1 }
 0x210   : > { %v1852_v39 = vpop.f32.mrb[25].mxu1 }
 0x211   : > { %v2857_v42 = vpop.f32.mrb[26].mxu1  ;;  %v2890_v50 = vpop.f32.mrb[24].mxu0 }
 0x212   : > { %v4027_v36 = vadd.f32 %v2890_v50, %v2856_v52  ;;  %v1855_v45 = vpop.f32.mrb[27].mxu1  ;;  %v2028_v33 = vpop.f32.mrb[25].mxu0 }
 0x213   : > { %v4029_v19 = vadd.f32 %v2028_v33, %v1852_v39  ;;  %v2891_v38 = vpop.f32.mrb[26].mxu0 }
 0x214   : > { %2118 = vst.msk [vmem:[%s3909_s19 + $0xd0] sm:$0xff] %vm2091_vm9, %v4027_v36  ;;  %v4034_v54 = vadd.f32 %v2891_v38, %v2857_v42  ;;  %v2031_v48 = vpop.f32.mrb[27].mxu0 }
 0x215   : > { %2116 = vst.msk [vmem:[%s3909_s19 + $0xc0] sm:$0xff] %vm2091_vm9, %v4029_v19  ;;  %v4039_v60 = vadd.f32 %v2031_v48, %v1855_v45 }
 0x216   : > { %2119 = vst.msk [vmem:[%s3909_s19 + $0xd8] sm:$0xff] %vm2091_vm9, %v4034_v54 }
 0x217   : > { %2117 = vst.msk [vmem:[%s3909_s19 + $0xc8] sm:$0xff] %vm2091_vm9, %v4039_v60  ;;  %v2860_v32 = vpop.f32.mrb[28].mxu1 }
 0x218   : > { %v1868_v63 = vpop.f32.mrb[29].mxu1 }
 0x219   : > { %v2861_v2 = vpop.f32.mrb[30].mxu1  ;;  %v2894_v3 = vpop.f32.mrb[28].mxu0  ;;  %2127 = sbr.rel (%p2722_p11) target bundleno = 544 (0x220), region = 162 }
 0x21a   : > { %v4047_v15 = vadd.f32 %v2894_v3, %v2860_v32  ;;  %v1871_v7 = vpop.f32.mrb[31].mxu1  ;;  %v2044_v49 = vpop.f32.mrb[29].mxu0 }
 0x21b   : > { %v4049_v10 = vadd.f32 %v2044_v49, %v1868_v63  ;;  %v2895_v61 = vpop.f32.mrb[30].mxu0 }
 0x21c   : > { %2122 = vst.msk [vmem:[%s3909_s19 + $0xf0] sm:$0xff] %vm2091_vm9, %v4047_v15  ;;  %v4054_v12 = vadd.f32 %v2895_v61, %v2861_v2  ;;  %v2047_v14 = vpop.f32.mrb[31].mxu0 }
 0x21d   : > { %2120 = vst.msk [vmem:[%s3909_s19 + $0xe0] sm:$0xff] %vm2091_vm9, %v4049_v10  ;;  %v4059_v18 = vadd.f32 %v2047_v14, %v1871_v7 }
 0x21e   : > { %2123 = vst.msk [vmem:[%s3909_s19 + $0xf8] sm:$0xff] %vm2091_vm9, %v4054_v12 }
 0x21f   : > { %2121 = vst.msk [vmem:[%s3909_s19 + $0xe8] sm:$0xff] %vm2091_vm9, %v4059_v18 }
 0x220 PF: > { %v2132_v22 = vsel %vm2091_vm9, %v3906_v57, 0.0  ;;  %v2133_v24 = vsel %vm2091_vm9, %v3919_v20, 0.0  ;;  %v2135_v25 = vsel %vm2091_vm9, %v3904_v46, 0.0  ;;  %v2137_v41 = vsel %vm2091_vm9, %v3914_v59, 0.0  ;;  %s2742_s14 = sshll.u32 (%p3263_p5), %s3106_s9, 7 }
 0x221   : > { %v2134_v27 = vadd.f32 %v2133_v24, %v2132_v22  ;;  %v2139_v53 = vsel %vm2091_vm9, %v3929_v0, 0.0  ;;  %v2141_v51 = vsel %vm2091_vm9, %v3939_v43, 0.0  ;;  %v2143_v6 = vsel %vm2091_vm9, %v3927_v62, 0.0  ;;  %s4257_s22 = scalar_lea.vmem (%p3263_p5), %s4353_s6, %s2742_s14 }
 0x222   : > { %v2145_v34 = vsel %vm2091_vm9, %v3934_v55, 0.0  ;;  %v2147_v26 = vsel %vm2091_vm9, %v3949_v8, 0.0  ;;  %v2149_v39 = vsel %vm2091_vm9, %v3959_v47, 0.0  ;;  %v2205_v42 = vmul.f32 %v3906_v57, %v3906_v57 }
 0x223   : > { %v2136_v16 = vadd.f32 %v2135_v25, %v2134_v27  ;;  %v2206_v50 = vmul.f32 %v3919_v20, %v3919_v20  ;;  %v2207_v33 = vmul.f32 %v3904_v46, %v3904_v46  ;;  %v2151_v38 = vsel %vm2091_vm9, %v3947_v56, 0.0 }
 0x224   : > { %v2208_v48 = vmul.f32 %v3914_v59, %v3914_v59  ;;  %v2153_v63 = vsel %vm2091_vm9, %v3954_v9, 0.0  ;;  %v2209_v57 = vmul.f32 %v3929_v0, %v3929_v0  ;;  %v2237_v2 = vsel %vm2091_vm9, %v2205_v42, 0.0 }
 0x225   : > { %v2138_v40 = vadd.f32 %v2137_v41, %v2136_v16  ;;  %v2238_v20 = vsel %vm2091_vm9, %v2206_v50, 0.0  ;;  %v2240_v46 = vsel %vm2091_vm9, %v2207_v33, 0.0  ;;  %v2155_v49 = vsel %vm2091_vm9, %v3969_v13, 0.0 }
 0x226   : > { %v2239_v7 = vadd.f32 %v2238_v20, %v2237_v2  ;;  %v2210_v59 = vmul.f32 %v3939_v43, %v3939_v43  ;;  %v2242_v61 = vsel %vm2091_vm9, %v2208_v48, 0.0  ;;  %v2157_v0 = vsel %vm2091_vm9, %v3979_v17, 0.0 }
 0x227   : > { %v2140_v1 = vadd.f32 %v2139_v53, %v2138_v40  ;;  %v2211_v22 = vmul.f32 %v3927_v62, %v3927_v62  ;;  %v2244_v24 = vsel %vm2091_vm9, %v2209_v57, 0.0  ;;  %v2159_v41 = vsel %vm2091_vm9, %v3967_v4, 0.0 }
 0x228   : > { %v2241_v35 = vadd.f32 %v2240_v46, %v2239_v7  ;;  %v2212_v43 = vmul.f32 %v3934_v55, %v3934_v55  ;;  %v2246_v16 = vsel %vm2091_vm9, %v2210_v59, 0.0  ;;  %v2213_v62 = vmul.f32 %v3949_v8, %v3949_v8 }
 0x229   : > { %v2142_v23 = vadd.f32 %v2141_v51, %v2140_v1  ;;  %v2161_v51 = vsel %vm2091_vm9, %v3974_v5, 0.0  ;;  %v2248_v1 = vsel %vm2091_vm9, %v2211_v22, 0.0  ;;  %v2214_v55 = vmul.f32 %v3959_v47, %v3959_v47 }
 0x22a   : > { %v2243_v27 = vadd.f32 %v2242_v61, %v2241_v35  ;;  %v2215_v8 = vmul.f32 %v3947_v56, %v3947_v56  ;;  %v2252_v42 = vsel %vm2091_vm9, %v2213_v62, 0.0  ;;  %v2167_v33 = vsel %vm2091_vm9, %v3987_v28, 0.0 }
 0x22b   : > { %v2144_v44 = vadd.f32 %v2143_v6, %v2142_v23  ;;  %v2216_v47 = vmul.f32 %v3954_v9, %v3954_v9  ;;  %v2217_v56 = vmul.f32 %v3969_v13, %v3969_v13  ;;  %v2218_v9 = vmul.f32 %v3979_v17, %v3979_v17 }
 0x22c   : > { %v2245_v40 = vadd.f32 %v2244_v24, %v2243_v27  ;;  %v2256_v57 = vsel %vm2091_vm9, %v2215_v8, 0.0  ;;  %v2173_v59 = vsel %vm2091_vm9, %v4019_v58, 0.0  ;;  %v2219_v13 = vmul.f32 %v3967_v4, %v3967_v4 }
 0x22d   : > { %v2146_v52 = vadd.f32 %v2145_v34, %v2144_v44  ;;  %v2163_v34 = vsel %vm2091_vm9, %v3989_v11, 0.0  ;;  %v2250_v44 = vsel %vm2091_vm9, %v2212_v43, 0.0  ;;  %v2258_v7 = vsel %vm2091_vm9, %v2216_v47, 0.0 }
 0x22e   : > { %v2247_v23 = vadd.f32 %v2246_v16, %v2245_v40  ;;  %v2260_v61 = vsel %vm2091_vm9, %v2217_v56, 0.0  ;;  %v2220_v17 = vmul.f32 %v3974_v5, %v3974_v5  ;;  %v2262_v22 = vsel %vm2091_vm9, %v2218_v9, 0.0 }
 0x22f   : > { %v2148_v45 = vadd.f32 %v2147_v26, %v2146_v52  ;;  %v2177_v27 = vsel %vm2091_vm9, %v4014_v37, 0.0  ;;  %v2221_v4 = vmul.f32 %v3989_v11, %v3989_v11  ;;  %v2222_v5 = vmul.f32 %v3999_v30, %v3999_v30 }
 0x230   : > { %v2249_v52 = vadd.f32 %v2248_v1, %v2247_v23  ;;  %v2266_v40 = vsel %vm2091_vm9, %v2220_v17, 0.0  ;;  %v2181_v1 = vsel %vm2091_vm9, %v4039_v60, 0.0  ;;  %v2223_v11 = vmul.f32 %v3987_v28, %v3987_v28 }
 0x231   : > { %v2150_v32 = vadd.f32 %v2149_v39, %v2148_v45  ;;  %v2165_v39 = vsel %vm2091_vm9, %v3999_v30, 0.0  ;;  %v2224_v30 = vmul.f32 %v3994_v29, %v3994_v29  ;;  %v2225_v28 = vmul.f32 %v4009_v21, %v4009_v21 }
 0x232   : > { %v2251_v45 = vadd.f32 %v2250_v44, %v2249_v52  ;;  %v2270_v44 = vsel %vm2091_vm9, %v2222_v5, 0.0  ;;  %v2272_v8 = vsel %vm2091_vm9, %v2223_v11, 0.0  ;;  %v2193_v9 = vsel %vm2091_vm9, %v4054_v12, 0.0 }
 0x233   : > { %v2152_v3 = vadd.f32 %v2151_v38, %v2150_v32  ;;  %v2254_v38 = vsel %vm2091_vm9, %v2214_v55, 0.0  ;;  %v2183_v55 = vsel %vm2091_vm9, %v4027_v36, 0.0  ;;  %vm2202_vm11 = vcmask 253952  }
 0x234   : > { %v2253_v32 = vadd.f32 %v2252_v42, %v2251_v45  ;;  %v2187_v45 = vsel %vm2091_vm9, %v4049_v10, 0.0 }
 0x235   : > { %v2154_v14 = vadd.f32 %v2153_v63, %v2152_v3  ;;  %v2169_v63 = vsel %vm2091_vm9, %v3994_v29, 0.0  ;;  %v2171_v3 = vsel %vm2091_vm9, %v4009_v21, 0.0  ;;  %v2226_v29 = vmul.f32 %v4019_v58, %v4019_v58 }
 0x236   : > { %v2255_v20 = vadd.f32 %v2254_v38, %v2253_v32  ;;  %v2227_v21 = vmul.f32 %v4007_v31, %v4007_v31  ;;  %v2276_v32 = vsel %vm2091_vm9, %v2225_v28, 0.0  ;;  %v2228_v58 = vmul.f32 %v4014_v37, %v4014_v37  ;;  %v2204_v28 = vld [vmem:[%s4355_s8] sm:$0x1] }
 0x237   : > { %v2156_v25 = vadd.f32 %v2155_v49, %v2154_v14 }
 0x238   : > { %v2257_v49 = vadd.f32 %v2256_v57, %v2255_v20  ;;  %v2191_v57 = vsel %vm2091_vm9, %v4047_v15, 0.0 }
 0x239   : > { %v2158_v53 = vadd.f32 %v2157_v0, %v2156_v25  ;;  %v2175_v0 = vsel %vm2091_vm9, %v4007_v31, 0.0  ;;  %v2229_v31 = vmul.f32 %v4029_v19, %v4029_v19 }
 0x23a   : > { %v2259_v35 = vadd.f32 %v2258_v7, %v2257_v49  ;;  %v2280_v7 = vsel %vm2091_vm9, %v2227_v21, 0.0  ;;  %v2429_v21 = vld [vmem:[%s3909_s19 + $0x38] sm:$0xff] (%p3263_p5) }
 0x23b   : > { %v2160_v6 = vadd.f32 %v2159_v41, %v2158_v53  ;;  %v2264_v41 = vsel %vm2091_vm9, %v2219_v13, 0.0  ;;  %v2179_v53 = vsel %vm2091_vm9, %v4029_v19, 0.0  ;;  %v2282_v13 = vsel %vm2091_vm9, %v2228_v58, 0.0  ;;  %2430 = vst [vmem:[%s4257_s22 + $0x38] sm:$0xff] (%p3263_p5), %v2429_v21  ;;  %v2439_v58 = vld [vmem:[%s3909_s19 + $0x60] sm:$0xff] (%p3263_p5) }
 0x23c   : > { %v2261_v25 = vadd.f32 %v2260_v61, %v2259_v35  ;;  %v2284_v35 = vsel %vm2091_vm9, %v2229_v31, 0.0  ;;  %v2232_v19 = vmul.f32 %v4034_v54, %v4034_v54  ;;  %2440 = vst [vmem:[%s4257_s22 + $0x60] sm:$0xff] (%p3263_p5), %v2439_v58  ;;  %v2449_v31 = vld [vmem:[%s3909_s19 + $0x88] sm:$0xff] (%p3263_p5) }
 0x23d   : > { %v2162_v26 = vadd.f32 %v2161_v51, %v2160_v6  ;;  %v2268_v6 = vsel %vm2091_vm9, %v2221_v4, 0.0  ;;  %2450 = vst [vmem:[%s4257_s22 + $0x108] sm:$0xff] (%p3263_p5), %v2449_v31 }
 0x23e   : > { %v2263_v16 = vadd.f32 %v2262_v22, %v2261_v25 }
 0x23f   : > { %v2164_v50 = vadd.f32 %v2163_v34, %v2162_v26 }
 0x240   : > { %v2265_v62 = vadd.f32 %v2264_v41, %v2263_v16 }
 0x241   : > { %v2166_v48 = vadd.f32 %v2165_v39, %v2164_v50  ;;  %v2185_v39 = vsel %vm2091_vm9, %v4034_v54, 0.0  ;;  %v2235_v54 = vmul.f32 %v4047_v15, %v4047_v15 }
 0x242   : > { %v2267_v34 = vadd.f32 %v2266_v40, %v2265_v62  ;;  %v2236_v62 = vmul.f32 %v4054_v12, %v4054_v12 }
 0x243   : > { %v2168_v2 = vadd.f32 %v2167_v33, %v2166_v48  ;;  %v2274_v33 = vsel %vm2091_vm9, %v2224_v30, 0.0  ;;  %v2189_v48 = vsel %vm2091_vm9, %v4059_v18, 0.0 }
 0x244   : > { %v2269_v52 = vadd.f32 %v2268_v6, %v2267_v34  ;;  %v2296_v6 = vsel %vm2091_vm9, %v2235_v54, 0.0  ;;  %v2298_v34 = vsel %vm2091_vm9, %v2236_v62, 0.0 }
 0x245   : > { %v2170_v46 = vadd.f32 %v2169_v63, %v2168_v2  ;;  %v2278_v2 = vsel %vm2091_vm9, %v2226_v29, 0.0  ;;  %v2419_v29 = vld [vmem:[%s3909_s19 + $0x10] sm:$0xff] (%p3263_p5) }
 0x246   : > { %v2271_v50 = vadd.f32 %v2270_v44, %v2269_v52  ;;  %2420 = vst [vmem:[%s4257_s22 + $0x10] sm:$0xff] (%p3263_p5), %v2419_v29 }
 0x247   : > { %v2172_v14 = vadd.f32 %v2171_v3, %v2170_v46 }
 0x248   : > { %v2273_v38 = vadd.f32 %v2272_v8, %v2271_v50  ;;  %v2415_v50 = vld [vmem:[%s3909_s19] sm:$0xff] (%p3263_p5) }
 0x249   : > { %v2174_v24 = vadd.f32 %v2173_v59, %v2172_v14  ;;  %v2230_v59 = vmul.f32 %v4039_v60, %v4039_v60  ;;  %v2231_v14 = vmul.f32 %v4027_v36, %v4027_v36  ;;  %v2233_v60 = vmul.f32 %v4049_v10, %v4049_v10  ;;  %v2131_v10 = vld [vmem:[%s4354_s7] sm:$0x1]  ;;  %2416 = vst [vmem:[%s4257_s22] sm:$0xff] (%p3263_p5), %v2415_v50 }
 0x24a   : > { %v2275_v56 = vadd.f32 %v2274_v33, %v2273_v38  ;;  %v2234_v36 = vmul.f32 %v4059_v18, %v4059_v18  ;;  %v2421_v33 = vld [vmem:[%s3909_s19 + $0x18] sm:$0xff] (%p3263_p5)  ;;  %v2425_v38 = vld [vmem:[%s3909_s19 + $0x28] sm:$0xff] (%p3263_p5) }
 0x24b   : > { %v2176_v43 = vadd.f32 %v2175_v0, %v2174_v24  ;;  %v2286_v22 = vsel %vm2091_vm9, %v2230_v59, 0.0  ;;  %v2292_v5 = vsel %vm2091_vm9, %v2233_v60, 0.0  ;;  %2422 = vst [vmem:[%s4257_s22 + $0x18] sm:$0xff] (%p3263_p5), %v2421_v33  ;;  %2426 = vst [vmem:[%s4257_s22 + $0x28] sm:$0xff] (%p3263_p5), %v2425_v38  ;;  %v2457_v59 = vld [vmem:[%s3909_s19 + $0xa8] sm:$0xff] (%p3263_p5) }
 0x24c   : > { %v2277_v3 = vadd.f32 %v2276_v32, %v2275_v56  ;;  %v2294_v18 = vsel %vm2091_vm9, %v2234_v36, 0.0  ;;  %v2431_v32 = vld [vmem:[%s3909_s19 + $0x40] sm:$0xff] (%p3263_p5)  ;;  %v2435_v56 = vld [vmem:[%s3909_s19 + $0x50] sm:$0xff] (%p3263_p5)  ;;  %2458 = vst [vmem:[%s4257_s22 + $0x128] sm:$0xff] (%p3263_p5), %v2457_v59 }
 0x24d   : > { %v2178_v51 = vadd.f32 %v2177_v27, %v2176_v43  ;;  %v2288_v27 = vsel %vm2091_vm9, %v2231_v14, 0.0  ;;  %v2290_v43 = vsel %vm2091_vm9, %v2232_v19, 0.0  ;;  %2432 = vst [vmem:[%s4257_s22 + $0x40] sm:$0xff] (%p3263_p5), %v2431_v32  ;;  %2436 = vst [vmem:[%s4257_s22 + $0x50] sm:$0xff] (%p3263_p5), %v2435_v56  ;;  %v2465_v14 = vld [vmem:[%s3909_s19 + $0xc8] sm:$0xff] (%p3263_p5) }
 0x24e   : > { %v2279_v49 = vadd.f32 %v2278_v2, %v2277_v3  ;;  %v2441_v2 = vld [vmem:[%s3909_s19 + $0x68] sm:$0xff] (%p3263_p5)  ;;  %v2445_v3 = vld [vmem:[%s3909_s19 + $0x78] sm:$0xff] (%p3263_p5)  ;;  %2466 = vst [vmem:[%s4257_s22 + $0x148] sm:$0xff] (%p3263_p5), %v2465_v14 }
 0x24f   : > { %v2180_v23 = vadd.f32 %v2179_v53, %v2178_v51  ;;  %2442 = vst [vmem:[%s4257_s22 + $0x68] sm:$0xff] (%p3263_p5), %v2441_v2  ;;  %2446 = vst [vmem:[%s4257_s22 + $0x78] sm:$0xff] (%p3263_p5), %v2445_v3  ;;  %v2473_v19 = vld [vmem:[%s3909_s19 + $0xe8] sm:$0xff] (%p3263_p5) }
 0x250   : > { %v2281_v61 = vadd.f32 %v2280_v7, %v2279_v49  ;;  %v2451_v7 = vld [vmem:[%s3909_s19 + $0x90] sm:$0xff] (%p3263_p5)  ;;  %v2455_v49 = vld [vmem:[%s3909_s19 + $0xa0] sm:$0xff] (%p3263_p5)  ;;  %2474 = vst [vmem:[%s4257_s22 + $0x168] sm:$0xff] (%p3263_p5), %v2473_v19 }
 0x251   : > { %v2182_v26 = vadd.f32 %v2181_v1, %v2180_v23  ;;  %2452 = vst [vmem:[%s4257_s22 + $0x110] sm:$0xff] (%p3263_p5), %v2451_v7  ;;  %2456 = vst [vmem:[%s4257_s22 + $0x120] sm:$0xff] (%p3263_p5), %v2455_v49 }
 0x252   : > { %v2283_v17 = vadd.f32 %v2282_v13, %v2281_v61  ;;  %v2459_v13 = vld [vmem:[%s3909_s19 + $0xb0] sm:$0xff] (%p3263_p5)  ;;  %v2463_v61 = vld [vmem:[%s3909_s19 + $0xc0] sm:$0xff] (%p3263_p5) }
 0x253   : > { %v2184_v42 = vadd.f32 %v2183_v55, %v2182_v26  ;;  %2460 = vst [vmem:[%s4257_s22 + $0x130] sm:$0xff] (%p3263_p5), %v2459_v13  ;;  %2464 = vst [vmem:[%s4257_s22 + $0x140] sm:$0xff] (%p3263_p5), %v2463_v61 }
 0x254   : > { %v2285_v25 = vadd.f32 %v2284_v35, %v2283_v17  ;;  %v2467_v35 = vld [vmem:[%s3909_s19 + $0xd0] sm:$0xff] (%p3263_p5)  ;;  %v2471_v17 = vld [vmem:[%s3909_s19 + $0xe0] sm:$0xff] (%p3263_p5) }
 0x255   : > { %v2186_v47 = vadd.f32 %v2185_v39, %v2184_v42  ;;  %2468 = vst [vmem:[%s4257_s22 + $0x150] sm:$0xff] (%p3263_p5), %v2467_v35  ;;  %2472 = vst [vmem:[%s4257_s22 + $0x160] sm:$0xff] (%p3263_p5), %v2471_v17 }
 0x256   : > { %v2287_v41 = vadd.f32 %v2286_v22, %v2285_v25  ;;  %v2475_v22 = vld [vmem:[%s3909_s19 + $0xf0] sm:$0xff] (%p3263_p5) }
 0x257   : > { %v2188_v63 = vadd.f32 %v2187_v45, %v2186_v47  ;;  %v2417_v45 = vld [vmem:[%s3909_s19 + $0x8] sm:$0xff] (%p3263_p5)  ;;  %v2423_v47 = vld [vmem:[%s3909_s19 + $0x20] sm:$0xff] (%p3263_p5)  ;;  %2476 = vst [vmem:[%s4257_s22 + $0x170] sm:$0xff] (%p3263_p5), %v2475_v22 }
 0x258   : > { %v2289_v53 = vadd.f32 %v2288_v27, %v2287_v41  ;;  %2418 = vst [vmem:[%s4257_s22 + $0x8] sm:$0xff] (%p3263_p5), %v2417_v45  ;;  %2424 = vst [vmem:[%s4257_s22 + $0x20] sm:$0xff] (%p3263_p5), %v2423_v47 }
 0x259   : > { %v2190_v20 = vadd.f32 %v2189_v48, %v2188_v63  ;;  %v2427_v48 = vld [vmem:[%s3909_s19 + $0x30] sm:$0xff] (%p3263_p5)  ;;  %v2433_v63 = vld [vmem:[%s3909_s19 + $0x48] sm:$0xff] (%p3263_p5) }
 0x25a   : > { %v2291_v51 = vadd.f32 %v2290_v43, %v2289_v53  ;;  %2428 = vst [vmem:[%s4257_s22 + $0x30] sm:$0xff] (%p3263_p5), %v2427_v48  ;;  %2434 = vst [vmem:[%s4257_s22 + $0x48] sm:$0xff] (%p3263_p5), %v2433_v63 }
 0x25b   : > { %v2192_v46 = vadd.f32 %v2191_v57, %v2190_v20  ;;  %v2437_v57 = vld [vmem:[%s3909_s19 + $0x58] sm:$0xff] (%p3263_p5)  ;;  %v2443_v20 = vld [vmem:[%s3909_s19 + $0x70] sm:$0xff] (%p3263_p5) }
 0x25c   : > { %v2293_v11 = vadd.f32 %v2292_v5, %v2291_v51  ;;  %2438 = vst [vmem:[%s4257_s22 + $0x58] sm:$0xff] (%p3263_p5), %v2437_v57  ;;  %2444 = vst [vmem:[%s4257_s22 + $0x70] sm:$0xff] (%p3263_p5), %v2443_v20 }
 0x25d   : > { %v2194_v37 = vadd.f32 %v2193_v9, %v2192_v46  ;;  %v2447_v9 = vld [vmem:[%s3909_s19 + $0x80] sm:$0xff] (%p3263_p5)  ;;  %v2453_v46 = vld [vmem:[%s3909_s19 + $0x98] sm:$0xff] (%p3263_p5) }
 0x25e   : > { %v2295_v15 = vadd.f32 %v2294_v18, %v2293_v11  ;;  %2448 = vst [vmem:[%s4257_s22 + $0x100] sm:$0xff] (%p3263_p5), %v2447_v9  ;;  %2454 = vst [vmem:[%s4257_s22 + $0x118] sm:$0xff] (%p3263_p5), %v2453_v46 }
 0x25f   : > { %v2195_v0 = vrot.slane %v2194_v37, 4 }
 0x260   : > { %v2297_v55 = vadd.f32 %v2296_v6, %v2295_v15 }
 0x261   : > { %v2196_v24 = vadd.f32 %v2195_v0, %v2194_v37  ;;  %v2461_v37 = vld [vmem:[%s3909_s19 + $0xb8] sm:$0xff] (%p3263_p5) }
 0x262   : > { %v2299_v30 = vadd.f32 %v2298_v34, %v2297_v55  ;;  %2462 = vst [vmem:[%s4257_s22 + $0x138] sm:$0xff] (%p3263_p5), %v2461_v37  ;;  %v2469_v0 = vld [vmem:[%s3909_s19 + $0xd8] sm:$0xff] (%p3263_p5) }
 0x263   : > { %v2197_v4 = vrot.slane %v2196_v24, 2  ;;  %2470 = vst [vmem:[%s4257_s22 + $0x158] sm:$0xff] (%p3263_p5), %v2469_v0 }
 0x264   : > { %v2300_v44 = vrot.slane %v2299_v30, 4 }
 0x265   : > { %v2198_v16 = vadd.f32 %v2197_v4, %v2196_v24  ;;  %v2477_v24 = vld [vmem:[%s3909_s19 + $0xf8] sm:$0xff] (%p3263_p5) }
 0x266   : > { %v2301_v12 = vadd.f32 %v2300_v44, %v2299_v30  ;;  %2478 = vst [vmem:[%s4257_s22 + $0x178] sm:$0xff] (%p3263_p5), %v2477_v24 }
 0x267   : > { %v2199_v40 = vrot.slane %v2198_v16, 1 }
 0x268   : > { %v2302_v26 = vrot.slane %v2301_v12, 2 }
 0x269   : > { %v2200_v1 = vadd.f32 %v2199_v40, %v2198_v16 }
 0x26a   : > { %v2303_v52 = vadd.f32 %v2302_v26, %v2301_v12 }
 0x26b   : > { %v2201_v23 = vadd.f32 %v2200_v1, %v2131_v10 }
 0x26c   : > { %v2304_v39 = vrot.slane %v2303_v52, 1  ;;  %2320 = sbr.rel (!%p3263_p5) target bundleno = 627 (0x273), region = 166 }
 0x26d   : > { %2203 = vst.msk [vmem:[%s4354_s7] sm:$0x1] %vm2202_vm11, %v2201_v23 }
 0x26e   : > { %v2305_v8 = vadd.f32 %v2304_v39, %v2303_v52 }
 0x270   : > { %v2306_v42 = vadd.f32 %v2305_v8, %v2204_v28 }
 0x272   : > { %2307 = vst.msk [vmem:[%s4355_s8] sm:$0x1] %vm2202_vm11, %v2306_v42 }
 0x273 PF: > { %s19_s11 = sadd.s32 1, %s3114_s11   ;;  %s4367_s9 = sld [smem:[#allocation7_spill]] }
 0x274   : > { %p16_p12 = scmp.ge.s32.totalorder %s19_s11, 4   ;;  %s4368_s21 = sld [smem:[#allocation6_spill]] }
 0x275   : > { %s4369_s27 = smov %s3086_s28  ;;  %s4370_s28 = smov %s3268_s18 }
 0x276   : > { %s4371_s3 = smov %s3094_s29  ;;  %s4372_s29 = smov %s3250_s13 }
 0x277   : > { %s4373_s4 = smov %s3102_s30  ;;  %18 = sbr.rel (!%p16_p12) target bundleno = 7 (0x7), region = 280 }
 0x279   : > { %s4374_s30 = smov %s4367_s9  ;;  %s4375_s9 = smov %s3110_s10 }
 0x27a   : > { %s4376_s10 = smov %s4368_s21 }

// kernel: double_conv_forward.4
= control target key start
LH: loop header
LB: loop body
LE: loop exit
PB: predicated region body
PF: predicated region fallthrough
CT: control target
= control target key end

     0   :  { %s4850_s0 = inlined_call_operand.vmem [shape: f32[2,16,16,32], index: 0, kind: input, shape index: {}, may-alias: {0,1,2}]   ;;  %s4851_s1 = inlined_call_operand.vmem [shape: f32[2,16,16,32], index: 1, kind: input, shape index: {}, may-alias: {0,1,2}]   ;;  %s4852_s2 = inlined_call_operand.vmem [shape: f32[2,16,16,32], index: 2, kind: input, shape index: {}, may-alias: {0,1,2}]   ;;  %s4853_s3 = inlined_call_operand.vmem [shape: f32[1,32], index: 3, kind: input, shape index: {}]   ;;  %s4854_s4 = inlined_call_operand.vmem [shape: f32[1,32], index: 4, kind: input, shape index: {}]   ;;  %s4855_s5 = inlined_call_operand.vmem [shape: bf16[3,96,32], index: 5, kind: input, shape index: {}]   ;;  %s4856_s6 = inlined_call_operand.vmem [shape: f32[2,16,16,32], index: 6, kind: output, shape index: {0}]   ;;  %s4857_s7 = inlined_call_operand.vmem [shape: f32[1,32], index: 7, kind: output, shape index: {1}]   ;;  %s4858_s8 = inlined_call_operand.vmem [shape: f32[1,32], index: 8, kind: output, shape index: {2}]  }
   0x1   :  { %4860 = sst [smem:[#allocation9_spill]] %s4850_s0 }
   0x2   :  { %4861 = sst [smem:[#allocation10_spill]] %s4856_s6 }
   0x3   :  { %s3518_s27 = smov 0   ;;  %s3520_s28 = smov 0  }
   0x4   :  { %s3522_s29 = smov 0   ;;  %s3524_s30 = smov 0  }
   0x5   :  { %s3526_s9 = smov 0   ;;  %s3528_s10 = smov 0  }
   0x6   :  { %s3530_s11 = smov 0   ;;  %s3532_s12 = smov 0  }
   0x7   :  { %s3534_s13 = smov 0  }
   0x8 LB: > { %s28_s14 = sadd.s32 1, %s3464_s12  ;;  %s38_s15 = sadd.s32 1, %s3456_s10  ;;  %s3468_s13 = sphi %s3534_s13, %s19_s13   ;;  %s3464_s12 = sphi %s3532_s12, %s4883_s12   ;;  %s3460_s11 = sphi %s3530_s11, %s4882_s11   ;;  %s3456_s10 = sphi %s3528_s10, %s4881_s10   ;;  %s3452_s9 = sphi %s3526_s9, %s4880_s9   ;;  %s3448_s30 = sphi %s3524_s30, %s4879_s30   ;;  %s3444_s29 = sphi %s3522_s29, %s4878_s29   ;;  %s3440_s28 = sphi %s3520_s28, %s4877_s28   ;;  %s3436_s27 = sphi %s3518_s27, %s4876_s27  }
   0x9   : > { %p29_p0 = scmp.ge.s32.totalorder %s28_s14, 2  ;;  %p45_p1 = scmp.ne.s32.totalorder %s3456_s10, %s3452_s9 }
   0xa   : > { %p46_p2 = scmp.eq.s32.totalorder %s3468_s13, 0  ;;  %s2886_s17 = sshll.u32 %s3464_s12, 3 }
   0xb   : > { %s4885_s14 = smov (%p29_p0, %s28_s14), 0  ;;  %s2887_s19 = sadd.s32 4294967295, %s2886_s17 }
   0xc   : > { %4862 = sst [smem:[#allocation6_spill]] %s4885_s14  ;;  %p3575_p3 = por %p46_p2, %p45_p1 }
   0xd   : > { %s35_s18 = ssub.s32 %s3464_s12, %s4885_s14  ;;  %p63_p5 = scmp.gt.s32.totalorder %s2887_s19, 0 }
   0xe   : > { %p36_p4 = scmp.eq.s32.totalorder %s35_s18, 0  ;;  %s2888_s20 = sshll.u32 %s4885_s14, 3 }
   0xf   : > { %s72_s21 = sadd.s32 1, %s3448_s30  ;;  %s4887_s19 = smov (!%p63_p5, %s2887_s19), 0 }
  0x10   : > { %s3585_s22 = scalar_select %p36_p4, %s3456_s10, %s38_s15  }
  0x11   : > { %s2889_s23 = sadd.s32 4294967295, %s2888_s20  ;;  %p79_p6 = scmp.ne.s32.totalorder %s3448_s30, %s3444_s29 }
  0x12   : > { %4864 = sst [smem:[#allocation7_spill]] %s3585_s22  ;;  %p67_p7 = scmp.gt.s32.totalorder %s2889_s23, 0 }
  0x13   : > { %s3015_s24 = sadd.s32 8, %s2886_s17  ;;  %p3593_p8 = por %p79_p6, %p46_p2 }
  0x14   : > { %p97_p9 = scmp.lt.s32.totalorder %s3015_s24, 15  ;;  %s4889_s23 = smov (!%p67_p7, %s2889_s23), 0 }
  0x15   : > { %s69_s26 = ssub.s32 %s4887_s19, %s4889_s23  ;;  %s3017_s15 = sadd.s32 8, %s2888_s20 }
  0x16   : > { %s4891_s24 = smov (!%p97_p9, %s3015_s24), 15  ;;  %p70_p10 = scmp.eq.s32.totalorder %s69_s26, 0 }
  0x17   : > { %p101_p11 = scmp.lt.s32.totalorder %s3017_s15, 15  ;;  %s2884_s18 = sadd.s32 4294967295, %s3468_s13  }
  0x18   : > { %p113_p12 = scmp.ne.s32.totalorder %s3440_s28, %s3436_s27  ;;  %p213_p0 = scmp.eq.s32.totalorder %s2884_s18, 1 }
  0x19   : > { %s3604_s17 = scalar_select %p70_p10, %s3448_s30, %s72_s21  }
  0x1a   : > { %s4893_s15 = smov (!%p101_p11, %s3017_s15), 15  ;;  %p3608_p13 = por %p113_p12, %p46_p2 }
  0x1b   : > { %4866 = sst [smem:[#allocation8_spill]] %s3604_s17  ;;  %s103_s22 = ssub.s32 %s4891_s24, %s4893_s15 }
  0x1c   : > { %s106_s6 = sadd.s32 1, %s3440_s28  ;;  %p104_p4 = scmp.eq.s32.totalorder %s103_s22, 0 }
  0x1d   : > { %p3617_p5 = por %p213_p0, %p45_p1  ;;  %p2894_p6 = scmp.ge.s32.totalorder %s3468_s13, 2 }
  0x1e   : > { %s3622_s20 = scalar_select %p104_p4, %s3440_s28, %s106_s6  }
  0x1f   : > { %300 = sbr.rel (%p2894_p6) target bundleno = 78 (0x4e), region = 28 }
  0x26   : > { %303 = sbr.rel (!%p3575_p3) target bundleno = 64 (0x40), region = 32  ;;  %s305_s21 = sand.u32 (%p3575_p3), 1, %s3456_s10  }
  0x27   : > { %s3019_s26 = sshll.u32 (%p3575_p3), %s3464_s12, 7  ;;  %s2895_s15 = sshll.u32 (%p3575_p3), %s305_s21, 8 }
  0x28   : > { %s4869_s0 = sld [smem:[#allocation9_spill]] (%p3575_p3)  ;;  %s3637_s6 = scalar_lea.vmem (%p3575_p3), [#allocation2], %s2895_s15 }
  0x2e   : > { %s3632_s17 = scalar_lea.vmem %s4869_s0, %s3019_s26 }
  0x2f   : > { %v401_v0 = vld [vmem:[%s3632_s17] sm:$0xff]  ;;  %v403_v1 = vld [vmem:[%s3632_s17 + $0x8] sm:$0xff]  ;;  %v405_v2 = vld [vmem:[%s3632_s17 + $0x10] sm:$0xff] }
  0x30   : > { %402 = vst [vmem:[%s3637_s6] sm:$0xff] %v401_v0  ;;  %404 = vst [vmem:[%s3637_s6 + $0x8] sm:$0xff] %v403_v1  ;;  %v407_v3 = vld [vmem:[%s3632_s17 + $0x18] sm:$0xff]  ;;  %v409_v4 = vld [vmem:[%s3632_s17 + $0x20] sm:$0xff] }
  0x31   : > { %406 = vst [vmem:[%s3637_s6 + $0x10] sm:$0xff] %v405_v2  ;;  %v411_v5 = vld [vmem:[%s3632_s17 + $0x28] sm:$0xff]  ;;  %408 = vst [vmem:[%s3637_s6 + $0x18] sm:$0xff] %v407_v3  ;;  %v413_v6 = vld [vmem:[%s3632_s17 + $0x30] sm:$0xff] }
  0x32   : > { %410 = vst [vmem:[%s3637_s6 + $0x20] sm:$0xff] %v409_v4  ;;  %412 = vst [vmem:[%s3637_s6 + $0x28] sm:$0xff] %v411_v5  ;;  %v415_v7 = vld [vmem:[%s3632_s17 + $0x38] sm:$0xff]  ;;  %v417_v8 = vld [vmem:[%s3632_s17 + $0x40] sm:$0xff] }
  0x33   : > { %414 = vst [vmem:[%s3637_s6 + $0x30] sm:$0xff] %v413_v6  ;;  %416 = vst [vmem:[%s3637_s6 + $0x38] sm:$0xff] %v415_v7  ;;  %v419_v9 = vld [vmem:[%s3632_s17 + $0x48] sm:$0xff]  ;;  %v421_v10 = vld [vmem:[%s3632_s17 + $0x50] sm:$0xff] }
  0x34   : > { %418 = vst [vmem:[%s3637_s6 + $0x40] sm:$0xff] %v417_v8  ;;  %v423_v11 = vld [vmem:[%s3632_s17 + $0x58] sm:$0xff]  ;;  %420 = vst [vmem:[%s3637_s6 + $0x48] sm:$0xff] %v419_v9  ;;  %v425_v12 = vld [vmem:[%s3632_s17 + $0x60] sm:$0xff] }
  0x35   : > { %422 = vst [vmem:[%s3637_s6 + $0x50] sm:$0xff] %v421_v10  ;;  %424 = vst [vmem:[%s3637_s6 + $0x58] sm:$0xff] %v423_v11  ;;  %v427_v13 = vld [vmem:[%s3632_s17 + $0x68] sm:$0xff]  ;;  %v429_v14 = vld [vmem:[%s3632_s17 + $0x70] sm:$0xff] }
  0x36   : > { %426 = vst [vmem:[%s3637_s6 + $0x60] sm:$0xff] %v425_v12  ;;  %428 = vst [vmem:[%s3637_s6 + $0x68] sm:$0xff] %v427_v13  ;;  %v431_v15 = vld [vmem:[%s3632_s17 + $0x78] sm:$0xff]  ;;  %v433_v16 = vld [vmem:[%s3632_s17 + $0x100] sm:$0xff] }
  0x37   : > { %430 = vst [vmem:[%s3637_s6 + $0x70] sm:$0xff] %v429_v14  ;;  %v435_v17 = vld [vmem:[%s3632_s17 + $0x108] sm:$0xff]  ;;  %432 = vst [vmem:[%s3637_s6 + $0x78] sm:$0xff] %v431_v15  ;;  %v437_v18 = vld [vmem:[%s3632_s17 + $0x110] sm:$0xff] }
  0x38   : > { %434 = vst [vmem:[%s3637_s6 + $0x80] sm:$0xff] %v433_v16  ;;  %436 = vst [vmem:[%s3637_s6 + $0x88] sm:$0xff] %v435_v17  ;;  %v439_v19 = vld [vmem:[%s3632_s17 + $0x118] sm:$0xff]  ;;  %v441_v20 = vld [vmem:[%s3632_s17 + $0x120] sm:$0xff] }
  0x39   : > { %438 = vst [vmem:[%s3637_s6 + $0x90] sm:$0xff] %v437_v18  ;;  %440 = vst [vmem:[%s3637_s6 + $0x98] sm:$0xff] %v439_v19  ;;  %v443_v21 = vld [vmem:[%s3632_s17 + $0x128] sm:$0xff]  ;;  %v445_v22 = vld [vmem:[%s3632_s17 + $0x130] sm:$0xff] }
  0x3a   : > { %442 = vst [vmem:[%s3637_s6 + $0xa0] sm:$0xff] %v441_v20  ;;  %v447_v23 = vld [vmem:[%s3632_s17 + $0x138] sm:$0xff]  ;;  %444 = vst [vmem:[%s3637_s6 + $0xa8] sm:$0xff] %v443_v21  ;;  %v449_v24 = vld [vmem:[%s3632_s17 + $0x140] sm:$0xff] }
  0x3b   : > { %446 = vst [vmem:[%s3637_s6 + $0xb0] sm:$0xff] %v445_v22  ;;  %448 = vst [vmem:[%s3637_s6 + $0xb8] sm:$0xff] %v447_v23  ;;  %v451_v25 = vld [vmem:[%s3632_s17 + $0x148] sm:$0xff]  ;;  %v453_v26 = vld [vmem:[%s3632_s17 + $0x150] sm:$0xff] }
  0x3c   : > { %450 = vst [vmem:[%s3637_s6 + $0xc0] sm:$0xff] %v449_v24  ;;  %452 = vst [vmem:[%s3637_s6 + $0xc8] sm:$0xff] %v451_v25  ;;  %v455_v27 = vld [vmem:[%s3632_s17 + $0x158] sm:$0xff]  ;;  %v457_v28 = vld [vmem:[%s3632_s17 + $0x160] sm:$0xff] }
  0x3d   : > { %454 = vst [vmem:[%s3637_s6 + $0xd0] sm:$0xff] %v453_v26  ;;  %v459_v29 = vld [vmem:[%s3632_s17 + $0x168] sm:$0xff]  ;;  %456 = vst [vmem:[%s3637_s6 + $0xd8] sm:$0xff] %v455_v27  ;;  %v461_v30 = vld [vmem:[%s3632_s17 + $0x170] sm:$0xff] }
  0x3e   : > { %458 = vst [vmem:[%s3637_s6 + $0xe0] sm:$0xff] %v457_v28  ;;  %460 = vst [vmem:[%s3637_s6 + $0xe8] sm:$0xff] %v459_v29  ;;  %v463_v31 = vld [vmem:[%s3632_s17 + $0x178] sm:$0xff] }
  0x3f   : > { %462 = vst [vmem:[%s3637_s6 + $0xf0] sm:$0xff] %v461_v30  ;;  %464 = vst [vmem:[%s3637_s6 + $0xf8] sm:$0xff] %v463_v31 }
  0x40 PF: > { %470 = sbr.rel (!%p3593_p8) target bundleno = 71 (0x47), region = 70  ;;  %s472_s16 = sand.u32 (%p3593_p8), 1, %s3448_s30  }
  0x41   : > { %s3020_s21 = sshll.u32 (%p3593_p8), %s4887_s19, 4  ;;  %s2899_s26 = sshll.u32 (%p3593_p8), %s472_s16, 5 }
  0x42   : > { %s481_s22 = scalar_lea.vmem (%p3593_p8), %s4851_s1, %s3020_s21  ;;  %s474_s0 = scalar_lea.vmem (%p3593_p8), [#allocation3], %s2899_s26 }
  0x43   : > { %v515_v32 = vld [vmem:[%s481_s22] sm:$0xff] (%p3593_p8)  ;;  %v517_v33 = vld [vmem:[%s481_s22 + $0x8] sm:$0xff] (%p3593_p8) }
  0x44   : > { %v519_v34 = vld [vmem:[%s481_s22 + $0x100] sm:$0xff] (%p3593_p8)  ;;  %516 = vst [vmem:[%s474_s0] sm:$0xff] (%p3593_p8), %v515_v32  ;;  %518 = vst [vmem:[%s474_s0 + $0x8] sm:$0xff] (%p3593_p8), %v517_v33  ;;  %v521_v35 = vld [vmem:[%s481_s22 + $0x108] sm:$0xff] (%p3593_p8) }
  0x45   : > { %520 = vst [vmem:[%s474_s0 + $0x10] sm:$0xff] (%p3593_p8), %v519_v34  ;;  %522 = vst [vmem:[%s474_s0 + $0x18] sm:$0xff] (%p3593_p8), %v521_v35 }
  0x47 PF: > { %528 = sbr.rel (!%p3608_p13) target bundleno = 78 (0x4e), region = 108  ;;  %s530_s19 = sand.u32 (%p3608_p13), 1, %s3440_s28  }
  0x48   : > { %s3023_s25 = sshll.u32 (%p3608_p13), %s4891_s24, 4  ;;  %s2904_s17 = sshll.u32 (%p3608_p13), %s530_s19, 5 }
  0x49   : > { %s539_s21 = scalar_lea.vmem (%p3608_p13), %s4852_s2, %s3023_s25  ;;  %s532_s26 = scalar_lea.vmem (%p3608_p13), [#allocation4], %s2904_s17 }
  0x4a   : > { %v573_v36 = vld [vmem:[%s539_s21] sm:$0xff] (%p3608_p13)  ;;  %v575_v37 = vld [vmem:[%s539_s21 + $0x8] sm:$0xff] (%p3608_p13) }
  0x4b   : > { %v577_v38 = vld [vmem:[%s539_s21 + $0x100] sm:$0xff] (%p3608_p13)  ;;  %574 = vst [vmem:[%s532_s26] sm:$0xff] (%p3608_p13), %v573_v36  ;;  %576 = vst [vmem:[%s532_s26 + $0x8] sm:$0xff] (%p3608_p13), %v575_v37  ;;  %v579_v39 = vld [vmem:[%s539_s21 + $0x108] sm:$0xff] (%p3608_p13) }
  0x4c   : > { %578 = vst [vmem:[%s532_s26 + $0x10] sm:$0xff] (%p3608_p13), %v577_v38  ;;  %580 = vst [vmem:[%s532_s26 + $0x18] sm:$0xff] (%p3608_p13), %v579_v39 }
  0x4e PF: > { %p2908_p1 = scmp.ge.s32.totalorder %s3468_s13, 1  ;;  %p585_p2 = scmp.lt.s32.totalorder %s3468_s13, 3 }
  0x50   : > { %p586_p3 = pnand %p2908_p1, %p585_p2 }
  0x51   : > { %s592_s0 = sand.u32 (!%p586_p3), 1, %s3452_s9   ;;  %v3722_v40 = vld [vmem:[%s4853_s3] ss:$0 sm:$0xff] (!%p586_p3)  ;;  %v3375_v41 = vld [vmem:[%s4855_s5 + $0x30] sm:$0xff] (!%p586_p3)   ;;  %s599_s9 = sand.u32 (!%p586_p3), 1, %s3444_s29   ;;  %vm1089_vm0 = vcmask (!%p586_p3), 1040384  }
  0x52   : > { %589 = sbr.rel (%p586_p3) target bundleno = 651 (0x28b), region = 146  ;;  %s3717_s14 = sshll.u32 (!%p586_p3), %s592_s0, 8  ;;  %v3730_v42 = vld [vmem:[%s4854_s4] ss:$0 sm:$0xff] (!%p586_p3)  ;;  %3092 = vmatprep.subr.bf16.mxu1 (!%p586_p3), %v3375_v41  ;;  %vm1090_vm1 = vsmask.f32 (!%p586_p3), 256 }
  0x53   : > { %s3733_s17 = scalar_lea.vmem (!%p586_p3), [#allocation2], %s3717_s14  ;;  %p853_p7 = scmp.gt.s32.totalorder (!%p586_p3), %s3460_s11, 0  ;;  %3093 = vmatpush3.bf16.msra.mxu1 (!%p586_p3), %v3375_v41  ;;  %vm1453_vm2 = vcmask (!%p586_p3), 1046528   ;;  %vm3782_vm3 = vmand (!%p586_p3), %vm1089_vm0, %vm1090_vm1  ;;  %vm1132_vm4 = vsmask.f32 (!%p586_p3), 7424  ;;  %vm1554_vm5 = vcmask (!%p586_p3), 261120  }
  0x54   : > { %v679_v43 = vld [vmem:[%s3733_s17 + $0x10] sm:$0xff] (!%p586_p3)  ;;  %v680_v44 = vld [vmem:[%s3733_s17 + $0x18] sm:$0xff] (!%p586_p3)  ;;  %v677_v45 = vld [vmem:[%s3733_s17] sm:$0xff] (!%p586_p3)  ;;  %s2910_s6 = sshll.u32 (!%p586_p3), %s599_s9, 5  ;;  %p890_p9 = scmp.lt.s32.totalorder (!%p586_p3), %s3460_s11, 1  ;;  %vm1595_vm6 = vcmask (!%p586_p3), 523264  }
  0x55   : > { %v718_v46 = vmul.f32 (!%p586_p3), %v3722_v40, %v679_v43  ;;  %v719_v47 = vmul.f32 (!%p586_p3), %v3722_v40, %v680_v44  ;;  %v678_v48 = vld [vmem:[%s3733_s17 + $0x8] sm:$0xff] (!%p586_p3)  ;;  %v716_v49 = vmul.f32 (!%p586_p3), %v3722_v40, %v677_v45  ;;  %v683_v50 = vld [vmem:[%s3733_s17 + $0x30] sm:$0xff] (!%p586_p3)  ;;  %v684_v51 = vld [vmem:[%s3733_s17 + $0x38] sm:$0xff] (!%p586_p3)  ;;  %s3753_s29 = scalar_lea.vmem (!%p586_p3), [#allocation3], %s2910_s6  ;;  %vm1697_vm7 = vcmask (!%p586_p3), 785408   ;;  %p3005_p11 = scmp.ne.s32.totalorder (!%p586_p3), %s3460_s11, 0 }
  0x56   : > { %v717_v52 = vmul.f32 (!%p586_p3), %v3722_v40, %v678_v48  ;;  %v722_v53 = vmul.f32 (!%p586_p3), %v3722_v40, %v683_v50  ;;  %v723_v54 = vmul.f32 (!%p586_p3), %v3722_v40, %v684_v51  ;;  %v681_v55 = vld [vmem:[%s3733_s17 + $0x20] sm:$0xff] (!%p586_p3)  ;;  %v836_v60 = vld [vmem:[%s3753_s29 + $0x8] sm:$0xff] (!%p586_p3)  ;;  %v687_v7 = vld [vmem:[%s3733_s17 + $0x50] sm:$0xff] (!%p586_p3) }
  0x57   : > { %v757_v56 = vadd.f32 (!%p586_p3), %v3730_v42, %v718_v46  ;;  %v758_v57 = vadd.f32 (!%p586_p3), %v3730_v42, %v719_v47  ;;  %v755_v58 = vadd.f32 (!%p586_p3), %v3730_v42, %v716_v49  ;;  %v835_v59 = vld [vmem:[%s3753_s29] sm:$0xff] (!%p586_p3)  ;;  %v720_v61 = vmul.f32 (!%p586_p3), %v3722_v40, %v681_v55  ;;  %v682_v2 = vld [vmem:[%s3733_s17 + $0x28] sm:$0xff] (!%p586_p3)  ;;  %v688_v24 = vld [vmem:[%s3733_s17 + $0x58] sm:$0xff] (!%p586_p3) }
  0x58   : > { %v756_v62 = vadd.f32 (!%p586_p3), %v3730_v42, %v717_v52  ;;  %v839_v63 = vmul.f32 (!%p586_p3), %v3722_v40, %v835_v59  ;;  %v840_v0 = vmul.f32 (!%p586_p3), %v3722_v40, %v836_v60  ;;  %v761_v1 = vadd.f32 (!%p586_p3), %v3730_v42, %v722_v53  ;;  %v685_v25 = vld [vmem:[%s3733_s17 + $0x40] sm:$0xff] (!%p586_p3)  ;;  %v3376_v45 = vld [vmem:[%s4855_s5 + $0x38] sm:$0xff] (!%p586_p3)  }
  0x59   : > { %s854_s16 = scalar_select %p853_p7, 1, 0  ;;  %v789_v3 = vmax.f32 %v757_v56, 0.0  ;;  %v790_v4 = vmax.f32 %v758_v57, 0.0  ;;  %v787_v5 = vmax.f32 %v755_v58, 0.0  ;;  %v762_v6 = vadd.f32 %v3730_v42, %v723_v54  ;;  %3094 = vmatprep.subr.bf16.mxu1 %v3376_v45 }
  0x5a   : > { %v788_v8 = vmax.f32 %v756_v62, 0.0  ;;  %v843_v9 = vadd.f32 %v3730_v42, %v839_v63  ;;  %v844_v10 = vadd.f32 %v3730_v42, %v840_v0  ;;  %v793_v11 = vmax.f32 %v761_v1, 0.0  ;;  %3095 = vmatpush3.bf16.msra.mxu1 %v3376_v45 }
  0x5b   : > { %s3765_s21 = scvt.s32.f32 %s854_s16  ;;  %v820_v12 = vpack.c.bf16 %v790_v4, %v789_v3  ;;  %v794_v13 = vmax.f32 %v762_v6, 0.0  ;;  %v721_v14 = vmul.f32 %v3722_v40, %v682_v2  ;;  %v759_v15 = vadd.f32 %v3730_v42, %v720_v61  ;;  %s3470_s16 = smov 64   ;;  %v3837_v6 = vld [vmem:[%s4855_s5] sm:$0xff]  }
  0x5c   : > { %v819_v16 = vpack.c.bf16 %v788_v8, %v787_v5  ;;  %v847_v17 = vmax.f32 %v843_v9, 0.0  ;;  %v848_v18 = vmax.f32 %v844_v10, 0.0  ;;  %v726_v19 = vmul.f32 %v3722_v40, %v687_v7  ;;  %3136 = vmatprep.subr.bf16.mxu0 %v3837_v6 }
  0x5d   : > { %s858_s26 = sshrl.u32 %s3765_s21, 16  ;;  %p857_p8 = scmp.ne.f32.partialorder %s3765_s21, %s3765_s21  ;;  %v924_v20 = vshrl.u32 %v820_v12, 16  ;;  %v927_v21 = vshll.u32 %v820_v12, 16  ;;  %v822_v22 = vpack.c.bf16 %v794_v13, %v793_v11  ;;  %v760_v23 = vadd.f32 %v3730_v42, %v721_v14  ;;  %v3378_v11 = vld [vmem:[%s4855_s5 + $0x40] sm:$0xff]   ;;  %3137 = vmatpush3.bf16.msra.mxu0 %v3837_v6 }
  0x5e   : > { %s859_s0 = sand.u32 1, %s858_s26  ;;  %v917_v27 = vshrl.u32 %v819_v16, 16  ;;  %v920_v28 = vshll.u32 %v819_v16, 16  ;;  %v851_v29 = vpack.c.bf16 %v848_v18, %v847_v17  ;;  %v791_v30 = vmax.f32 %v759_v15, 0.0  ;;  %3096 = vmatprep.subr.bf16.mxu1 %v3378_v11 }
  0x5f   : > { %s860_s24 = sadd.s32 32767, %s859_s0  ;;  %v926_v31 = vrot.slane %v924_v20, 7  ;;  %v938_v32 = vshrl.u32 %v822_v22, 16  ;;  %v941_v33 = vshll.u32 %v822_v22, 16  ;;  %v792_v34 = vmax.f32 %v760_v23, 0.0  ;;  %v686_v20 = vld [vmem:[%s3733_s17 + $0x48] sm:$0xff]  ;;  %3097 = vmatpush3.bf16.msra.mxu1 %v3378_v11 }
  0x60   : > { %s861_s15 = sadd.s32 %s860_s24, %s3765_s21  ;;  %v919_v35 = vrot.slane %v917_v27, 7  ;;  %v3791_v36 = vmul.f32 %v3722_v40, %v688_v24  ;;  %v3794_v37 = vadd.f32 %v3730_v42, %v726_v19  ;;  %v3797_v38 = vmul.f32 %v3722_v40, %v685_v25  ;;  %v3379_v25 = vld [vmem:[%s4855_s5 + $0x8] sm:$0xff]  }
  0x61   : > { %s862_s18 = sand.u32 4294901760, %s861_s15  ;;  %v929_v39 = vor.u32 %v927_v21, %v926_v31  ;;  %v1114_v41 = vsel %vm3782_vm3, %v926_v31, 0  ;;  %v940_v43 = vrot.slane %v938_v32, 7  ;;  %v3801_v44 = vpack.c.bf16 %v792_v34, %v791_v30  ;;  %s3471_s15 = smov 32   ;;  %v3380_v31 = vld [vmem:[%s4855_s5 + $0x48] sm:$0xff]   ;;  %3138 = vmatprep.subr.bf16.mxu0 %v3379_v25 }
  0x62   : > { %s4895_s18 = smov (%p857_p8, %s862_s18), 2143289344  ;;  %v1461_v46 = vrot.slane %v1114_v41, 1  ;;  %v922_v47 = vor.u32 %v920_v28, %v919_v35  ;;  %v1113_v48 = vsel %vm3782_vm3, %v919_v35, 0  ;;  %v1165_v49 = vshll.u32 %v1114_v41, 16  ;;  %3098 = vmatprep.subr.bf16.mxu1 %v3380_v31  ;;  %3139 = vmatpush3.bf16.msra.mxu0 %v3379_v25 }
  0x63   : > { %s865_s25 = sshrl.u32 %s4895_s18, 16  ;;  %v3810_v50 = vsel %vm3782_vm3, 0, %v929_v39  ;;  %v1458_v51 = vrot.slane %v1113_v48, 1  ;;  %v1153_v52 = vshll.u32 %v1113_v48, 16  ;;  %v943_v53 = vor.u32 %v941_v33, %v940_v43  ;;  %v3872_v39 = vld [vmem:[%s4855_s5 + $0x10] sm:$0xff]   ;;  %3099 = vmatpush3.bf16.msra.mxu1 %v3380_v31 }
  0x64   : > { %s866_s9 = sshll.u32 %s865_s25, 16  ;;  %v1460_v54 = vrot.slane %v3810_v50, 1  ;;  %v3815_v55 = vsel %vm3782_vm3, 0, %v922_v47  ;;  %v1158_v56 = vshrl.u32 %v3810_v50, 16  ;;  %v1160_v57 = vshll.u32 %v3810_v50, 16  ;;  %3140 = vmatprep.subr.bf16.mxu0 %v3872_v39  ;;  %v3382_v48 = vld [vmem:[%s4855_s5 + $0x50] sm:$0xff]  }
  0x65   : > { %s3819_s6 = sor.u32 %s866_s9, %s865_s25  ;;  %v1457_v58 = vrot.slane %v3815_v55, 1  ;;  %v1167_v59 = vrot.slane %v1165_v49, 1  ;;  %v1146_v60 = vshrl.u32 %v3815_v55, 16  ;;  %v1148_v61 = vshll.u32 %v3815_v55, 16  ;;  %3100 = vmatprep.subr.bf16.mxu1 %v3382_v48  ;;  %s606_s9 = sand.u32 1, %s3436_s27  }
  0x66   : > { %v1462_v62 = vsel %vm1453_vm2, %v1460_v54, %v1461_v46  ;;  %v1162_v63 = vrot.slane %v1160_v57, 1  ;;  %v1155_v0 = vrot.slane %v1153_v52, 1  ;;  %v868_v1 = vstv %s3819_s6  ;;  %v691_v54 = vld [vmem:[%s3733_s17 + $0x70] sm:$0xff]  ;;  %3141 = vmatpush3.bf16.msra.mxu0 %v3872_v39  ;;  %s891_s18 = scalar_select %p890_p9, 1, 0 }
  0x67   : > { %1518 = vrot.lane.b32.xlu1 %v1462_v62, %s3470_s16  ;;  %v1459_v2 = vsel %vm1453_vm2, %v1457_v58, %v1458_v51  ;;  %v1150_v3 = vrot.slane %v1148_v61, 1  ;;  %v870_v4 = vmul.bf16 %v868_v1, %v851_v29  ;;  %v3832_v5 = vsel %vm3782_vm3, 0, %v943_v53  ;;  %v3900_v61 = vld [vmem:[%s4855_s5 + $0x18] sm:$0xff]   ;;  %3101 = vmatpush3.bf16.msra.mxu1 %v3382_v48  ;;  %s4063_s27 = sshll.u32 %s606_s9, 5 }
  0x68   : > { %1516 = vrot.lane.b32.xlu0 %v1459_v2, %s3470_s16  ;;  %v1163_v7 = vor.u32 %v1162_v63, %v1158_v56  ;;  %v1116_v8 = vsel %vm3782_vm3, %v940_v43, 0  ;;  %v1182_v9 = vshrl.u32 %v3832_v5, 16  ;;  %v1184_v10 = vshll.u32 %v3832_v5, 16  ;;  %v692_v56 = vld [vmem:[%s3733_s17 + $0x78] sm:$0xff]  ;;  %3142 = vmatprep.subr.bf16.mxu0 %v3900_v61  ;;  %s4015_s22 = scvt.s32.f32 %s891_s18  ;;  %s4090_s24 = scalar_lea.vmem [#allocation4], %s4063_s27 }
  0x69   : > { %v1151_v12 = vor.u32 %v1150_v3, %v1146_v60  ;;  %v910_v13 = vshrl.u32 %v870_v4, 16  ;;  %v913_v14 = vshll.u32 %v870_v4, 16  ;;  %v1189_v15 = vshll.u32 %v1116_v8, 16  ;;  %v3384_v3 = vld [vmem:[%s4855_s5 + $0x58] sm:$0xff]  }
  0x6a   : > { %v1168_v16 = vsel %vm1132_vm4, %v1163_v7, %v1167_v59  ;;  %v1186_v17 = vrot.slane %v1184_v10, 1  ;;  %v931_v18 = vshrl.u32 %v3801_v44, 16  ;;  %v934_v19 = vshll.u32 %v3801_v44, 16  ;;  %3102 = vmatprep.subr.bf16.mxu1 %v3384_v3  ;;  %3143 = vmatpush3.bf16.msra.mxu0 %v3900_v61  ;;  %s895_s19 = sshrl.u32 %s4015_s22, 16  ;;  %p894_p10 = scmp.ne.f32.partialorder %s4015_s22, %s4015_s22 }
  0x6b   : > { %1377 = vrot.lane.b32.xlu1 %v1168_v16, %s3471_s15  ;;  %v1156_v21 = vsel %vm1132_vm4, %v1151_v12, %v1155_v0  ;;  %v912_v22 = vrot.slane %v910_v13, 7  ;;  %v1191_v23 = vrot.slane %v1189_v15, 1  ;;  %v1466_v24 = vrot.slane %v3832_v5, 1  ;;  %3103 = vmatpush3.bf16.msra.mxu1 %v3384_v3  ;;  %s4043_s25 = sand.u32 1, %s895_s19 }
  0x6c   : > { %1375 = vrot.lane.b32.xlu0 %v1156_v21, %s3471_s15  ;;  %v1187_v27 = vor.u32 %v1186_v17, %v1182_v9  ;;  %v933_v28 = vrot.slane %v931_v18, 7  ;;  %v1467_v29 = vrot.slane %v1116_v8, 1  ;;  %v766_v30 = vadd.f32 %v3730_v42, %v3791_v36  ;;  %3224 = vmatprep.subr.bf16.mxu1 %v3837_v6  ;;  %v696_v6 = vld [vmem:[%s3733_s17 + $0x98] sm:$0xff]  ;;  %s897_s21 = sadd.s32 32767, %s4043_s25 }
  0x6d   : > { %v915_v32 = vor.u32 %v913_v14, %v912_v22  ;;  %v1112_v33 = vsel %vm3782_vm3, %v912_v22, 0  ;;  %v797_v34 = vmax.f32 %v3794_v37, 0.0  ;;  %v725_v35 = vmul.f32 %v3722_v40, %v686_v20  ;;  %v3918_v14 = vld [vmem:[%s4855_s5 + $0x20] sm:$0xff]   ;;  %s4070_s26 = sadd.s32 %s897_s21, %s4015_s22 }
  0x6e   : > { %v1455_v41 = vrot.slane %v1112_v33, 1  ;;  %v1141_v36 = vshll.u32 %v1112_v33, 16  ;;  %v1192_v43 = vsel %vm1132_vm4, %v1187_v27, %v1191_v23  ;;  %v936_v44 = vor.u32 %v934_v19, %v933_v28  ;;  %v689_v19 = vld [vmem:[%s3733_s17 + $0x60] sm:$0xff]  ;;  %v690_v23 = vld [vmem:[%s3733_s17 + $0x68] sm:$0xff]  ;;  %3144 = vmatprep.subr.bf16.mxu0 %v3918_v14  ;;  %s899_s0 = sand.u32 4294901760, %s4070_s26 }
  0x6f   : > { %v3877_v37 = vsel %vm3782_vm3, 0, %v915_v32  ;;  %v1115_v45 = vsel %vm3782_vm3, %v933_v28, 0  ;;  %v3882_v46 = vsel %vm1453_vm2, %v1466_v24, %v1467_v29  ;;  %v798_v47 = vmax.f32 %v766_v30, 0.0  ;;  %v3936_v29 = vld [vmem:[%s4855_s5 + $0x28] sm:$0xff]   ;;  %3145 = vmatpush3.bf16.msra.mxu0 %v3918_v14  ;;  %s4897_s0 = smov (%p894_p10, %s899_s0), 2143289344 }
  0x70   : > { %v1454_v49 = vrot.slane %v3877_v37, 1  ;;  %v1134_v51 = vshrl.u32 %v3877_v37, 16  ;;  %v1136_v52 = vshll.u32 %v3877_v37, 16  ;;  %v1143_v53 = vrot.slane %v1141_v36, 1  ;;  %3146 = vmatprep.subr.bf16.mxu0 %v3936_v29  ;;  %s902_s18 = sshrl.u32 %s4897_s0, 16 }
  0x71   : > { %v3895_v57 = vsel %vm3782_vm3, 0, %v936_v44  ;;  %v1177_v58 = vshll.u32 %v1115_v45, 16  ;;  %v1464_v59 = vrot.slane %v1115_v45, 1  ;;  %v824_v60 = vpack.c.bf16 %v798_v47, %v797_v34  ;;  %s903_s22 = sshll.u32 %s902_s18, 16 }
  0x72   : > { %v1456_v62 = vsel %vm1453_vm2, %v1454_v49, %v1455_v41  ;;  %v1138_v63 = vrot.slane %v1136_v52, 1  ;;  %v1170_v0 = vshrl.u32 %v3895_v57, 16  ;;  %v1172_v2 = vshll.u32 %v3895_v57, 16  ;;  %s4137_s19 = sor.u32 %s903_s22, %s902_s18 }
  0x73   : > { %1514 = vrot.lane.b32.xlu1 %v1456_v62, %s3470_s16  ;;  %v1179_v4 = vrot.slane %v1177_v58, 1  ;;  %v1463_v7 = vrot.slane %v3895_v57, 1  ;;  %v952_v8 = vshrl.u32 %v824_v60, 16  ;;  %v955_v9 = vshll.u32 %v824_v60, 16  ;;  %3147 = vmatpush3.bf16.msra.mxu0 %v3936_v29 }
  0x74   : > { %v1139_v10 = vor.u32 %v1138_v63, %v1134_v51  ;;  %v1174_v11 = vrot.slane %v1172_v2, 1  ;;  %v763_v12 = vadd.f32 %v3730_v42, %v3797_v38  ;;  %v764_v13 = vadd.f32 %v3730_v42, %v725_v35 }
  0x75   : > { %v1465_v15 = vsel %vm1453_vm2, %v1463_v7, %v1464_v59  ;;  %v954_v16 = vrot.slane %v952_v8, 7  ;;  %v730_v17 = vmul.f32 %v3722_v40, %v691_v54  ;;  %v731_v18 = vmul.f32 %v3722_v40, %v692_v56  ;;  %v3959_v54 = vld [vmem:[%s4855_s5 + $0x60] sm:$0xff]  }
  0x76   : > { %v1144_v38 = vsel %vm1132_vm4, %v1139_v10, %v1143_v53  ;;  %v1175_v20 = vor.u32 %v1174_v11, %v1170_v0  ;;  %v795_v21 = vmax.f32 %v763_v12, 0.0  ;;  %v796_v22 = vmax.f32 %v764_v13, 0.0  ;;  %3180 = vmatprep.subr.bf16.mxu0 %v3959_v54 }
  0x77   : > { %1373 = vrot.lane.b32.xlu0 %v1144_v38, %s3471_s15  ;;  %1381 = vrot.lane.b32.xlu1 %v1192_v43, %s3471_s15  ;;  %v957_v24 = vor.u32 %v955_v9, %v954_v16  ;;  %v1118_v25 = vsel %vm3782_vm3, %v954_v16, 0  ;;  %v769_v27 = vadd.f32 %v3730_v42, %v730_v17  ;;  %v770_v28 = vadd.f32 %v3730_v42, %v731_v18  ;;  %v695_v43 = vld [vmem:[%s3733_s17 + $0x90] sm:$0xff] }
  0x78   : > { %v1180_v30 = vsel %vm1132_vm4, %v1175_v20, %v1179_v4  ;;  %v1213_v31 = vshll.u32 %v1118_v25, 16  ;;  %v823_v32 = vpack.c.bf16 %v796_v22, %v795_v21  ;;  %v1473_v33 = vrot.slane %v1118_v25, 1 }
  0x79   : > { %v3942_v34 = vsel %vm3782_vm3, 0, %v957_v24  ;;  %v801_v35 = vmax.f32 %v769_v27, 0.0  ;;  %v802_v41 = vmax.f32 %v770_v28, 0.0  ;;  %v728_v36 = vmul.f32 %v3722_v40, %v689_v19  ;;  %v693_v28 = vld [vmem:[%s3733_s17 + $0x80] sm:$0xff] }
  0x7a   : > { %v1206_v44 = vshrl.u32 %v3942_v34, 16  ;;  %v1208_v45 = vshll.u32 %v3942_v34, 16  ;;  %v1215_v47 = vrot.slane %v1213_v31, 1  ;;  %v945_v48 = vshrl.u32 %v823_v32, 16 }
  0x7b   : > { %1379 = vrot.lane.b32.xlu0 %v1180_v30, %s3471_s15  ;;  %1522 = vrot.lane.b32.xlu1 %v3882_v46, %s3470_s16  ;;  %v948_v49 = vshll.u32 %v823_v32, 16  ;;  %v1472_v51 = vrot.slane %v3942_v34, 1  ;;  %v826_v52 = vpack.c.bf16 %v802_v41, %v801_v35  ;;  %v729_v53 = vmul.f32 %v3722_v40, %v690_v23  ;;  %v694_v35 = vld [vmem:[%s3733_s17 + $0x88] sm:$0xff] }
  0x7c   : > { %v1210_v56 = vrot.slane %v1208_v45, 1  ;;  %v947_v58 = vrot.slane %v945_v48, 7  ;;  %v767_v59 = vadd.f32 %v3730_v42, %v728_v36  ;;  %v734_v60 = vmul.f32 %v3722_v40, %v695_v43  ;;  %v699_v45 = vld [vmem:[%s3733_s17 + $0xb0] sm:$0xff] }
  0x7d   : > { %v966_v46 = vshrl.u32 %v826_v52, 16  ;;  %v969_v62 = vshll.u32 %v826_v52, 16  ;;  %v768_v63 = vadd.f32 %v3730_v42, %v729_v53  ;;  %v735_v13 = vmul.f32 %v3722_v40, %v696_v6 }
  0x7e   : > { %v1211_v0 = vor.u32 %v1210_v56, %v1206_v44  ;;  %v950_v2 = vor.u32 %v948_v49, %v947_v58  ;;  %v1117_v3 = vsel %vm3782_vm3, %v947_v58, 0  ;;  %v799_v4 = vmax.f32 %v767_v59, 0.0 }
  0x7f   : > { %1520 = vrot.lane.b32.xlu0 %v1465_v15, %s3470_s16  ;;  %v1201_v7 = vshll.u32 %v1117_v3, 16  ;;  %v1470_v8 = vrot.slane %v1117_v3, 1  ;;  %v968_v9 = vrot.slane %v966_v46, 7  ;;  %v800_v10 = vmax.f32 %v768_v63, 0.0 }
  0x80   : > { %v1216_v11 = vsel %vm1132_vm4, %v1211_v0, %v1215_v47  ;;  %v3973_v12 = vsel %vm3782_vm3, 0, %v950_v2  ;;  %v773_v16 = vadd.f32 %v3730_v42, %v734_v60  ;;  %v1474_v18 = vsel %vm1453_vm2, %v1472_v51, %v1473_v33 }
  0x81   : > { %1385 = vrot.lane.b32.xlu1 %v1216_v11, %s3471_s15  ;;  %v1194_v15 = vshrl.u32 %v3973_v12, 16  ;;  %v1196_v17 = vshll.u32 %v3973_v12, 16  ;;  %v1469_v19 = vrot.slane %v3973_v12, 1  ;;  %v971_v38 = vor.u32 %v969_v62, %v968_v9 }
  0x82   : > { %v1120_v20 = vsel %vm3782_vm3, %v968_v9, 0  ;;  %v825_v21 = vpack.c.bf16 %v800_v10, %v799_v4  ;;  %v774_v22 = vadd.f32 %v3730_v42, %v735_v13  ;;  %v1203_v24 = vrot.slane %v1201_v7, 1  ;;  %v700_v9 = vld [vmem:[%s3733_s17 + $0xb8] sm:$0xff] }
  0x83   : > { %v1198_v23 = vrot.slane %v1196_v17, 1  ;;  %v1471_v25 = vsel %vm1453_vm2, %v1469_v19, %v1470_v8  ;;  %v1237_v27 = vshll.u32 %v1120_v20, 16  ;;  %v3990_v30 = vsel %vm3782_vm3, 0, %v971_v38 }
  0x84   : > { %v959_v31 = vshrl.u32 %v825_v21, 16  ;;  %v962_v32 = vshll.u32 %v825_v21, 16  ;;  %v805_v33 = vmax.f32 %v773_v16, 0.0  ;;  %v1230_v36 = vshrl.u32 %v3990_v30, 16 }
  0x85   : > { %v1199_v41 = vor.u32 %v1198_v23, %v1194_v15  ;;  %1526 = vrot.lane.b32.xlu1 %v1474_v18, %s3470_s16  ;;  %v1232_v43 = vshll.u32 %v3990_v30, 16  ;;  %v1479_v44 = vrot.slane %v1120_v20, 1  ;;  %v1478_v48 = vrot.slane %v3990_v30, 1  ;;  %v697_v15 = vld [vmem:[%s3733_s17 + $0xa0] sm:$0xff] }
  0x86   : > { %v961_v47 = vrot.slane %v959_v31, 7  ;;  %v806_v49 = vmax.f32 %v774_v22, 0.0  ;;  %v732_v51 = vmul.f32 %v3722_v40, %v693_v28  ;;  %v1239_v6 = vrot.slane %v1237_v27, 1 }
  0x87   : > { %v1204_v52 = vsel %vm1132_vm4, %v1199_v41, %v1203_v24  ;;  %v1234_v53 = vrot.slane %v1232_v43, 1  ;;  %v733_v56 = vmul.f32 %v3722_v40, %v694_v35  ;;  %v738_v46 = vmul.f32 %v3722_v40, %v699_v45  ;;  %v698_v41 = vld [vmem:[%s3733_s17 + $0xa8] sm:$0xff] }
  0x88   : > { %1383 = vrot.lane.b32.xlu0 %v1204_v52, %s3471_s15  ;;  %v964_v58 = vor.u32 %v962_v32, %v961_v47  ;;  %v1119_v59 = vsel %vm3782_vm3, %v961_v47, 0  ;;  %v828_v60 = vpack.c.bf16 %v806_v49, %v805_v33  ;;  %v1480_v0 = vsel %vm1453_vm2, %v1478_v48, %v1479_v44  ;;  %v703_v47 = vld [vmem:[%s3733_s17 + $0xd0] sm:$0xff] }
  0x89   : > { %v1235_v62 = vor.u32 %v1234_v53, %v1230_v36  ;;  %v1225_v63 = vshll.u32 %v1119_v59, 16  ;;  %v771_v2 = vadd.f32 %v3730_v42, %v732_v51  ;;  %v772_v8 = vadd.f32 %v3730_v42, %v733_v56  ;;  %v704_v53 = vld [vmem:[%s3733_s17 + $0xd8] sm:$0xff] }
  0x8a   : > { %v4011_v3 = vsel %vm3782_vm3, 0, %v964_v58  ;;  %v994_v4 = vshrl.u32 %v828_v60, 16  ;;  %v997_v7 = vshll.u32 %v828_v60, 16  ;;  %v1476_v16 = vrot.slane %v1119_v59, 1 }
  0x8b   : > { %v1240_v10 = vsel %vm1132_vm4, %v1235_v62, %v1239_v6  ;;  %v1218_v11 = vshrl.u32 %v4011_v3, 16  ;;  %v1220_v13 = vshll.u32 %v4011_v3, 16  ;;  %v1475_v17 = vrot.slane %v4011_v3, 1 }
  0x8c   : > { %1524 = vrot.lane.b32.xlu0 %v1471_v25, %s3470_s16  ;;  %1389 = vrot.lane.b32.xlu1 %v1240_v10, %s3471_s15  ;;  %v996_v18 = vrot.slane %v994_v4, 7  ;;  %v803_v19 = vmax.f32 %v771_v2, 0.0  ;;  %v804_v38 = vmax.f32 %v772_v8, 0.0  ;;  %v1227_v21 = vrot.slane %v1225_v63, 1 }
  0x8d   : > { %v1222_v20 = vrot.slane %v1220_v13, 1  ;;  %v739_v22 = vmul.f32 %v3722_v40, %v700_v9  ;;  %v777_v23 = vadd.f32 %v3730_v42, %v738_v46  ;;  %v736_v28 = vmul.f32 %v3722_v40, %v697_v15 }
  0x8e   : > { %v999_v24 = vor.u32 %v997_v7, %v996_v18  ;;  %v1124_v27 = vsel %vm3782_vm3, %v996_v18, 0  ;;  %v827_v25 = vpack.c.bf16 %v804_v38, %v803_v19  ;;  %v1477_v32 = vsel %vm1453_vm2, %v1475_v17, %v1476_v16  ;;  %v701_v18 = vld [vmem:[%s3733_s17 + $0xc0] sm:$0xff] }
  0x8f   : > { %v1223_v31 = vor.u32 %v1222_v20, %v1218_v11  ;;  %v1285_v33 = vshll.u32 %v1124_v27, 16  ;;  %v778_v35 = vadd.f32 %v3730_v42, %v739_v22  ;;  %v809_v45 = vmax.f32 %v777_v23, 0.0  ;;  %v702_v22 = vld [vmem:[%s3733_s17 + $0xc8] sm:$0xff] }
  0x90   : > { %1530 = vrot.lane.b32.xlu1 %v1480_v0, %s3470_s16  ;;  %v4036_v36 = vsel %vm3782_vm3, 0, %v999_v24  ;;  %v987_v43 = vshrl.u32 %v827_v25, 16  ;;  %v990_v44 = vshll.u32 %v827_v25, 16  ;;  %v1491_v52 = vrot.slane %v1124_v27, 1 }
  0x91   : > { %v1228_v48 = vsel %vm1132_vm4, %v1223_v31, %v1227_v21  ;;  %v1278_v49 = vshrl.u32 %v4036_v36, 16  ;;  %v1280_v51 = vshll.u32 %v4036_v36, 16  ;;  %v1490_v56 = vrot.slane %v4036_v36, 1 }
  0x92   : > { %1387 = vrot.lane.b32.xlu0 %v1228_v48, %s3471_s15  ;;  %v989_v6 = vrot.slane %v987_v43, 7  ;;  %v810_v58 = vmax.f32 %v778_v35, 0.0  ;;  %v737_v59 = vmul.f32 %v3722_v40, %v698_v41  ;;  %v1287_v46 = vrot.slane %v1285_v33, 1 }
  0x93   : > { %v1282_v60 = vrot.slane %v1280_v51, 1  ;;  %v775_v62 = vadd.f32 %v3730_v42, %v736_v28  ;;  %v742_v63 = vmul.f32 %v3722_v40, %v703_v47  ;;  %v743_v7 = vmul.f32 %v3722_v40, %v704_v53 }
  0x94   : > { %v992_v0 = vor.u32 %v990_v44, %v989_v6  ;;  %v1123_v2 = vsel %vm3782_vm3, %v989_v6, 0  ;;  %v830_v4 = vpack.c.bf16 %v810_v58, %v809_v45  ;;  %v1492_v10 = vsel %vm1453_vm2, %v1490_v56, %v1491_v52  ;;  %v872_v56 = vld [vmem:[%s4090_s24] sm:$0xff] }
  0x95   : > { %v1283_v8 = vor.u32 %v1282_v60, %v1278_v49  ;;  %v1273_v9 = vshll.u32 %v1123_v2, 16  ;;  %v776_v11 = vadd.f32 %v3730_v42, %v737_v59  ;;  %v807_v17 = vmax.f32 %v775_v62, 0.0  ;;  %v873_v62 = vld [vmem:[%s4090_s24 + $0x8] sm:$0xff] }
  0x96   : > { %1528 = vrot.lane.b32.xlu0 %v1477_v32, %s3470_s16  ;;  %v4060_v13 = vsel %vm3782_vm3, 0, %v992_v0  ;;  %v1008_v16 = vshrl.u32 %v830_v4, 16  ;;  %v1011_v15 = vshll.u32 %v830_v4, 16  ;;  %v1488_v21 = vrot.slane %v1123_v2, 1 }
  0x97   : > { %v1288_v19 = vsel %vm1132_vm4, %v1283_v8, %v1287_v46  ;;  %v1266_v38 = vshrl.u32 %v4060_v13, 16  ;;  %v1268_v20 = vshll.u32 %v4060_v13, 16  ;;  %v1487_v23 = vrot.slane %v4060_v13, 1 }
  0x98   : > { %1397 = vrot.lane.b32.xlu1 %v1288_v19, %s3471_s15  ;;  %v1010_v24 = vrot.slane %v1008_v16, 7  ;;  %v808_v27 = vmax.f32 %v776_v11, 0.0  ;;  %v781_v25 = vadd.f32 %v3730_v42, %v742_v63  ;;  %v1275_v31 = vrot.slane %v1273_v9, 1 }
  0x99   : > { %v1270_v28 = vrot.slane %v1268_v20, 1  ;;  %v782_v32 = vadd.f32 %v3730_v42, %v743_v7  ;;  %v740_v33 = vmul.f32 %v3722_v40, %v701_v18  ;;  %v741_v44 = vmul.f32 %v3722_v40, %v702_v22 }
  0x9a   : > { %v1013_v35 = vor.u32 %v1011_v15, %v1010_v24  ;;  %v1126_v41 = vsel %vm3782_vm3, %v1010_v24, 0  ;;  %v829_v43 = vpack.c.bf16 %v808_v27, %v807_v17  ;;  %v1489_v47 = vsel %vm1453_vm2, %v1487_v23, %v1488_v21 }
  0x9b   : > { %v1271_v45 = vor.u32 %v1270_v28, %v1266_v38  ;;  %v1309_v48 = vshll.u32 %v1126_v41, 16  ;;  %v813_v49 = vmax.f32 %v781_v25, 0.0  ;;  %v814_v6 = vmax.f32 %v782_v32, 0.0 }
  0x9c   : > { %1538 = vrot.lane.b32.xlu1 %v1492_v10, %s3470_s16  ;;  %v4087_v51 = vsel %vm3782_vm3, 0, %v1013_v35  ;;  %v1001_v52 = vshrl.u32 %v829_v43, 16  ;;  %v1004_v53 = vshll.u32 %v829_v43, 16  ;;  %v1497_v46 = vrot.slane %v1126_v41, 1 }
  0x9d   : > { %v1276_v58 = vsel %vm1132_vm4, %v1271_v45, %v1275_v31  ;;  %v1302_v59 = vshrl.u32 %v4087_v51, 16  ;;  %v1304_v60 = vshll.u32 %v4087_v51, 16  ;;  %v1496_v0 = vrot.slane %v4087_v51, 1 }
  0x9e   : > { %1395 = vrot.lane.b32.xlu0 %v1276_v58, %s3471_s15  ;;  %v1003_v63 = vrot.slane %v1001_v52, 7  ;;  %v832_v2 = vpack.c.bf16 %v814_v6, %v813_v49  ;;  %v779_v4 = vadd.f32 %v3730_v42, %v740_v33  ;;  %v1311_v8 = vrot.slane %v1309_v48, 1  ;;  %v705_v6 = vld [vmem:[%s3733_s17 + $0xe0] sm:$0xff] }
  0x9f   : > { %v1306_v7 = vrot.slane %v1304_v60, 1  ;;  %v780_v9 = vadd.f32 %v3730_v42, %v741_v44  ;;  %v876_v10 = vmul.f32 %v3722_v40, %v872_v56  ;;  %v877_v17 = vmul.f32 %v3722_v40, %v873_v62 }
  0xa0   : > { %v1006_v11 = vor.u32 %v1004_v53, %v1003_v63  ;;  %v1125_v16 = vsel %vm3782_vm3, %v1003_v63, 0  ;;  %v1022_v15 = vshrl.u32 %v832_v2, 16  ;;  %v1498_v38 = vsel %vm1453_vm2, %v1496_v0, %v1497_v46 }
  0xa1   : > { %v1307_v18 = vor.u32 %v1306_v7, %v1302_v59  ;;  %v1297_v19 = vshll.u32 %v1125_v16, 16  ;;  %v1025_v20 = vshll.u32 %v832_v2, 16  ;;  %v811_v23 = vmax.f32 %v779_v4, 0.0  ;;  %v706_v2 = vld [vmem:[%s3733_s17 + $0xe8] sm:$0xff] }
  0xa2   : > { %1536 = vrot.lane.b32.xlu0 %v1489_v47, %s3470_s16  ;;  %v4115_v21 = vsel %vm3782_vm3, 0, %v1006_v11  ;;  %v1024_v22 = vrot.slane %v1022_v15, 7  ;;  %v812_v24 = vmax.f32 %v780_v9, 0.0  ;;  %v1494_v31 = vrot.slane %v1125_v16, 1 }
  0xa3   : > { %v1312_v27 = vsel %vm1132_vm4, %v1307_v18, %v1311_v8  ;;  %v1290_v25 = vshrl.u32 %v4115_v21, 16  ;;  %v1292_v28 = vshll.u32 %v4115_v21, 16  ;;  %v1493_v32 = vrot.slane %v4115_v21, 1 }
  0xa4   : > { %1401 = vrot.lane.b32.xlu1 %v1312_v27, %s3471_s15  ;;  %v1027_v33 = vor.u32 %v1025_v20, %v1024_v22  ;;  %v1128_v35 = vsel %vm3782_vm3, %v1024_v22, 0  ;;  %v831_v41 = vpack.c.bf16 %v812_v24, %v811_v23  ;;  %v1299_v44 = vrot.slane %v1297_v19, 1  ;;  %v4161_v23 = vld [vmem:[%s4854_s4] ss:$0 sm:$0xff]  ;;  %v708_v27 = vld [vmem:[%s3733_s17 + $0xf8] sm:$0xff] }
  0xa5   : > { %v1294_v43 = vrot.slane %v1292_v28, 1  ;;  %v1333_v45 = vshll.u32 %v1128_v35, 16  ;;  %v880_v47 = vadd.f32 %v3730_v42, %v876_v10  ;;  %v1503_v53 = vrot.slane %v1128_v35, 1  ;;  %v707_v10 = vld [vmem:[%s3733_s17 + $0xf0] sm:$0xff] }
  0xa6   : > { %v4129_v48 = vsel %vm3782_vm3, 0, %v1027_v33  ;;  %v1015_v49 = vshrl.u32 %v831_v41, 16  ;;  %v1018_v52 = vshll.u32 %v831_v41, 16  ;;  %v1495_v58 = vsel %vm1453_vm2, %v1493_v32, %v1494_v31  ;;  %v837_v28 = vld [vmem:[%s3753_s29 + $0x10] sm:$0xff] }
  0xa7   : > { %v1295_v56 = vor.u32 %v1294_v43, %v1290_v25  ;;  %v1326_v59 = vshrl.u32 %v4129_v48, 16  ;;  %v1328_v60 = vshll.u32 %v4129_v48, 16  ;;  %v1502_v62 = vrot.slane %v4129_v48, 1 }
  0xa8   : > { %1542 = vrot.lane.b32.xlu1 %v1498_v38, %s3470_s16  ;;  %v1017_v46 = vrot.slane %v1015_v49, 7  ;;  %v881_v63 = vadd.f32 %v3730_v42, %v877_v17  ;;  %v884_v0 = vmax.f32 %v880_v47, 0.0  ;;  %v1335_v8 = vrot.slane %v1333_v45, 1  ;;  %v3393_v38 = vld [vmem:[%s4853_s3] ss:$0 sm:$0xff]  ;;  %v838_v47 = vld [vmem:[%s3753_s29 + $0x18] sm:$0xff] }
  0xa9   : > { %v1300_v4 = vsel %vm1132_vm4, %v1295_v56, %v1299_v44  ;;  %v1330_v7 = vrot.slane %v1328_v60, 1  ;;  %v744_v9 = vmul.f32 %v3722_v40, %v705_v6  ;;  %v905_v18 = vstv %s4137_s19  ;;  %s4412_s29 = scalar_lea.vmem [#allocation5], %s3717_s14 }
  0xaa   : > { %1399 = vrot.lane.b32.xlu0 %v1300_v4, %s3471_s15  ;;  %v1020_v11 = vor.u32 %v1018_v52, %v1017_v46  ;;  %v1127_v16 = vsel %vm3782_vm3, %v1017_v46, 0  ;;  %v885_v15 = vmax.f32 %v881_v63, 0.0  ;;  %v1504_v19 = vsel %vm1453_vm2, %v1502_v62, %v1503_v53 }
  0xab   : > { %v1331_v42 = vor.u32 %v1330_v7, %v1326_v59  ;;  %v1321_v17 = vshll.u32 %v1127_v16, 16  ;;  %v745_v40 = vmul.f32 %v3393_v38, %v706_v2  ;;  %v783_v24 = vadd.f32 %v4161_v23, %v744_v9 }
  0xac   : > { %v4156_v20 = vsel %vm3782_vm3, 0, %v1020_v11  ;;  %v888_v22 = vpack.c.bf16 %v885_v15, %v884_v0  ;;  %v746_v25 = vmul.f32 %v3393_v38, %v707_v10  ;;  %v1500_v35 = vrot.slane %v1127_v16, 1 }
  0xad   : > { %v1336_v31 = vsel %vm1132_vm4, %v1331_v42, %v1335_v8  ;;  %v1314_v32 = vshrl.u32 %v4156_v20, 16  ;;  %v1316_v33 = vshll.u32 %v4156_v20, 16  ;;  %v1323_v41 = vrot.slane %v1321_v17, 1  ;;  %v874_v8 = vld [vmem:[%s4090_s24 + $0x10] sm:$0xff] }
  0xae   : > { %1540 = vrot.lane.b32.xlu0 %v1495_v58, %s3470_s16  ;;  %1405 = vrot.lane.b32.xlu1 %v1336_v31, %s3471_s15  ;;  %v907_v43 = vmul.bf16 %v905_v18, %v888_v22  ;;  %v784_v44 = vadd.f32 %v4161_v23, %v745_v40  ;;  %v815_v45 = vmax.f32 %v783_v24, 0.0  ;;  %v747_v52 = vmul.f32 %v3393_v38, %v708_v27 }
  0xaf   : > { %v1318_v49 = vrot.slane %v1316_v33, 1  ;;  %v785_v53 = vadd.f32 %v4161_v23, %v746_v25  ;;  %v841_v6 = vmul.f32 %v3393_v38, %v837_v28  ;;  %v1499_v56 = vrot.slane %v4156_v20, 1 }
  0xb0   : > { %v973_v59 = vshrl.u32 %v907_v43, 16  ;;  %v976_v60 = vshll.u32 %v907_v43, 16  ;;  %v816_v58 = vmax.f32 %v784_v44, 0.0  ;;  %v786_v62 = vadd.f32 %v4161_v23, %v747_v52 }
  0xb1   : > { %v1319_v46 = vor.u32 %v1318_v49, %v1314_v32  ;;  %v817_v63 = vmax.f32 %v785_v53, 0.0  ;;  %v842_v0 = vmul.f32 %v3393_v38, %v838_v47  ;;  %v845_v7 = vadd.f32 %v4161_v23, %v841_v6 }
  0xb2   : > { %1546 = vrot.lane.b32.xlu1 %v1504_v19, %s3470_s16  ;;  %v975_v2 = vrot.slane %v973_v59, 7  ;;  %v833_v4 = vpack.c.bf16 %v816_v58, %v815_v45  ;;  %v818_v10 = vmax.f32 %v786_v62, 0.0  ;;  %v875_v19 = vld [vmem:[%s4090_s24 + $0x18] sm:$0xff]  ;;  %v1501_v40 = vsel %vm1453_vm2, %v1499_v56, %v1500_v35 }
  0xb3   : > { %v1324_v9 = vsel %vm1132_vm4, %v1319_v46, %v1323_v41  ;;  %v846_v11 = vadd.f32 %v4161_v23, %v842_v0  ;;  %v878_v27 = vmul.f32 %v3393_v38, %v874_v8  ;;  %v849_v31 = vmax.f32 %v845_v7, 0.0 }
  0xb4   : > { %1403 = vrot.lane.b32.xlu0 %v1324_v9, %s3471_s15  ;;  %v978_v16 = vor.u32 %v976_v60, %v975_v2  ;;  %v4186_v15 = vsel %vm3782_vm3, %v975_v2, 0  ;;  %v1029_v42 = vshrl.u32 %v833_v4, 16  ;;  %v1032_v17 = vshll.u32 %v833_v4, 16 }
  0xb5   : > { %v1249_v22 = vshll.u32 %v4186_v15, 16  ;;  %v834_v24 = vpack.c.bf16 %v818_v10, %v817_v63  ;;  %v850_v32 = vmax.f32 %v846_v11, 0.0  ;;  %v879_v44 = vmul.f32 %v3393_v38, %v875_v19 }
  0xb6   : > { %v4193_v25 = vsel %vm3782_vm3, 0, %v978_v16  ;;  %v1031_v28 = vrot.slane %v1029_v42, 7  ;;  %v882_v38 = vadd.f32 %v4161_v23, %v878_v27  ;;  %vm2374_vm8 = vcmask (!%p3005_p11), 253952  }
  0xb7   : > { %v1242_v33 = vshrl.u32 %v4193_v25, 16  ;;  %v1244_v41 = vshll.u32 %v4193_v25, 16  ;;  %v1036_v43 = vshrl.u32 %v834_v24, 16  ;;  %v1039_v47 = vshll.u32 %v834_v24, 16 }
  0xb8   : > { %1544 = vrot.lane.b32.xlu0 %v1501_v40, %s3470_s16  ;;  %v1034_v35 = vor.u32 %v1032_v17, %v1031_v28  ;;  %v1129_v45 = vsel %vm3782_vm3, %v1031_v28, 0  ;;  %v1251_v52 = vrot.slane %v1249_v22, 1  ;;  %v852_v60 = vpack.c.bf16 %v850_v32, %v849_v31 }
  0xb9   : > { %v1246_v49 = vrot.slane %v1244_v41, 1  ;;  %v1345_v53 = vshll.u32 %v1129_v45, 16  ;;  %v1038_v6 = vrot.slane %v1036_v43, 7  ;;  %v1506_v59 = vrot.slane %v1129_v45, 1 }
  0xba   : > { %v4202_v56 = vsel %vm3782_vm3, 0, %v1034_v35  ;;  %v883_v63 = vadd.f32 %v4161_v23, %v879_v44  ;;  %v871_v7 = vmul.bf16 %v868_v1, %v852_v60  ;;  %v886_v28 = vmax.f32 %v882_v38, 0.0 }
  0xbb   : > { %v1247_v58 = vor.u32 %v1246_v49, %v1242_v33  ;;  %v1338_v46 = vshrl.u32 %v4202_v56, 16  ;;  %v1340_v62 = vshll.u32 %v4202_v56, 16  ;;  %v1505_v0 = vrot.slane %v4202_v56, 1 }
  0xbc   : > { %v1041_v2 = vor.u32 %v1039_v47, %v1038_v6  ;;  %v1130_v4 = vsel %vm3782_vm3, %v1038_v6, 0  ;;  %v1347_v10 = vrot.slane %v1345_v53, 1  ;;  %v980_v42 = vshrl.u32 %v871_v7, 16 }
  0xbd   : > { %v1252_v8 = vsel %vm1132_vm4, %v1247_v58, %v1251_v52  ;;  %v1342_v9 = vrot.slane %v1340_v62, 1  ;;  %v1357_v11 = vshll.u32 %v1130_v4, 16  ;;  %v1509_v23 = vrot.slane %v1130_v4, 1 }
  0xbe   : > { %1391 = vrot.lane.b32.xlu1 %v1252_v8, %s3471_s15  ;;  %v4217_v16 = vsel %vm3782_vm3, 0, %v1041_v2  ;;  %v983_v17 = vshll.u32 %v871_v7, 16  ;;  %v1507_v40 = vsel %vm1453_vm2, %v1505_v0, %v1506_v59  ;;  %v982_v27 = vrot.slane %v980_v42, 7 }
  0xbf   : > { %v1343_v19 = vor.u32 %v1342_v9, %v1338_v46  ;;  %v1350_v22 = vshrl.u32 %v4217_v16, 16  ;;  %v1352_v1 = vshll.u32 %v4217_v16, 16  ;;  %v1508_v24 = vrot.slane %v4217_v16, 1 }
  0xc0   : > { %v887_v31 = vmax.f32 %v883_v63, 0.0  ;;  %v1359_v41 = vrot.slane %v1357_v11, 1  ;;  %v1482_v43 = vrot.slane %v4186_v15, 1  ;;  %v985_v44 = vor.u32 %v983_v17, %v982_v27 }
  0xc1   : > { %v1348_v32 = vsel %vm1132_vm4, %v1343_v19, %v1347_v10  ;;  %v1354_v33 = vrot.slane %v1352_v1, 1  ;;  %v1122_v35 = vsel %vm3782_vm3, %v982_v27, 0  ;;  %v1510_v49 = vsel %vm1453_vm2, %v1508_v24, %v1509_v23 }
  0xc2   : > { %1407 = vrot.lane.b32.xlu0 %v1348_v32, %s3471_s15  ;;  %1548 = vrot.lane.b32.xlu1 %v1507_v40, %s3470_s16  ;;  %v889_v45 = vpack.c.bf16 %v887_v31, %v886_v28  ;;  %v1481_v52 = vrot.slane %v4193_v25, 1  ;;  %v1261_v53 = vshll.u32 %v1122_v35, 16  ;;  %v4233_v6 = vsel %vm3782_vm3, 0, %v985_v44 }
  0xc3   : > { %v1355_v47 = vor.u32 %v1354_v33, %v1350_v22  ;;  %v1485_v59 = vrot.slane %v1122_v35, 1  ;;  %v1254_v38 = vshrl.u32 %v4233_v6, 16  ;;  %v1256_v58 = vshll.u32 %v4233_v6, 16 }
  0xc4   : > { %v908_v60 = vmul.bf16 %v905_v18, %v889_v45  ;;  %v1484_v46 = vrot.slane %v4233_v6, 1  ;;  %v1483_v0 = vsel %vm1453_vm2, %v1481_v52, %v1482_v43  ;;  %v1263_v4 = vrot.slane %v1261_v53, 1 }
  0xc5   : > { %v1360_v15 = vsel %vm1132_vm4, %v1355_v47, %v1359_v41  ;;  %v1258_v2 = vrot.slane %v1256_v58, 1  ;;  %v3395_v47 = vld [vmem:[%s4855_s5] sm:$0xff]  }
  0xc6   : > { %1409 = vrot.lane.b32.xlu0 %v1360_v15, %s3471_s15  ;;  %1550 = vrot.lane.b32.xlu1 %v1510_v49, %s3470_s16  ;;  %v1043_v62 = vshrl.u32 %v908_v60, 16  ;;  %v1046_v63 = vshll.u32 %v908_v60, 16  ;;  %v1486_v18 = vsel %vm1453_vm2, %v1484_v46, %v1485_v59  ;;  %v3388_v60 = vld [vmem:[%s4855_s5 + $0x68] sm:$0xff]   ;;  %v3397_v15 = vld [vmem:[%s4855_s5 + $0x10] sm:$0xff]  }
  0xc7   : > { %v1259_v8 = vor.u32 %v1258_v2, %v1254_v38 }
  0xc8   : > { %v1045_v7 = vrot.slane %v1043_v62, 7 }
  0xc9   : > { %v1264_v11 = vsel %vm1132_vm4, %v1259_v8, %v1263_v4 }
  0xca   : > { %1532 = vrot.lane.b32.xlu0 %v1483_v0, %s3470_s16  ;;  %1534 = vrot.lane.b32.xlu1 %v1486_v18, %s3470_s16  ;;  %v1048_v9 = vor.u32 %v1046_v63, %v1045_v7  ;;  %v1131_v10 = vsel %vm3782_vm3, %v1045_v7, 0 }
  0xcb   : > { %v1369_v23 = vshll.u32 %v1131_v10, 16  ;;  %v1512_v42 = vrot.slane %v1131_v10, 1 }
  0xcc   : > { %v4252_v17 = vsel %vm3782_vm3, 0, %v1048_v9 }
  0xcd   : > { %v1362_v19 = vshrl.u32 %v4252_v17, 16  ;;  %v1364_v40 = vshll.u32 %v4252_v17, 16  ;;  %v1511_v22 = vrot.slane %v4252_v17, 1  ;;  %v1371_v24 = vrot.slane %v1369_v23, 1 }
  0xce   : > { %1393 = vrot.lane.b32.xlu0 %v1264_v11, %s3471_s15 }
  0xcf   : > { %v1366_v1 = vrot.slane %v1364_v40, 1  ;;  %v1513_v27 = vsel %vm1453_vm2, %v1511_v22, %v1512_v42 }
  0xd0   : > { %1552 = vrot.lane.b32.xlu1 %v1513_v27, %s3470_s16 }
  0xd1   : > { %v1367_v28 = vor.u32 %v1366_v1, %v1362_v19 }
  0xd3   : > { %v1372_v31 = vsel %vm1132_vm4, %v1367_v28, %v1371_v24 }
  0xd4   : > { %1411 = vrot.lane.b32.xlu0 %v1372_v31, %s3471_s15 }
  0xd9   : > { %v1519_v26 = vpop.permute.xlu1 %1518 }
  0xda   : > { %v1517_v32 = vpop.permute.xlu0 %1516 }
  0xdd   : > { %v1378_v33 = vpop.permute.xlu1 %1377 }
  0xde   : > { %v1560_v41 = vsel %vm1554_vm5, %v3810_v50, %v1378_v33  ;;  %v1376_v43 = vpop.permute.xlu0 %1375  ;;  %v3396_v50 = vld [vmem:[%s4855_s5 + $0x8] sm:$0xff]  }
  0xdf   : > { %v1558_v44 = vsel %vm1554_vm5, %v3815_v55, %v1376_v43  ;;  %v4267_v35 = vsel %vm1595_vm6, %v1560_v41, %v1519_v26 }
  0xe0   : > { %v1599_v45 = vsel %vm1595_vm6, %v1558_v44, %v1517_v32 }
  0xe1   : > { %3104 = vmatprep.mubr.msk.bf16.mxu1 %vm1697_vm7, %v1599_v45 }
  0xe2   : > { %3105 = vmatmul.mubr.msk.bf16.vlgmr.msra.gmra.mrb[0].mxu1 %vm1697_vm7, %v4267_v35 }
  0xe3   : > { %3230 = vmatpush3.bf16.msra.mxu1 %v3395_v47 }
  0xe4   : > { %3225 = vmatprep.subr.bf16.mxu1 %v3396_v50 }
  0xe5   : > { %v1515_v55 = vpop.permute.xlu1 %1514 }
  0xe7   : > { %3231 = vmatpush3.bf16.msra.mxu1 %v3396_v50 }
  0xe8   : > { %3226 = vmatprep.subr.bf16.mxu1 %v3872_v39 }
  0xe9   : > { %v1374_v49 = vpop.permute.xlu0 %1373  ;;  %v1382_v52 = vpop.permute.xlu1 %1381 }
  0xea   : > { %v1556_v53 = vsel %vm1554_vm5, %v3877_v37, %v1374_v49  ;;  %v3389_v37 = vld [vmem:[%s4855_s5 + $0x70] sm:$0xff]   ;;  %v1564_v58 = vsel %vm1554_vm5, %v3832_v5, %v1382_v52  ;;  %v3391_v5 = vld [vmem:[%s4855_s5 + $0x80] sm:$0xff]  }
  0xeb   : > { %v1597_v59 = vsel %vm1595_vm6, %v1556_v53, %v1515_v55  ;;  %3232 = vmatpush3.bf16.msra.mxu1 %v3397_v15 }
  0xec   : > { %3148 = vmatprep.mubr.msk.bf16.mxu0 %vm1697_vm7, %v1597_v59  ;;  %3227 = vmatprep.subr.bf16.mxu1 %v3900_v61 }
  0xed   : > { %3149 = vmatmul.mubr.msk.bf16.vlgmr.msra.gmra.mrb[0].mxu0 %vm1697_vm7, %v1599_v45  ;;  %v1380_v39 = vpop.permute.xlu0 %1379  ;;  %v1523_v38 = vpop.permute.xlu1 %1522 }
  0xee   : > { %3152 = vmatprep.mubr.msk.bf16.mxu0 %vm1697_vm7, %v4267_v35  ;;  %3181 = vmatpush3.bf16.msra.mxu0 %v3959_v54  ;;  %v1562_v46 = vsel %vm1554_vm5, %v3895_v57, %v1380_v39  ;;  %v1605_v54 = vsel %vm1595_vm6, %v1564_v58, %v1523_v38 }
  0xef   : > { %3182 = vmatprep.subr.bf16.mxu0 %v3388_v60  ;;  %3233 = vmatpush3.bf16.msra.mxu1 %v3900_v61  ;;  %v3390_v61 = vld [vmem:[%s4855_s5 + $0x78] sm:$0xff]  }
  0xf0   : > { %3228 = vmatprep.subr.bf16.mxu1 %v3918_v14 }
  0xf1   : > { %v1521_v62 = vpop.permute.xlu0 %1520 }
  0xf2   : > { %v1603_v63 = vsel %vm1595_vm6, %v1562_v46, %v1521_v62  ;;  %3183 = vmatpush3.bf16.msra.mxu0 %v3388_v60 }
  0xf3   : > { %v1386_v0 = vpop.permute.xlu1 %1385  ;;  %3108 = vmatprep.mubr.msk.bf16.mxu1 %vm1697_vm7, %v1603_v63  ;;  %3184 = vmatprep.subr.bf16.mxu0 %v3389_v37 }
  0xf4   : > { %3109 = vmatmul.mubr.msk.bf16.gmra.mrb[4].mxu1 %vm1697_vm7, %v1605_v54  ;;  %v1568_v4 = vsel %vm1554_vm5, %v3942_v34, %v1386_v0 }
  0xf5   : > { %3153 = vmatmul.mubr.msk.bf16.gmra.mrb[4].mxu0 %vm1697_vm7, %v1603_v63  ;;  %3234 = vmatpush3.bf16.msra.mxu1 %v3918_v14  ;;  %v3392_v14 = vld [vmem:[%s4855_s5 + $0x88] sm:$0xff]  }
  0xf6   : > { %3156 = vmatprep.mubr.msk.bf16.mxu0 %vm1697_vm7, %v1605_v54  ;;  %3185 = vmatpush3.bf16.msra.mxu0 %v3389_v37 }
  0xf7   : > { %3186 = vmatprep.subr.bf16.mxu0 %v3390_v61  ;;  %3229 = vmatprep.subr.bf16.mxu1 %v3936_v29  ;;  %v1527_v57 = vpop.permute.xlu1 %1526 }
  0xf9   : > { %3235 = vmatpush3.bf16.msra.mxu1 %v3936_v29  ;;  %v1609_v29 = vsel %vm1595_vm6, %v1568_v4, %v1527_v57 }
  0xfa   : > { %v1384_v2 = vpop.permute.xlu0 %1383  ;;  %3187 = vmatpush3.bf16.msra.mxu0 %v3390_v61 }
  0xfb   : > { %3188 = vmatprep.subr.bf16.mxu0 %v3391_v5  ;;  %v1566_v18 = vsel %vm1554_vm5, %v3973_v12, %v1384_v2 }
  0xfe   : > { %v1525_v7 = vpop.permute.xlu0 %1524  ;;  %3189 = vmatpush3.bf16.msra.mxu0 %v3391_v5  ;;  %v1390_v9 = vpop.permute.xlu1 %1389 }
  0xff   : > { %v1607_v8 = vsel %vm1595_vm6, %v1566_v18, %v1525_v7  ;;  %3190 = vmatprep.subr.bf16.mxu0 %v3392_v14  ;;  %v1572_v12 = vsel %vm1554_vm5, %v3990_v30, %v1390_v9 }
 0x100   : > { %3112 = vmatprep.mubr.msk.bf16.mxu1 %vm1697_vm7, %v1607_v8  ;;  %3157 = vmatmul.mubr.msk.bf16.gmra.mrb[8].mxu0 %vm1697_vm7, %v1607_v8 }
 0x101   : > { %3113 = vmatmul.mubr.msk.bf16.gmra.mrb[8].mxu1 %vm1697_vm7, %v1609_v29  ;;  %3160 = vmatprep.mubr.msk.bf16.mxu0 %vm1697_vm7, %v1609_v29 }
 0x102   : > { %3191 = vmatpush3.bf16.msra.mxu0 %v3392_v14  ;;  %v1531_v10 = vpop.permute.xlu1 %1530 }
 0x103   : > { %v1613_v19 = vsel %vm1595_vm6, %v1572_v12, %v1531_v10 }
 0x104   : > { %v1388_v34 = vpop.permute.xlu0 %1387 }
 0x105   : > { %v1570_v11 = vsel %vm1554_vm5, %v4011_v3, %v1388_v34 }
 0x108   : > { %v1529_v23 = vpop.permute.xlu0 %1528 }
 0x109   : > { %v1611_v42 = vsel %vm1595_vm6, %v1570_v11, %v1529_v23 }
 0x10a   : > { %3116 = vmatprep.mubr.msk.bf16.mxu1 %vm1697_vm7, %v1611_v42  ;;  %3161 = vmatmul.mubr.msk.bf16.gmra.mrb[12].mxu0 %vm1697_vm7, %v1611_v42  ;;  %v1398_v40 = vpop.permute.xlu1 %1397 }
 0x10b   : > { %3117 = vmatmul.mubr.msk.bf16.gmra.mrb[12].mxu1 %vm1697_vm7, %v1613_v19  ;;  %3192 = vmatprep.mubr.msk.bf16.mxu0 %vm1697_vm7, %v4267_v35  ;;  %v1580_v3 = vsel %vm1554_vm5, %v4036_v36, %v1398_v40 }
 0x10e   : > { %v1539_v30 = vpop.permute.xlu1 %1538 }
 0x10f   : > { %v1621_v28 = vsel %vm1595_vm6, %v1580_v3, %v1539_v30 }
 0x110   : > { %v1396_v22 = vpop.permute.xlu0 %1395 }
 0x111   : > { %v1578_v1 = vsel %vm1554_vm5, %v4060_v13, %v1396_v22 }
 0x112   : > { %3193 = vmatmul.mubr.msk.bf16.vlgmr.msra.gmra.mrb[0].mxu0 %vm1697_vm7, %v1603_v63 }
 0x113   : > { %3196 = vmatprep.mubr.msk.bf16.mxu0 %vm1697_vm7, %v1605_v54 }
 0x114   : > { %v1537_v24 = vpop.permute.xlu0 %1536 }
 0x115   : > { %v1619_v27 = vsel %vm1595_vm6, %v1578_v1, %v1537_v24 }
 0x116   : > { %3120 = vmatprep.mubr.msk.bf16.mxu1 %vm1697_vm7, %v1619_v27  ;;  %v1402_v31 = vpop.permute.xlu1 %1401 }
 0x117   : > { %3121 = vmatmul.mubr.msk.bf16.gmra.mrb[16].mxu1 %vm1697_vm7, %v1621_v28  ;;  %v1584_v32 = vsel %vm1554_vm5, %v4087_v51, %v1402_v31 }
 0x11a   : > { %3197 = vmatmul.mubr.msk.bf16.gmra.mrb[4].mxu0 %vm1697_vm7, %v1607_v8  ;;  %v1543_v26 = vpop.permute.xlu1 %1542 }
 0x11b   : > { %3200 = vmatprep.mubr.msk.bf16.mxu0 %vm1697_vm7, %v1609_v29  ;;  %v1625_v43 = vsel %vm1595_vm6, %v1584_v32, %v1543_v26 }
 0x11c   : > { %v1400_v36 = vpop.permute.xlu0 %1399 }
 0x11d   : > { %v1582_v13 = vsel %vm1554_vm5, %v4115_v21, %v1400_v36 }
 0x120   : > { %v1541_v33 = vpop.permute.xlu0 %1540  ;;  %v1406_v44 = vpop.permute.xlu1 %1405 }
 0x121   : > { %v1623_v41 = vsel %vm1595_vm6, %v1582_v13, %v1541_v33  ;;  %v1588_v51 = vsel %vm1554_vm5, %v4129_v48, %v1406_v44 }
 0x122   : > { %3124 = vmatprep.mubr.msk.bf16.mxu1 %vm1697_vm7, %v1623_v41  ;;  %3201 = vmatmul.mubr.msk.bf16.gmra.mrb[8].mxu0 %vm1697_vm7, %v1611_v42 }
 0x123   : > { %3125 = vmatmul.mubr.msk.bf16.gmra.mrb[20].mxu1 %vm1697_vm7, %v1625_v43  ;;  %3204 = vmatprep.mubr.msk.bf16.mxu0 %vm1697_vm7, %v1613_v19 }
 0x124   : > { %v1547_v45 = vpop.permute.xlu1 %1546 }
 0x125   : > { %v1629_v55 = vsel %vm1595_vm6, %v1588_v51, %v1547_v45 }
 0x126   : > { %v1404_v35 = vpop.permute.xlu0 %1403 }
 0x127   : > { %v1586_v21 = vsel %vm1554_vm5, %v4156_v20, %v1404_v35 }
 0x12a   : > { %v1545_v47 = vpop.permute.xlu0 %1544 }
 0x12b   : > { %v1627_v50 = vsel %vm1595_vm6, %v1586_v21, %v1545_v47 }
 0x12c   : > { %3128 = vmatprep.mubr.msk.bf16.mxu1 %vm1697_vm7, %v1627_v50 }
 0x12d   : > { %3129 = vmatmul.mubr.msk.bf16.gmra.mrb[24].mxu1 %vm1697_vm7, %v1629_v55 }
 0x130   : > { %v1392_v49 = vpop.permute.xlu1 %1391 }
 0x131   : > { %v1574_v38 = vsel %vm1554_vm5, %v4193_v25, %v1392_v49 }
 0x134   : > { %v1408_v52 = vpop.permute.xlu0 %1407  ;;  %v1549_v53 = vpop.permute.xlu1 %1548 }
 0x135   : > { %v1590_v59 = vsel %vm1554_vm5, %v4202_v56, %v1408_v52 }
 0x136   : > { %v1631_v48 = vsel %vm1595_vm6, %v1590_v59, %v1549_v53 }
 0x137   : > { %3132 = vmatprep.mubr.msk.bf16.mxu1 %vm1697_vm7, %v1631_v48 }
 0x138   : > { %v1410_v20 = vpop.permute.xlu0 %1409  ;;  %v1551_v60 = vpop.permute.xlu1 %1550 }
 0x139   : > { %v1592_v15 = vsel %vm1554_vm5, %v4217_v16, %v1410_v20 }
 0x13a   : > { %v1633_v39 = vsel %vm1595_vm6, %v1592_v15, %v1551_v60 }
 0x13b   : > { %3133 = vmatmul.mubr.msk.bf16.gmra.mrb[28].mxu1 %vm1697_vm7, %v1633_v39 }
 0x13c   : > { %v1533_v37 = vpop.permute.xlu0 %1532  ;;  %v1535_v56 = vpop.permute.xlu1 %1534 }
 0x13d   : > { %v1615_v58 = vsel %vm1595_vm6, %v1574_v38, %v1533_v37 }
 0x13e   : > { %3205 = vmatmul.mubr.msk.bf16.gmra.mrb[12].mxu0 %vm1697_vm7, %v1615_v58 }
 0x13f   : > { %3208 = vmatprep.mubr.msk.bf16.mxu0 %vm1697_vm7, %v1621_v28 }
 0x140   : > { %v1394_v46 = vpop.permute.xlu0 %1393 }
 0x141   : > { %v1576_v62 = vsel %vm1554_vm5, %v4233_v6, %v1394_v46 }
 0x142   : > { %v1617_v16 = vsel %vm1595_vm6, %v1576_v62, %v1535_v56  ;;  %v1553_v63 = vpop.permute.xlu1 %1552 }
 0x143   : > { %3164 = vmatprep.mubr.msk.bf16.mxu1 %vm1697_vm7, %v1617_v16 }
 0x144   : > { %3165 = vmatmul.mubr.msk.bf16.vlgmr.msra.gmra.mrb[16].mxu1 %vm1697_vm7, %v1619_v27 }
 0x145   : > { %3168 = vmatprep.mubr.msk.bf16.mxu1 %vm1697_vm7, %v1621_v28 }
 0x146   : > { %3209 = vmatmul.mubr.msk.bf16.gmra.mrb[16].mxu0 %vm1697_vm7, %v1623_v41  ;;  %v1412_v25 = vpop.permute.xlu0 %1411 }
 0x147   : > { %3212 = vmatprep.mubr.msk.bf16.mxu0 %vm1697_vm7, %v1625_v43  ;;  %v1594_v6 = vsel %vm1554_vm5, %v4252_v17, %v1412_v25 }
 0x148   : > { %v1635_v54 = vsel %vm1595_vm6, %v1594_v6, %v1553_v63 }
 0x14c   : > { %3169 = vmatmul.mubr.msk.bf16.gmra.mrb[20].mxu1 %vm1697_vm7, %v1623_v41 }
 0x14d   : > { %3172 = vmatprep.mubr.msk.bf16.mxu1 %vm1697_vm7, %v1625_v43 }
 0x14e   : > { %3213 = vmatmul.mubr.msk.bf16.gmra.mrb[20].mxu0 %vm1697_vm7, %v1627_v50 }
 0x14f   : > { %3216 = vmatprep.mubr.msk.bf16.mxu0 %vm1697_vm7, %v1629_v55 }
 0x154   : > { %3173 = vmatmul.mubr.msk.bf16.gmra.mrb[24].mxu1 %vm1697_vm7, %v1627_v50 }
 0x155   : > { %3176 = vmatprep.mubr.msk.bf16.mxu1 %vm1697_vm7, %v1629_v55 }
 0x156   : > { %3217 = vmatmul.mubr.msk.bf16.gmra.mrb[24].mxu0 %vm1697_vm7, %v1631_v48 }
 0x157   : > { %3220 = vmatprep.mubr.msk.bf16.mxu0 %vm1697_vm7, %v1633_v39 }
 0x15c   : > { %3177 = vmatmul.mubr.msk.bf16.gmra.mrb[28].mxu1 %vm1697_vm7, %v1631_v48 }
 0x15e   : > { %3221 = vmatmul.mubr.msk.bf16.gmra.mrb[28].mxu0 %vm1697_vm7, %v1635_v54 }
 0x1b5   : > { %v3106_v0 = vpop.f32.mrb[0].mxu1 }
 0x1b6   : > { %v1764_v61 = vpop.f32.mrb[1].mxu1 }
 0x1b7   : > { %v3107_v5 = vpop.f32.mrb[2].mxu1 }
 0x1b8   : > { %v1767_v57 = vpop.f32.mrb[3].mxu1 }
 0x1c7   : > { %v3110_v2 = vpop.f32.mrb[4].mxu1 }
 0x1c8   : > { %v1780_v14 = vpop.f32.mrb[5].mxu1 }
 0x1c9   : > { %v3111_v4 = vpop.f32.mrb[6].mxu1 }
 0x1ca   : > { %v1783_v18 = vpop.f32.mrb[7].mxu1 }
 0x1d4   : > { %v3114_v7 = vpop.f32.mrb[8].mxu1 }
 0x1d5   : > { %v1796_v8 = vpop.f32.mrb[9].mxu1 }
 0x1d6   : > { %v3115_v9 = vpop.f32.mrb[10].mxu1 }
 0x1d7   : > { %v1799_v17 = vpop.f32.mrb[11].mxu1 }
 0x1de   : > { %v3118_v29 = vpop.f32.mrb[12].mxu1 }
 0x1df   : > { %v1812_v34 = vpop.f32.mrb[13].mxu1 }
 0x1e0   : > { %v3119_v10 = vpop.f32.mrb[14].mxu1 }
 0x1e1   : > { %v1815_v12 = vpop.f32.mrb[15].mxu1 }
 0x1e5   : > { %v3194_v11 = vpop.f32.mrb[0].mxu0 }
 0x1e6   : > { %v4407_v23 = vadd.f32 %v3194_v11, %v3106_v0  ;;  %v2179_v42 = vpop.f32.mrb[1].mxu0 }
 0x1e7   : > { %v4409_v19 = vadd.f32 %v2179_v42, %v1764_v61  ;;  %v3195_v40 = vpop.f32.mrb[2].mxu0 }
 0x1e8   : > { %2340 = vst.msk [vmem:[%s4412_s29 + $0x10] sm:$0xff] %vm1554_vm5, %v4407_v23  ;;  %v4417_v22 = vadd.f32 %v3195_v40, %v3107_v5  ;;  %v2182_v30 = vpop.f32.mrb[3].mxu0 }
 0x1e9   : > { %2338 = vst.msk [vmem:[%s4412_s29] sm:$0xff] %vm1554_vm5, %v4409_v19  ;;  %v4422_v3 = vadd.f32 %v2182_v30, %v1767_v57 }
 0x1ea   : > { %2341 = vst.msk [vmem:[%s4412_s29 + $0x18] sm:$0xff] %vm1554_vm5, %v4417_v22 }
 0x1eb   : > { %2339 = vst.msk [vmem:[%s4412_s29 + $0x8] sm:$0xff] %vm1554_vm5, %v4422_v3 }
 0x1ed   : > { %v3198_v1 = vpop.f32.mrb[4].mxu0 }
 0x1ee   : > { %v4430_v24 = vadd.f32 %v3198_v1, %v3110_v2  ;;  %v2195_v27 = vpop.f32.mrb[5].mxu0 }
 0x1ef   : > { %v4432_v28 = vadd.f32 %v2195_v27, %v1780_v14  ;;  %v3199_v31 = vpop.f32.mrb[6].mxu0 }
 0x1f0   : > { %2344 = vst.msk [vmem:[%s4412_s29 + $0x30] sm:$0xff] %vm1554_vm5, %v4430_v24  ;;  %v4437_v36 = vadd.f32 %v3199_v31, %v3111_v4  ;;  %v2198_v26 = vpop.f32.mrb[7].mxu0 }
 0x1f1   : > { %2342 = vst.msk [vmem:[%s4412_s29 + $0x20] sm:$0xff] %vm1554_vm5, %v4432_v28  ;;  %v4442_v32 = vadd.f32 %v2198_v26, %v1783_v18 }
 0x1f2   : > { %2345 = vst.msk [vmem:[%s4412_s29 + $0x38] sm:$0xff] %vm1554_vm5, %v4437_v36 }
 0x1f3   : > { %2343 = vst.msk [vmem:[%s4412_s29 + $0x28] sm:$0xff] %vm1554_vm5, %v4442_v32 }
 0x1f5   : > { %v3202_v13 = vpop.f32.mrb[8].mxu0 }
 0x1f6   : > { %v4450_v33 = vadd.f32 %v3202_v13, %v3114_v7  ;;  %v2211_v41 = vpop.f32.mrb[9].mxu0 }
 0x1f7   : > { %v4452_v43 = vadd.f32 %v2211_v41, %v1796_v8  ;;  %v3203_v44 = vpop.f32.mrb[10].mxu0 }
 0x1f8   : > { %2348 = vst.msk [vmem:[%s4412_s29 + $0x50] sm:$0xff] %vm1554_vm5, %v4450_v33  ;;  %v4457_v35 = vadd.f32 %v3203_v44, %v3115_v9  ;;  %v2214_v51 = vpop.f32.mrb[11].mxu0 }
 0x1f9   : > { %2346 = vst.msk [vmem:[%s4412_s29 + $0x40] sm:$0xff] %vm1554_vm5, %v4452_v43  ;;  %v4462_v45 = vadd.f32 %v2214_v51, %v1799_v17 }
 0x1fa   : > { %2349 = vst.msk [vmem:[%s4412_s29 + $0x58] sm:$0xff] %vm1554_vm5, %v4457_v35 }
 0x1fb   : > { %2347 = vst.msk [vmem:[%s4412_s29 + $0x48] sm:$0xff] %vm1554_vm5, %v4462_v45 }
 0x211   : > { %v3206_v21 = vpop.f32.mrb[12].mxu0 }
 0x212   : > { %v4470_v47 = vadd.f32 %v3206_v21, %v3118_v29  ;;  %v2227_v50 = vpop.f32.mrb[13].mxu0 }
 0x213   : > { %v4472_v55 = vadd.f32 %v2227_v50, %v1812_v34  ;;  %v3207_v49 = vpop.f32.mrb[14].mxu0 }
 0x214   : > { %2352 = vst.msk [vmem:[%s4412_s29 + $0x70] sm:$0xff] %vm1554_vm5, %v4470_v47  ;;  %v4477_v52 = vadd.f32 %v3207_v49, %v3119_v10  ;;  %v2230_v53 = vpop.f32.mrb[15].mxu0 }
 0x215   : > { %2350 = vst.msk [vmem:[%s4412_s29 + $0x60] sm:$0xff] %vm1554_vm5, %v4472_v55  ;;  %v4482_v59 = vadd.f32 %v2230_v53, %v1815_v12 }
 0x216   : > { %2353 = vst.msk [vmem:[%s4412_s29 + $0x78] sm:$0xff] %vm1554_vm5, %v4477_v52 }
 0x217   : > { %2351 = vst.msk [vmem:[%s4412_s29 + $0x68] sm:$0xff] %vm1554_vm5, %v4482_v59  ;;  %v3166_v48 = vpop.f32.mrb[16].mxu1 }
 0x218   : > { %v2029_v20 = vpop.f32.mrb[17].mxu1 }
 0x219   : > { %v3167_v60 = vpop.f32.mrb[18].mxu1  ;;  %v3210_v15 = vpop.f32.mrb[16].mxu0 }
 0x21a   : > { %v4490_v39 = vadd.f32 %v3210_v15, %v3166_v48  ;;  %v2032_v38 = vpop.f32.mrb[19].mxu1  ;;  %v2243_v37 = vpop.f32.mrb[17].mxu0  ;;  %v3472_v48 = vmov (!%p3005_p11), 0.0  }
 0x21b   : > { %v4492_v58 = vadd.f32 %v2243_v37, %v2029_v20  ;;  %v3211_v56 = vpop.f32.mrb[18].mxu0  ;;  %2375 = vst.msk [vmem:[%s4857_s7] sm:$0x1] (!%p3005_p11), %vm2374_vm8, %v3472_v48  ;;  %2376 = vst.msk [vmem:[%s4858_s8] sm:$0x1] (!%p3005_p11), %vm2374_vm8, %v3472_v48 }
 0x21c   : > { %2356 = vst.msk [vmem:[%s4412_s29 + $0x90] sm:$0xff] %vm1554_vm5, %v4490_v39  ;;  %v4497_v46 = vadd.f32 %v3211_v56, %v3167_v60  ;;  %v2246_v62 = vpop.f32.mrb[19].mxu0 }
 0x21d   : > { %2354 = vst.msk [vmem:[%s4412_s29 + $0x80] sm:$0xff] %vm1554_vm5, %v4492_v58  ;;  %v4502_v16 = vadd.f32 %v2246_v62, %v2032_v38 }
 0x21e   : > { %2357 = vst.msk [vmem:[%s4412_s29 + $0x98] sm:$0xff] %vm1554_vm5, %v4497_v46 }
 0x21f   : > { %2355 = vst.msk [vmem:[%s4412_s29 + $0x88] sm:$0xff] %vm1554_vm5, %v4502_v16  ;;  %v3170_v25 = vpop.f32.mrb[20].mxu1 }
 0x220   : > { %v2045_v6 = vpop.f32.mrb[21].mxu1 }
 0x221   : > { %v3171_v63 = vpop.f32.mrb[22].mxu1  ;;  %v3214_v54 = vpop.f32.mrb[20].mxu0 }
 0x222   : > { %v4510_v0 = vadd.f32 %v3214_v54, %v3170_v25  ;;  %v2048_v61 = vpop.f32.mrb[23].mxu1  ;;  %v2259_v5 = vpop.f32.mrb[21].mxu0 }
 0x223   : > { %v4512_v57 = vadd.f32 %v2259_v5, %v2045_v6  ;;  %v3215_v2 = vpop.f32.mrb[22].mxu0 }
 0x224   : > { %2360 = vst.msk [vmem:[%s4412_s29 + $0xb0] sm:$0xff] %vm1554_vm5, %v4510_v0  ;;  %v4517_v14 = vadd.f32 %v3215_v2, %v3171_v63  ;;  %v2262_v4 = vpop.f32.mrb[23].mxu0 }
 0x225   : > { %2358 = vst.msk [vmem:[%s4412_s29 + $0xa0] sm:$0xff] %vm1554_vm5, %v4512_v57  ;;  %v4522_v18 = vadd.f32 %v2262_v4, %v2048_v61 }
 0x226   : > { %2361 = vst.msk [vmem:[%s4412_s29 + $0xb8] sm:$0xff] %vm1554_vm5, %v4517_v14 }
 0x227   : > { %2359 = vst.msk [vmem:[%s4412_s29 + $0xa8] sm:$0xff] %vm1554_vm5, %v4522_v18  ;;  %v3174_v7 = vpop.f32.mrb[24].mxu1 }
 0x228   : > { %v2061_v8 = vpop.f32.mrb[25].mxu1 }
 0x229   : > { %v3175_v9 = vpop.f32.mrb[26].mxu1  ;;  %v3218_v17 = vpop.f32.mrb[24].mxu0 }
 0x22a   : > { %v4530_v29 = vadd.f32 %v3218_v17, %v3174_v7  ;;  %v2064_v34 = vpop.f32.mrb[27].mxu1  ;;  %v2275_v10 = vpop.f32.mrb[25].mxu0 }
 0x22b   : > { %v4532_v12 = vadd.f32 %v2275_v10, %v2061_v8  ;;  %v3219_v11 = vpop.f32.mrb[26].mxu0 }
 0x22c   : > { %2364 = vst.msk [vmem:[%s4412_s29 + $0xd0] sm:$0xff] %vm1554_vm5, %v4530_v29  ;;  %v4537_v42 = vadd.f32 %v3219_v11, %v3175_v9  ;;  %v2278_v40 = vpop.f32.mrb[27].mxu0 }
 0x22d   : > { %2362 = vst.msk [vmem:[%s4412_s29 + $0xc0] sm:$0xff] %vm1554_vm5, %v4532_v12  ;;  %v4542_v30 = vadd.f32 %v2278_v40, %v2064_v34 }
 0x22e   : > { %2365 = vst.msk [vmem:[%s4412_s29 + $0xd8] sm:$0xff] %vm1554_vm5, %v4537_v42 }
 0x22f   : > { %2363 = vst.msk [vmem:[%s4412_s29 + $0xc8] sm:$0xff] %vm1554_vm5, %v4542_v30  ;;  %v3178_v1 = vpop.f32.mrb[28].mxu1 }
 0x230   : > { %v2077_v27 = vpop.f32.mrb[29].mxu1 }
 0x231   : > { %v3179_v31 = vpop.f32.mrb[30].mxu1  ;;  %v3222_v26 = vpop.f32.mrb[28].mxu0  ;;  %2373 = sbr.rel (%p3005_p11) target bundleno = 568 (0x238), region = 162 }
 0x232   : > { %v4550_v13 = vadd.f32 %v3222_v26, %v3178_v1  ;;  %v2080_v41 = vpop.f32.mrb[31].mxu1  ;;  %v2291_v44 = vpop.f32.mrb[29].mxu0 }
 0x233   : > { %v4552_v51 = vadd.f32 %v2291_v44, %v2077_v27  ;;  %v3223_v21 = vpop.f32.mrb[30].mxu0 }
 0x234   : > { %2368 = vst.msk [vmem:[%s4412_s29 + $0xf0] sm:$0xff] %vm1554_vm5, %v4550_v13  ;;  %v4557_v50 = vadd.f32 %v3223_v21, %v3179_v31  ;;  %v2294_v49 = vpop.f32.mrb[31].mxu0 }
 0x235   : > { %2366 = vst.msk [vmem:[%s4412_s29 + $0xe0] sm:$0xff] %vm1554_vm5, %v4552_v51  ;;  %v4562_v53 = vadd.f32 %v2294_v49, %v2080_v41 }
 0x236   : > { %2369 = vst.msk [vmem:[%s4412_s29 + $0xf8] sm:$0xff] %vm1554_vm5, %v4557_v50 }
 0x237   : > { %2367 = vst.msk [vmem:[%s4412_s29 + $0xe8] sm:$0xff] %vm1554_vm5, %v4562_v53 }
 0x238 PF: > { %v2378_v20 = vsel %vm1554_vm5, %v4409_v19, 0.0  ;;  %v2379_v60 = vsel %vm1554_vm5, %v4422_v3, 0.0  ;;  %v2381_v15 = vsel %vm1554_vm5, %v4407_v23, 0.0  ;;  %v2383_v37 = vsel %vm1554_vm5, %v4417_v22, 0.0  ;;  %s3025_s21 = sshll.u32 (%p3617_p5), %s3460_s11, 7  ;;  %s4872_s14 = sld [smem:[#allocation10_spill]] (%p3617_p5) }
 0x239   : > { %v2380_v38 = vadd.f32 %v2379_v60, %v2378_v20  ;;  %v2385_v62 = vsel %vm1554_vm5, %v4432_v28, 0.0  ;;  %v2387_v6 = vsel %vm1554_vm5, %v4442_v32, 0.0  ;;  %v2389_v54 = vsel %vm1554_vm5, %v4430_v24, 0.0 }
 0x23a   : > { %v2391_v5 = vsel %vm1554_vm5, %v4437_v36, 0.0  ;;  %v2393_v4 = vsel %vm1554_vm5, %v4452_v43, 0.0  ;;  %v2395_v8 = vsel %vm1554_vm5, %v4462_v45, 0.0  ;;  %v2451_v9 = vmul.f32 %v4409_v19, %v4409_v19 }
 0x23b   : > { %v2382_v56 = vadd.f32 %v2381_v15, %v2380_v38  ;;  %v2452_v17 = vmul.f32 %v4422_v3, %v4422_v3  ;;  %v2453_v10 = vmul.f32 %v4407_v23, %v4407_v23  ;;  %v2397_v11 = vsel %vm1554_vm5, %v4450_v33, 0.0 }
 0x23c   : > { %v2454_v40 = vmul.f32 %v4417_v22, %v4417_v22  ;;  %v2399_v27 = vsel %vm1554_vm5, %v4457_v35, 0.0  ;;  %v2455_v19 = vmul.f32 %v4432_v28, %v4432_v28  ;;  %v2483_v31 = vsel %vm1554_vm5, %v2451_v9, 0.0 }
 0x23d   : > { %v2384_v25 = vadd.f32 %v2383_v37, %v2382_v56  ;;  %v2484_v3 = vsel %vm1554_vm5, %v2452_v17, 0.0  ;;  %v2486_v23 = vsel %vm1554_vm5, %v2453_v10, 0.0  ;;  %v2401_v44 = vsel %vm1554_vm5, %v4472_v55, 0.0 }
 0x23e   : > { %v2485_v41 = vadd.f32 %v2484_v3, %v2483_v31  ;;  %v2456_v22 = vmul.f32 %v4442_v32, %v4442_v32  ;;  %v2488_v21 = vsel %vm1554_vm5, %v2454_v40, 0.0  ;;  %v2403_v28 = vsel %vm1554_vm5, %v4482_v59, 0.0  ;;  %s4760_s6 = scalar_lea.vmem (%p3617_p5), %s4872_s14, %s3025_s21 }
 0x23f   : > { %v2386_v63 = vadd.f32 %v2385_v62, %v2384_v25  ;;  %v2457_v20 = vmul.f32 %v4430_v24, %v4430_v24  ;;  %v2490_v60 = vsel %vm1554_vm5, %v2455_v19, 0.0  ;;  %v2405_v37 = vsel %vm1554_vm5, %v4470_v47, 0.0 }
 0x240   : > { %v2487_v48 = vadd.f32 %v2486_v23, %v2485_v41  ;;  %v2458_v32 = vmul.f32 %v4437_v36, %v4437_v36  ;;  %v2492_v56 = vsel %vm1554_vm5, %v2456_v22, 0.0  ;;  %v2459_v24 = vmul.f32 %v4452_v43, %v4452_v43 }
 0x241   : > { %v2388_v61 = vadd.f32 %v2387_v6, %v2386_v63  ;;  %v2407_v6 = vsel %vm1554_vm5, %v4477_v52, 0.0  ;;  %v2494_v63 = vsel %vm1554_vm5, %v2457_v20, 0.0  ;;  %v2460_v36 = vmul.f32 %v4462_v45, %v4462_v45 }
 0x242   : > { %v2489_v38 = vadd.f32 %v2488_v21, %v2487_v48  ;;  %v2461_v43 = vmul.f32 %v4450_v33, %v4450_v33  ;;  %v2498_v9 = vsel %vm1554_vm5, %v2459_v24, 0.0  ;;  %v2413_v10 = vsel %vm1554_vm5, %v4490_v39, 0.0 }
 0x243   : > { %v2390_v2 = vadd.f32 %v2389_v54, %v2388_v61  ;;  %v2462_v45 = vmul.f32 %v4457_v35, %v4457_v35  ;;  %v2463_v33 = vmul.f32 %v4472_v55, %v4472_v55  ;;  %v2464_v35 = vmul.f32 %v4482_v59, %v4482_v59 }
 0x244   : > { %v2491_v25 = vadd.f32 %v2490_v60, %v2489_v38  ;;  %v2502_v19 = vsel %vm1554_vm5, %v2461_v43, 0.0  ;;  %v2419_v22 = vsel %vm1554_vm5, %v4522_v18, 0.0  ;;  %v2465_v55 = vmul.f32 %v4470_v47, %v4470_v47 }
 0x245   : > { %v2392_v7 = vadd.f32 %v2391_v5, %v2390_v2  ;;  %v2409_v5 = vsel %vm1554_vm5, %v4492_v58, 0.0  ;;  %v2496_v2 = vsel %vm1554_vm5, %v2458_v32, 0.0  ;;  %v2504_v41 = vsel %vm1554_vm5, %v2462_v45, 0.0 }
 0x246   : > { %v2493_v61 = vadd.f32 %v2492_v56, %v2491_v25  ;;  %v2506_v21 = vsel %vm1554_vm5, %v2463_v33, 0.0  ;;  %v2466_v59 = vmul.f32 %v4477_v52, %v4477_v52  ;;  %v2508_v20 = vsel %vm1554_vm5, %v2464_v35, 0.0 }
 0x247   : > { %v2394_v34 = vadd.f32 %v2393_v4, %v2392_v7  ;;  %v2423_v38 = vsel %vm1554_vm5, %v4517_v14, 0.0  ;;  %v2467_v47 = vmul.f32 %v4492_v58, %v4492_v58  ;;  %v2468_v52 = vmul.f32 %v4502_v16, %v4502_v16 }
 0x248   : > { %v2495_v7 = vadd.f32 %v2494_v63, %v2493_v61  ;;  %v2512_v25 = vsel %vm1554_vm5, %v2466_v59, 0.0  ;;  %v2427_v63 = vsel %vm1554_vm5, %v4542_v30, 0.0  ;;  %v2469_v58 = vmul.f32 %v4490_v39, %v4490_v39 }
 0x249   : > { %v2396_v1 = vadd.f32 %v2395_v8, %v2394_v34  ;;  %v2411_v8 = vsel %vm1554_vm5, %v4502_v16, 0.0  ;;  %v2470_v16 = vmul.f32 %v4497_v46, %v4497_v46  ;;  %v2471_v39 = vmul.f32 %v4512_v57, %v4512_v57 }
 0x24a   : > { %v2497_v34 = vadd.f32 %v2496_v2, %v2495_v7  ;;  %v2516_v2 = vsel %vm1554_vm5, %v2468_v52, 0.0  ;;  %v2518_v43 = vsel %vm1554_vm5, %v2469_v58, 0.0  ;;  %v2439_v35 = vsel %vm1554_vm5, %v4557_v50, 0.0 }
 0x24b   : > { %v2398_v26 = vadd.f32 %v2397_v11, %v2396_v1  ;;  %v2500_v11 = vsel %vm1554_vm5, %v2460_v36, 0.0  ;;  %v2429_v36 = vsel %vm1554_vm5, %v4530_v29, 0.0  ;;  %vm2448_vm9 = vcmask 253952  }
 0x24c   : > { %v2499_v1 = vadd.f32 %v2498_v9, %v2497_v34  ;;  %v2433_v34 = vsel %vm1554_vm5, %v4552_v51, 0.0 }
 0x24d   : > { %v2400_v49 = vadd.f32 %v2399_v27, %v2398_v26  ;;  %v2415_v27 = vsel %vm1554_vm5, %v4497_v46, 0.0  ;;  %v2417_v26 = vsel %vm1554_vm5, %v4512_v57, 0.0  ;;  %v2472_v46 = vmul.f32 %v4522_v18, %v4522_v18 }
 0x24e   : > { %v2501_v3 = vadd.f32 %v2500_v11, %v2499_v1  ;;  %v2473_v57 = vmul.f32 %v4510_v0, %v4510_v0  ;;  %v2522_v1 = vsel %vm1554_vm5, %v2471_v39, 0.0  ;;  %v2474_v18 = vmul.f32 %v4517_v14, %v4517_v14  ;;  %v2450_v39 = vld [vmem:[%s4858_s8] sm:$0x1] }
 0x24f   : > { %v2402_v15 = vadd.f32 %v2401_v44, %v2400_v49 }
 0x250   : > { %v2503_v44 = vadd.f32 %v2502_v19, %v2501_v3  ;;  %v2437_v19 = vsel %vm1554_vm5, %v4550_v13, 0.0 }
 0x251   : > { %v2404_v62 = vadd.f32 %v2403_v28, %v2402_v15  ;;  %v2421_v28 = vsel %vm1554_vm5, %v4510_v0, 0.0  ;;  %v2475_v0 = vmul.f32 %v4532_v12, %v4532_v12 }
 0x252   : > { %v2505_v48 = vadd.f32 %v2504_v41, %v2503_v44  ;;  %v2526_v41 = vsel %vm1554_vm5, %v2473_v57, 0.0  ;;  %v2675_v57 = vld [vmem:[%s4412_s29 + $0x38] sm:$0xff] (%p3617_p5) }
 0x253   : > { %v2406_v54 = vadd.f32 %v2405_v37, %v2404_v62  ;;  %v2510_v37 = vsel %vm1554_vm5, %v2465_v55, 0.0  ;;  %v2425_v62 = vsel %vm1554_vm5, %v4532_v12, 0.0  ;;  %v2528_v55 = vsel %vm1554_vm5, %v2474_v18, 0.0  ;;  %2676 = vst [vmem:[%s4760_s6 + $0x38] sm:$0xff] (%p3617_p5), %v2675_v57  ;;  %v2685_v18 = vld [vmem:[%s4412_s29 + $0x60] sm:$0xff] (%p3617_p5) }
 0x254   : > { %v2507_v15 = vadd.f32 %v2506_v21, %v2505_v48  ;;  %v2530_v48 = vsel %vm1554_vm5, %v2475_v0, 0.0  ;;  %v2478_v12 = vmul.f32 %v4537_v42, %v4537_v42  ;;  %2686 = vst [vmem:[%s4760_s6 + $0x60] sm:$0xff] (%p3617_p5), %v2685_v18  ;;  %v2695_v0 = vld [vmem:[%s4412_s29 + $0x88] sm:$0xff] (%p3617_p5) }
 0x255   : > { %v2408_v4 = vadd.f32 %v2407_v6, %v2406_v54  ;;  %v2514_v54 = vsel %vm1554_vm5, %v2467_v47, 0.0  ;;  %2696 = vst [vmem:[%s4760_s6 + $0x108] sm:$0xff] (%p3617_p5), %v2695_v0 }
 0x256   : > { %v2509_v56 = vadd.f32 %v2508_v20, %v2507_v15 }
 0x257   : > { %v2410_v17 = vadd.f32 %v2409_v5, %v2408_v4 }
 0x258   : > { %v2511_v24 = vadd.f32 %v2510_v37, %v2509_v56 }
 0x259   : > { %v2412_v40 = vadd.f32 %v2411_v8, %v2410_v17  ;;  %v2431_v8 = vsel %vm1554_vm5, %v4537_v42, 0.0  ;;  %v2481_v42 = vmul.f32 %v4550_v13, %v4550_v13 }
 0x25a   : > { %v2513_v5 = vadd.f32 %v2512_v25, %v2511_v24  ;;  %v2482_v24 = vmul.f32 %v4557_v50, %v4557_v50 }
 0x25b   : > { %v2414_v31 = vadd.f32 %v2413_v10, %v2412_v40  ;;  %v2520_v10 = vsel %vm1554_vm5, %v2470_v16, 0.0  ;;  %v2435_v40 = vsel %vm1554_vm5, %v4562_v53, 0.0 }
 0x25c   : > { %v2515_v7 = vadd.f32 %v2514_v54, %v2513_v5  ;;  %v2542_v54 = vsel %vm1554_vm5, %v2481_v42, 0.0  ;;  %v2544_v5 = vsel %vm1554_vm5, %v2482_v24, 0.0 }
 0x25d   : > { %v2416_v23 = vadd.f32 %v2415_v27, %v2414_v31  ;;  %v2524_v31 = vsel %vm1554_vm5, %v2472_v46, 0.0  ;;  %v2665_v46 = vld [vmem:[%s4412_s29 + $0x10] sm:$0xff] (%p3617_p5) }
 0x25e   : > { %v2517_v17 = vadd.f32 %v2516_v2, %v2515_v7  ;;  %2666 = vst [vmem:[%s4760_s6 + $0x10] sm:$0xff] (%p3617_p5), %v2665_v46 }
 0x25f   : > { %v2418_v49 = vadd.f32 %v2417_v26, %v2416_v23 }
 0x260   : > { %v2519_v11 = vadd.f32 %v2518_v43, %v2517_v17  ;;  %v2661_v17 = vld [vmem:[%s4412_s29] sm:$0xff] (%p3617_p5) }
 0x261   : > { %v2420_v60 = vadd.f32 %v2419_v22, %v2418_v49  ;;  %v2476_v22 = vmul.f32 %v4542_v30, %v4542_v30  ;;  %v2477_v49 = vmul.f32 %v4530_v29, %v4530_v29  ;;  %v2479_v30 = vmul.f32 %v4552_v51, %v4552_v51  ;;  %v2377_v51 = vld [vmem:[%s4857_s7] sm:$0x1]  ;;  %2662 = vst [vmem:[%s4760_s6] sm:$0xff] (%p3617_p5), %v2661_v17 }
 0x262   : > { %v2521_v33 = vadd.f32 %v2520_v10, %v2519_v11  ;;  %v2480_v29 = vmul.f32 %v4562_v53, %v4562_v53  ;;  %v2667_v10 = vld [vmem:[%s4412_s29 + $0x18] sm:$0xff] (%p3617_p5)  ;;  %v2671_v11 = vld [vmem:[%s4412_s29 + $0x28] sm:$0xff] (%p3617_p5) }
 0x263   : > { %v2422_v32 = vadd.f32 %v2421_v28, %v2420_v60  ;;  %v2532_v20 = vsel %vm1554_vm5, %v2476_v22, 0.0  ;;  %v2538_v52 = vsel %vm1554_vm5, %v2479_v30, 0.0  ;;  %2668 = vst [vmem:[%s4760_s6 + $0x18] sm:$0xff] (%p3617_p5), %v2667_v10  ;;  %2672 = vst [vmem:[%s4760_s6 + $0x28] sm:$0xff] (%p3617_p5), %v2671_v11  ;;  %v2703_v22 = vld [vmem:[%s4412_s29 + $0xa8] sm:$0xff] (%p3617_p5) }
 0x264   : > { %v2523_v26 = vadd.f32 %v2522_v1, %v2521_v33  ;;  %v2540_v53 = vsel %vm1554_vm5, %v2480_v29, 0.0  ;;  %v2677_v1 = vld [vmem:[%s4412_s29 + $0x40] sm:$0xff] (%p3617_p5)  ;;  %v2681_v33 = vld [vmem:[%s4412_s29 + $0x50] sm:$0xff] (%p3617_p5)  ;;  %2704 = vst [vmem:[%s4760_s6 + $0x128] sm:$0xff] (%p3617_p5), %v2703_v22 }
 0x265   : > { %v2424_v6 = vadd.f32 %v2423_v38, %v2422_v32  ;;  %v2534_v38 = vsel %vm1554_vm5, %v2477_v49, 0.0  ;;  %v2536_v32 = vsel %vm1554_vm5, %v2478_v12, 0.0  ;;  %2678 = vst [vmem:[%s4760_s6 + $0x40] sm:$0xff] (%p3617_p5), %v2677_v1  ;;  %2682 = vst [vmem:[%s4760_s6 + $0x50] sm:$0xff] (%p3617_p5), %v2681_v33  ;;  %v2711_v49 = vld [vmem:[%s4412_s29 + $0xc8] sm:$0xff] (%p3617_p5) }
 0x266   : > { %v2525_v44 = vadd.f32 %v2524_v31, %v2523_v26  ;;  %v2687_v31 = vld [vmem:[%s4412_s29 + $0x68] sm:$0xff] (%p3617_p5)  ;;  %v2691_v26 = vld [vmem:[%s4412_s29 + $0x78] sm:$0xff] (%p3617_p5)  ;;  %2712 = vst [vmem:[%s4760_s6 + $0x148] sm:$0xff] (%p3617_p5), %v2711_v49 }
 0x267   : > { %v2426_v61 = vadd.f32 %v2425_v62, %v2424_v6  ;;  %2688 = vst [vmem:[%s4760_s6 + $0x68] sm:$0xff] (%p3617_p5), %v2687_v31  ;;  %2692 = vst [vmem:[%s4760_s6 + $0x78] sm:$0xff] (%p3617_p5), %v2691_v26  ;;  %v2719_v12 = vld [vmem:[%s4412_s29 + $0xe8] sm:$0xff] (%p3617_p5) }
 0x268   : > { %v2527_v21 = vadd.f32 %v2526_v41, %v2525_v44  ;;  %v2697_v41 = vld [vmem:[%s4412_s29 + $0x90] sm:$0xff] (%p3617_p5)  ;;  %v2701_v44 = vld [vmem:[%s4412_s29 + $0xa0] sm:$0xff] (%p3617_p5)  ;;  %2720 = vst [vmem:[%s4760_s6 + $0x168] sm:$0xff] (%p3617_p5), %v2719_v12 }
 0x269   : > { %v2428_v4 = vadd.f32 %v2427_v63, %v2426_v61  ;;  %2698 = vst [vmem:[%s4760_s6 + $0x110] sm:$0xff] (%p3617_p5), %v2697_v41  ;;  %2702 = vst [vmem:[%s4760_s6 + $0x120] sm:$0xff] (%p3617_p5), %v2701_v44 }
 0x26a   : > { %v2529_v59 = vadd.f32 %v2528_v55, %v2527_v21  ;;  %v2705_v55 = vld [vmem:[%s4412_s29 + $0xb0] sm:$0xff] (%p3617_p5)  ;;  %v2709_v21 = vld [vmem:[%s4412_s29 + $0xc0] sm:$0xff] (%p3617_p5) }
 0x26b   : > { %v2430_v9 = vadd.f32 %v2429_v36, %v2428_v4  ;;  %2706 = vst [vmem:[%s4760_s6 + $0x130] sm:$0xff] (%p3617_p5), %v2705_v55  ;;  %2710 = vst [vmem:[%s4760_s6 + $0x140] sm:$0xff] (%p3617_p5), %v2709_v21 }
 0x26c   : > { %v2531_v15 = vadd.f32 %v2530_v48, %v2529_v59  ;;  %v2713_v48 = vld [vmem:[%s4412_s29 + $0xd0] sm:$0xff] (%p3617_p5)  ;;  %v2717_v59 = vld [vmem:[%s4412_s29 + $0xe0] sm:$0xff] (%p3617_p5) }
 0x26d   : > { %v2432_v45 = vadd.f32 %v2431_v8, %v2430_v9  ;;  %2714 = vst [vmem:[%s4760_s6 + $0x150] sm:$0xff] (%p3617_p5), %v2713_v48  ;;  %2718 = vst [vmem:[%s4760_s6 + $0x160] sm:$0xff] (%p3617_p5), %v2717_v59 }
 0x26e   : > { %v2533_v37 = vadd.f32 %v2532_v20, %v2531_v15  ;;  %v2721_v20 = vld [vmem:[%s4412_s29 + $0xf0] sm:$0xff] (%p3617_p5) }
 0x26f   : > { %v2434_v27 = vadd.f32 %v2433_v34, %v2432_v45  ;;  %v2663_v34 = vld [vmem:[%s4412_s29 + $0x8] sm:$0xff] (%p3617_p5)  ;;  %v2669_v45 = vld [vmem:[%s4412_s29 + $0x20] sm:$0xff] (%p3617_p5)  ;;  %2722 = vst [vmem:[%s4760_s6 + $0x170] sm:$0xff] (%p3617_p5), %v2721_v20 }
 0x270   : > { %v2535_v62 = vadd.f32 %v2534_v38, %v2533_v37  ;;  %2664 = vst [vmem:[%s4760_s6 + $0x8] sm:$0xff] (%p3617_p5), %v2663_v34  ;;  %2670 = vst [vmem:[%s4760_s6 + $0x20] sm:$0xff] (%p3617_p5), %v2669_v45 }
 0x271   : > { %v2436_v3 = vadd.f32 %v2435_v40, %v2434_v27  ;;  %v2673_v40 = vld [vmem:[%s4412_s29 + $0x30] sm:$0xff] (%p3617_p5)  ;;  %v2679_v27 = vld [vmem:[%s4412_s29 + $0x48] sm:$0xff] (%p3617_p5) }
 0x272   : > { %v2537_v6 = vadd.f32 %v2536_v32, %v2535_v62  ;;  %2674 = vst [vmem:[%s4760_s6 + $0x30] sm:$0xff] (%p3617_p5), %v2673_v40  ;;  %2680 = vst [vmem:[%s4760_s6 + $0x48] sm:$0xff] (%p3617_p5), %v2679_v27 }
 0x273   : > { %v2438_v23 = vadd.f32 %v2437_v19, %v2436_v3  ;;  %v2683_v19 = vld [vmem:[%s4412_s29 + $0x58] sm:$0xff] (%p3617_p5)  ;;  %v2689_v3 = vld [vmem:[%s4412_s29 + $0x70] sm:$0xff] (%p3617_p5) }
 0x274   : > { %v2539_v58 = vadd.f32 %v2538_v52, %v2537_v6  ;;  %2684 = vst [vmem:[%s4760_s6 + $0x58] sm:$0xff] (%p3617_p5), %v2683_v19  ;;  %2690 = vst [vmem:[%s4760_s6 + $0x70] sm:$0xff] (%p3617_p5), %v2689_v3 }
 0x275   : > { %v2440_v14 = vadd.f32 %v2439_v35, %v2438_v23  ;;  %v2693_v35 = vld [vmem:[%s4412_s29 + $0x80] sm:$0xff] (%p3617_p5)  ;;  %v2699_v23 = vld [vmem:[%s4412_s29 + $0x98] sm:$0xff] (%p3617_p5) }
 0x276   : > { %v2541_v13 = vadd.f32 %v2540_v53, %v2539_v58  ;;  %2694 = vst [vmem:[%s4760_s6 + $0x100] sm:$0xff] (%p3617_p5), %v2693_v35  ;;  %2700 = vst [vmem:[%s4760_s6 + $0x118] sm:$0xff] (%p3617_p5), %v2699_v23 }
 0x277   : > { %v2441_v28 = vrot.slane %v2440_v14, 4 }
 0x278   : > { %v2543_v36 = vadd.f32 %v2542_v54, %v2541_v13 }
 0x279   : > { %v2442_v60 = vadd.f32 %v2441_v28, %v2440_v14  ;;  %v2707_v14 = vld [vmem:[%s4412_s29 + $0xb8] sm:$0xff] (%p3617_p5) }
 0x27a   : > { %v2545_v16 = vadd.f32 %v2544_v5, %v2543_v36  ;;  %2708 = vst [vmem:[%s4760_s6 + $0x138] sm:$0xff] (%p3617_p5), %v2707_v14  ;;  %v2715_v28 = vld [vmem:[%s4412_s29 + $0xd8] sm:$0xff] (%p3617_p5) }
 0x27b   : > { %v2443_v47 = vrot.slane %v2442_v60, 2  ;;  %2716 = vst [vmem:[%s4760_s6 + $0x158] sm:$0xff] (%p3617_p5), %v2715_v28 }
 0x27c   : > { %v2546_v2 = vrot.slane %v2545_v16, 4 }
 0x27d   : > { %v2444_v56 = vadd.f32 %v2443_v47, %v2442_v60  ;;  %v2723_v60 = vld [vmem:[%s4412_s29 + $0xf8] sm:$0xff] (%p3617_p5) }
 0x27e   : > { %v2547_v50 = vadd.f32 %v2546_v2, %v2545_v16  ;;  %2724 = vst [vmem:[%s4760_s6 + $0x178] sm:$0xff] (%p3617_p5), %v2723_v60 }
 0x27f   : > { %v2445_v25 = vrot.slane %v2444_v56, 1 }
 0x280   : > { %v2548_v4 = vrot.slane %v2547_v50, 2 }
 0x281   : > { %v2446_v63 = vadd.f32 %v2445_v25, %v2444_v56 }
 0x282   : > { %v2549_v7 = vadd.f32 %v2548_v4, %v2547_v50 }
 0x283   : > { %v2447_v61 = vadd.f32 %v2446_v63, %v2377_v51 }
 0x284   : > { %v2550_v8 = vrot.slane %v2549_v7, 1  ;;  %2566 = sbr.rel (!%p3617_p5) target bundleno = 651 (0x28b), region = 166 }
 0x285   : > { %2449 = vst.msk [vmem:[%s4857_s7] sm:$0x1] %vm2448_vm9, %v2447_v61 }
 0x286   : > { %v2551_v43 = vadd.f32 %v2550_v8, %v2549_v7 }
 0x288   : > { %v2552_v9 = vadd.f32 %v2551_v43, %v2450_v39 }
 0x28a   : > { %2553 = vst.msk [vmem:[%s4858_s8] sm:$0x1] %vm2448_vm9, %v2552_v9 }
 0x28b PF: > { %s19_s13 = sadd.s32 1, %s3468_s13   ;;  %s4873_s11 = sld [smem:[#allocation8_spill]] }
 0x28c   : > { %p16_p12 = scmp.ge.s32.totalorder %s19_s13, 4   ;;  %s4874_s23 = sld [smem:[#allocation7_spill]] }
 0x28d   : > { %s4875_s16 = sld [smem:[#allocation6_spill]]  ;;  %s4876_s27 = smov %s3440_s28 }
 0x28e   : > { %s4877_s28 = smov %s3622_s20  ;;  %s4878_s29 = smov %s3448_s30 }
 0x28f   : > { %s4880_s9 = smov %s3456_s10  ;;  %18 = sbr.rel (!%p16_p12) target bundleno = 8 (0x8), region = 280 }
 0x291   : > { %s4879_s30 = smov %s4873_s11  ;;  %s4882_s11 = smov %s3464_s12 }
 0x292   : > { %s4881_s10 = smov %s4874_s23 }
 0x293   : > { %s4883_s12 = smov %s4875_s16 }

</bundles_post_ra>
